<compile_context>
chip_gen: v6e
topology: v6e:2x2x1
jax: 0.10.0
libtpu: 0.0.40
codegen_flags: <defaults>
</compile_context>

<pallas_src>
import math

import jax
import jax.numpy as jnp
from jax.experimental import pallas as pl
from jax.experimental.pallas import tpu as pltpu

C_IN = 3
C_OUT = 32
KSIZE = 7
STRIDE = 2
POOL_OUT = (2, 2, 3)
N_BINS = POOL_OUT[0] * POOL_OUT[1] * POOL_OUT[2]   # 12
BN_EPS = 1e-5
LRELU_SLOPE = 0.01                                  # nn.LeakyReLU default
LANE = 128
NEG = -1e30


def pool_bins(in_size, out_size):
    """AdaptiveMaxPool bin boundaries (same formula as PyTorch)."""
    return [(int(math.floor(i * in_size / out_size)),
             int(math.ceil((i + 1) * in_size / out_size)))
            for i in range(out_size)]


def im2col_3d(x, k, s):
    """x: (N, C, D, H, W) -> (N, Do*Ho*Wo, C*k^3), feature order (C, kd, kh, kw)."""
    N, C, D, H, W = x.shape
    Do, Ho, Wo = (D - k) // s + 1, (H - k) // s + 1, (W - k) // s + 1
    di = (s * jnp.arange(Do))[:, None] + jnp.arange(k)[None, :]   # (Do, k)
    hi = (s * jnp.arange(Ho))[:, None] + jnp.arange(k)[None, :]   # (Ho, k)
    wi = (s * jnp.arange(Wo))[:, None] + jnp.arange(k)[None, :]   # (Wo, k)
    p = x[:, :, di[:, :, None, None, None, None],
              hi[None, None, :, :, None, None],
              wi[None, None, None, None, :, :]]
    # (N, C, Do, kd, Ho, kh, Wo, kw) -> (N, Do, Ho, Wo, C, kd, kh, kw)
    p = p.transpose(0, 2, 4, 6, 1, 3, 5, 7)
    return p.reshape(N, Do * Ho * Wo, C * k * k * k), (Do, Ho, Wo)


def _round_up(v, m):
    return ((v + m - 1) // m) * m


def classifier_forward(x, params):
    """Pallas forward pass. x: (N, 3, D, H, W) float32 (NCDHW, like PyTorch)."""
    N = x.shape[0]

    # -------- wrapper-side prep (runs under jit, all on weights / tiny arrays) --------
    patches, (Do, Ho, Wo) = im2col_3d(x, KSIZE, STRIDE)          # (N, S, K)
    _, S, K = patches.shape
    S_pad = _round_up(S, 8)
    Kp = _round_up(K, LANE)
    patches = jnp.pad(patches, ((0, 0), (0, S_pad - S), (0, Kp - K)))

    # conv weight as (Kp, 32) matmul RHS; conv bias folded into b1 below
    wc = params["conv_w"].reshape(C_OUT, K).T
    wc = jnp.pad(wc, ((0, Kp - K), (0, 0)))

    # Static adaptive-max-pool membership mask, additive form (0 in-bin / -1e30 out).
    bins_d = pool_bins(Do, POOL_OUT[0])
    bins_h = pool_bins(Ho, POOL_OUT[1])
    bins_w = pool_bins(Wo, POOL_OUT[2])
    s_idx = jnp.arange(S_pad)
    dd = s_idx // (Ho * Wo)
    hh = (s_idx // Wo) % Ho
    ww = s_idx % Wo
    valid = s_idx < S
    cols = []
    for (d0, d1) in bins_d:            # bin index b = pd*6 + ph*3 + pw (torch order)
        for (h0, h1) in bins_h:
            for (w0, w1) in bins_w:
                member = valid & (dd >= d0) & (dd < d1) & (hh >= h0) & (hh < h1) \
                    & (ww >= w0) & (ww < w1)
                cols.append(jnp.where(member, 0.0, NEG))
    pool_mask = jnp.stack(cols, axis=1).astype(jnp.float32)      # (S_pad, 12)

    # Fold conv bias + inference BatchNorm + torch Flatten permutation into Linear-1.
    #   torch feature f = c*12 + bin ; kernel feature g = bin*32 + c
    bn_scale = params["bn_gamma"] / jnp.sqrt(params["bn_var"] + BN_EPS)   # (32,)
    bn_shift = params["bn_beta"] - params["bn_mean"] * bn_scale
    w1, b1 = params["w1"], params["b1"]                          # (384,128), (128,)
    feat = C_OUT * N_BINS
    H1 = w1.shape[1]
    g = jnp.arange(feat)
    c_of_g = g % C_OUT
    bin_of_g = g // C_OUT
    torch_f = c_of_g * N_BINS + bin_of_g
    w1_eff = w1[torch_f, :] * bn_scale[c_of_g][:, None]          # (384, 128)
    const_c = bn_shift + bn_scale * params["conv_b"]             # per-channel constant
    b1_eff = (b1 + const_c @ w1.reshape(C_OUT, N_BINS, H1).sum(axis=1)).reshape(1, H1)

    w2, b2 = params["w2"], params["b2"].reshape(1, -1)
    H2 = w2.shape[1]
    w3, b3 = params["w3"], params["b3"]
    num_classes = w3.shape[1]
    C_PAD = _round_up(num_classes, LANE)                         # lane-dense logits
    w3p = jnp.pad(w3, ((0, 0), (0, C_PAD - num_classes)))
    b3p = jnp.pad(b3, (0, C_PAD - num_classes)).reshape(1, C_PAD)

    # -------- fused conv + adaptive max-pool + (folded BN) MLP kernel ------------------
    def fused_kernel(p_ref, mask_ref, wc_ref, w1_ref, b1_ref, w2_ref, b2_ref,
                     w3_ref, b3_ref, o_ref):
        # Conv3d as one MXU matmul: (S_pad, Kp) @ (Kp, 32)
        acc = jnp.dot(p_ref[0], wc_ref[...], preferred_element_type=jnp.float32)
        # AdaptiveMaxPool3d((2,2,3)): additive -inf mask + 12 sublane max-reductions
        pooled = [jnp.max(acc + mask_ref[:, b:b + 1], axis=0, keepdims=True)
                  for b in range(N_BINS)]                        # 12 x (1, 32)
        flat = jnp.concatenate(pooled, axis=1)                   # (1, 384), g = bin*32+c
        # conv bias + BatchNorm folded into w1/b1; Dropout(0.2) is identity at inference
        h = jnp.dot(flat, w1_ref[...], preferred_element_type=jnp.float32) + b1_ref[...]
        h = jnp.where(h > 0, h, LRELU_SLOPE * h)                 # LeakyReLU
        h = jnp.dot(h, w2_ref[...], preferred_element_type=jnp.float32) + b2_ref[...]
        h = jnp.where(h > 0, h, LRELU_SLOPE * h)
        o_ref[0] = jnp.dot(h, w3_ref[...], preferred_element_type=jnp.float32) + b3_ref[...]

    def fixed(shape):
        return pl.BlockSpec(shape, lambda n: (0,) * len(shape))

    logits_pad = pl.pallas_call(
        fused_kernel,
        out_shape=jax.ShapeDtypeStruct((N, 1, C_PAD), jnp.float32),
        grid=(N,),
        in_specs=[pl.BlockSpec((1, S_pad, Kp), lambda n: (n, 0, 0)),   # patches (per sample)
                  fixed((S_pad, N_BINS)),                              # pool mask
                  fixed((Kp, C_OUT)),                                  # conv weight
                  fixed((feat, H1)), fixed((1, H1)),                   # Linear-1 (folded)
                  fixed((H1, H2)), fixed((1, H2)),                     # Linear-2
                  fixed((H2, C_PAD)), fixed((1, C_PAD))],              # Linear-3 (padded)
        out_specs=pl.BlockSpec((1, 1, C_PAD), lambda n: (n, 0, 0)),
        compiler_params=pltpu.CompilerParams(
            dimension_semantics=("parallel",)),
    )(patches, pool_mask, wc, w1_eff, b1_eff, w2, b2, w3p, b3p)

    return logits_pad.reshape(N, C_PAD)[:, :num_classes]


def reference_forward(x, params):
    """Pure-JAX reference (same math) for validation."""
    N = x.shape[0]
    conv = jax.lax.conv_general_dilated(
        x, params["conv_w"], window_strides=(STRIDE,) * 3, padding="VALID",
        dimension_numbers=("NCDHW", "OIDHW", "NCDHW"),
        precision=jax.lax.Precision.HIGHEST)
    conv = conv + params["conv_b"].reshape(1, C_OUT, 1, 1, 1)
    _, C, Do, Ho, Wo = conv.shape
    bins_d, bins_h, bins_w = pool_bins(Do, 2), pool_bins(Ho, 2), pool_bins(Wo, 3)
    vals = []
    for (d0, d1) in bins_d:
        for (h0, h1) in bins_h:
            for (w0, w1) in bins_w:
                vals.append(jnp.max(conv[:, :, d0:d1, h0:h1, w0:w1], axis=(2, 3, 4)))
    pooled = jnp.stack(vals, axis=-1)                            # (N, C, 12)
    bn = (pooled - params["bn_mean"][None, :, None]) / \
         jnp.sqrt(params["bn_var"] + BN_EPS)[None, :, None]
    bn = bn * params["bn_gamma"][None, :, None] + params["bn_beta"][None, :, None]
    flat = bn.reshape(N, -1)
    hp = jax.lax.Precision.HIGHEST
    lrelu = lambda v: jnp.where(v > 0, v, LRELU_SLOPE * v)
    h = lrelu(jnp.dot(flat, params["w1"], precision=hp) + params["b1"])
    h = lrelu(jnp.dot(h, params["w2"], precision=hp) + params["b2"])
    return jnp.dot(h, params["w3"], precision=hp) + params["b3"]


if __name__ == "__main__":
    N, D, H, W = 2, 15, 15, 15        # conv output spatial = 5x5x5 -> pool (2,2,3)
    NUM_CLASSES = 6                   # synthetic (dataset label file not available)

    key = jax.random.PRNGKey(0)
    ks = jax.random.split(key, 12)
    x = jax.random.normal(ks[0], (N, C_IN, D, H, W), jnp.float32)
    params = {
        "conv_w": 0.05 * jax.random.normal(ks[1], (C_OUT, C_IN, KSIZE, KSIZE, KSIZE), jnp.float32),
        "conv_b": 0.10 * jax.random.normal(ks[2], (C_OUT,), jnp.float32),
        "bn_gamma": 1.0 + 0.1 * jax.random.normal(ks[3], (C_OUT,), jnp.float32),
        "bn_beta": 0.1 * jax.random.normal(ks[4], (C_OUT,), jnp.float32),
        "bn_mean": 0.1 * jax.random.normal(ks[5], (C_OUT,), jnp.float32),
        "bn_var": jnp.abs(1.0 + 0.1 * jax.random.normal(ks[6], (C_OUT,), jnp.float32)),
        "w1": 0.05 * jax.random.normal(ks[7], (384, 128), jnp.float32),
        "b1": 0.05 * jax.random.normal(ks[8], (128,), jnp.float32),
        "w2": 0.05 * jax.random.normal(ks[9], (128, 32), jnp.float32),
        "b2": 0.05 * jax.random.normal(ks[10], (32,), jnp.float32),
        "w3": 0.05 * jax.random.normal(ks[11], (32, NUM_CLASSES), jnp.float32),
        "b3": jnp.zeros((NUM_CLASSES,), jnp.float32),
    }

    fwd = jax.jit(classifier_forward)
    out = jax.block_until_ready(fwd(x, params))
    assert out.shape == (N, NUM_CLASSES)

    ref = reference_forward(x, params)
    err = float(jnp.max(jnp.abs(out - ref)))
    bound = 5e-2 * (1.0 + float(jnp.max(jnp.abs(ref))))
    assert err < bound, f"mismatch vs reference: {err} (bound {bound})"

    print("KERNEL_OK")
</pallas_src>

<mosaic_0001>
module attributes {stable_mosaic.version = 11 : i64} {
  func.func @fused_kernel(%arg0: i32, %arg1: memref<1x128x1152xf32, #tpu.memory_space<vmem>>, %arg2: memref<128x12xf32, #tpu.memory_space<vmem>>, %arg3: memref<1152x32xf32, #tpu.memory_space<vmem>>, %arg4: memref<384x128xf32, #tpu.memory_space<vmem>>, %arg5: memref<1x128xf32, #tpu.memory_space<vmem>>, %arg6: memref<128x32xf32, #tpu.memory_space<vmem>>, %arg7: memref<1x32xf32, #tpu.memory_space<vmem>>, %arg8: memref<32x128xf32, #tpu.memory_space<vmem>>, %arg9: memref<1x128xf32, #tpu.memory_space<vmem>>, %arg10: memref<1x1x128xf32, #tpu.memory_space<vmem>>) attributes {dimension_semantics = [#tpu.dimension_semantics<parallel>], iteration_bounds = array<i64: 2>, scalar_prefetch = 0 : i64, scratch_operands = 0 : i64, tpu.core_type = #tpu.core_type<tc>, window_params = [{transform_indices = @transform_0, window_bounds = array<i64: 1, 128, 1152>}, {pipeline_mode = #tpu.pipeline_mode<synchronous>, transform_indices = @transform_1, window_bounds = array<i64: 128, 12>}, {pipeline_mode = #tpu.pipeline_mode<synchronous>, transform_indices = @transform_2, window_bounds = array<i64: 1152, 32>}, {pipeline_mode = #tpu.pipeline_mode<synchronous>, transform_indices = @transform_3, window_bounds = array<i64: 384, 128>}, {pipeline_mode = #tpu.pipeline_mode<synchronous>, transform_indices = @transform_4, window_bounds = array<i64: 1, 128>}, {pipeline_mode = #tpu.pipeline_mode<synchronous>, transform_indices = @transform_5, window_bounds = array<i64: 128, 32>}, {pipeline_mode = #tpu.pipeline_mode<synchronous>, transform_indices = @transform_6, window_bounds = array<i64: 1, 32>}, {pipeline_mode = #tpu.pipeline_mode<synchronous>, transform_indices = @transform_7, window_bounds = array<i64: 32, 128>}, {pipeline_mode = #tpu.pipeline_mode<synchronous>, transform_indices = @transform_8, window_bounds = array<i64: 1, 128>}, {transform_indices = @transform_9, window_bounds = array<i64: 1, 1, 128>}]} {
    %c0 = arith.constant 0 : index
    %c0_0 = arith.constant 0 : index
    %c0_1 = arith.constant 0 : index
    %0 = vector.load %arg1[%c0, %c0_0, %c0_1] : memref<1x128x1152xf32, #tpu.memory_space<vmem>>, vector<1x128x1152xf32>
    %1 = vector.shape_cast %0 : vector<1x128x1152xf32> to vector<128x1152xf32>
    %c0_2 = arith.constant 0 : index
    %c0_3 = arith.constant 0 : index
    %2 = vector.load %arg3[%c0_2, %c0_3] : memref<1152x32xf32, #tpu.memory_space<vmem>>, vector<1152x32xf32>
    %cst = arith.constant dense<0.000000e+00> : vector<128x32xf32>
    %3 = tpu.matmul %1, %2, %cst {dimension_numbers = #tpu.dot_dimension_numbers<[1], [0], [0], [1], [0, 0, 1, 1], [], []>} : vector<128x1152xf32>, vector<1152x32xf32>, vector<128x32xf32> -> vector<128x32xf32>
    %c0_4 = arith.constant 0 : index
    %c0_5 = arith.constant 0 : index
    %4 = vector.load %arg2[%c0_4, %c0_5] : memref<128x12xf32, #tpu.memory_space<vmem>>, vector<128x1xf32>
    %5 = vector.broadcast %4 : vector<128x1xf32> to vector<128x32xf32>
    %6 = arith.addf %3, %5 : vector<128x32xf32>
    %cst_6 = arith.constant dense<0xFF800000> : vector<32xf32>
    %7 = vector.multi_reduction <maximumf>, %6, %cst_6 [0] : vector<128x32xf32> to vector<32xf32>
    %8 = vector.shape_cast %7 : vector<32xf32> to vector<1x32xf32>
    %c0_7 = arith.constant 0 : index
    %c1 = arith.constant 1 : index
    %9 = vector.load %arg2[%c0_7, %c1] : memref<128x12xf32, #tpu.memory_space<vmem>>, vector<128x1xf32>
    %10 = vector.broadcast %9 : vector<128x1xf32> to vector<128x32xf32>
    %11 = arith.addf %3, %10 : vector<128x32xf32>
    %cst_8 = arith.constant dense<0xFF800000> : vector<32xf32>
    %12 = vector.multi_reduction <maximumf>, %11, %cst_8 [0] : vector<128x32xf32> to vector<32xf32>
    %13 = vector.shape_cast %12 : vector<32xf32> to vector<1x32xf32>
    %c0_9 = arith.constant 0 : index
    %c2 = arith.constant 2 : index
    %14 = vector.load %arg2[%c0_9, %c2] : memref<128x12xf32, #tpu.memory_space<vmem>>, vector<128x1xf32>
    %15 = vector.broadcast %14 : vector<128x1xf32> to vector<128x32xf32>
    %16 = arith.addf %3, %15 : vector<128x32xf32>
    %cst_10 = arith.constant dense<0xFF800000> : vector<32xf32>
    %17 = vector.multi_reduction <maximumf>, %16, %cst_10 [0] : vector<128x32xf32> to vector<32xf32>
    %18 = vector.shape_cast %17 : vector<32xf32> to vector<1x32xf32>
    %c0_11 = arith.constant 0 : index
    %c3 = arith.constant 3 : index
    %19 = vector.load %arg2[%c0_11, %c3] : memref<128x12xf32, #tpu.memory_space<vmem>>, vector<128x1xf32>
    %20 = vector.broadcast %19 : vector<128x1xf32> to vector<128x32xf32>
    %21 = arith.addf %3, %20 : vector<128x32xf32>
    %cst_12 = arith.constant dense<0xFF800000> : vector<32xf32>
    %22 = vector.multi_reduction <maximumf>, %21, %cst_12 [0] : vector<128x32xf32> to vector<32xf32>
    %23 = vector.shape_cast %22 : vector<32xf32> to vector<1x32xf32>
    %c0_13 = arith.constant 0 : index
    %c4 = arith.constant 4 : index
    %24 = vector.load %arg2[%c0_13, %c4] : memref<128x12xf32, #tpu.memory_space<vmem>>, vector<128x1xf32>
    %25 = vector.broadcast %24 : vector<128x1xf32> to vector<128x32xf32>
    %26 = arith.addf %3, %25 : vector<128x32xf32>
    %cst_14 = arith.constant dense<0xFF800000> : vector<32xf32>
    %27 = vector.multi_reduction <maximumf>, %26, %cst_14 [0] : vector<128x32xf32> to vector<32xf32>
    %28 = vector.shape_cast %27 : vector<32xf32> to vector<1x32xf32>
    %c0_15 = arith.constant 0 : index
    %c5 = arith.constant 5 : index
    %29 = vector.load %arg2[%c0_15, %c5] : memref<128x12xf32, #tpu.memory_space<vmem>>, vector<128x1xf32>
    %30 = vector.broadcast %29 : vector<128x1xf32> to vector<128x32xf32>
    %31 = arith.addf %3, %30 : vector<128x32xf32>
    %cst_16 = arith.constant dense<0xFF800000> : vector<32xf32>
    %32 = vector.multi_reduction <maximumf>, %31, %cst_16 [0] : vector<128x32xf32> to vector<32xf32>
    %33 = vector.shape_cast %32 : vector<32xf32> to vector<1x32xf32>
    %c0_17 = arith.constant 0 : index
    %c6 = arith.constant 6 : index
    %34 = vector.load %arg2[%c0_17, %c6] : memref<128x12xf32, #tpu.memory_space<vmem>>, vector<128x1xf32>
    %35 = vector.broadcast %34 : vector<128x1xf32> to vector<128x32xf32>
    %36 = arith.addf %3, %35 : vector<128x32xf32>
    %cst_18 = arith.constant dense<0xFF800000> : vector<32xf32>
    %37 = vector.multi_reduction <maximumf>, %36, %cst_18 [0] : vector<128x32xf32> to vector<32xf32>
    %38 = vector.shape_cast %37 : vector<32xf32> to vector<1x32xf32>
    %c0_19 = arith.constant 0 : index
    %c7 = arith.constant 7 : index
    %39 = vector.load %arg2[%c0_19, %c7] : memref<128x12xf32, #tpu.memory_space<vmem>>, vector<128x1xf32>
    %40 = vector.broadcast %39 : vector<128x1xf32> to vector<128x32xf32>
    %41 = arith.addf %3, %40 : vector<128x32xf32>
    %cst_20 = arith.constant dense<0xFF800000> : vector<32xf32>
    %42 = vector.multi_reduction <maximumf>, %41, %cst_20 [0] : vector<128x32xf32> to vector<32xf32>
    %43 = vector.shape_cast %42 : vector<32xf32> to vector<1x32xf32>
    %c0_21 = arith.constant 0 : index
    %c8 = arith.constant 8 : index
    %44 = vector.load %arg2[%c0_21, %c8] : memref<128x12xf32, #tpu.memory_space<vmem>>, vector<128x1xf32>
    %45 = vector.broadcast %44 : vector<128x1xf32> to vector<128x32xf32>
    %46 = arith.addf %3, %45 : vector<128x32xf32>
    %cst_22 = arith.constant dense<0xFF800000> : vector<32xf32>
    %47 = vector.multi_reduction <maximumf>, %46, %cst_22 [0] : vector<128x32xf32> to vector<32xf32>
    %48 = vector.shape_cast %47 : vector<32xf32> to vector<1x32xf32>
    %c0_23 = arith.constant 0 : index
    %c9 = arith.constant 9 : index
    %49 = vector.load %arg2[%c0_23, %c9] : memref<128x12xf32, #tpu.memory_space<vmem>>, vector<128x1xf32>
    %50 = vector.broadcast %49 : vector<128x1xf32> to vector<128x32xf32>
    %51 = arith.addf %3, %50 : vector<128x32xf32>
    %cst_24 = arith.constant dense<0xFF800000> : vector<32xf32>
    %52 = vector.multi_reduction <maximumf>, %51, %cst_24 [0] : vector<128x32xf32> to vector<32xf32>
    %53 = vector.shape_cast %52 : vector<32xf32> to vector<1x32xf32>
    %c0_25 = arith.constant 0 : index
    %c10 = arith.constant 10 : index
    %54 = vector.load %arg2[%c0_25, %c10] : memref<128x12xf32, #tpu.memory_space<vmem>>, vector<128x1xf32>
    %55 = vector.broadcast %54 : vector<128x1xf32> to vector<128x32xf32>
    %56 = arith.addf %3, %55 : vector<128x32xf32>
    %cst_26 = arith.constant dense<0xFF800000> : vector<32xf32>
    %57 = vector.multi_reduction <maximumf>, %56, %cst_26 [0] : vector<128x32xf32> to vector<32xf32>
    %58 = vector.shape_cast %57 : vector<32xf32> to vector<1x32xf32>
    %c0_27 = arith.constant 0 : index
    %c11 = arith.constant 11 : index
    %59 = vector.load %arg2[%c0_27, %c11] : memref<128x12xf32, #tpu.memory_space<vmem>>, vector<128x1xf32>
    %60 = vector.broadcast %59 : vector<128x1xf32> to vector<128x32xf32>
    %61 = arith.addf %3, %60 : vector<128x32xf32>
    %cst_28 = arith.constant dense<0xFF800000> : vector<32xf32>
    %62 = vector.multi_reduction <maximumf>, %61, %cst_28 [0] : vector<128x32xf32> to vector<32xf32>
    %63 = vector.shape_cast %62 : vector<32xf32> to vector<1x32xf32>
    %64 = tpu.concatenate %8, %13, %18, %23, %28, %33, %38, %43, %48, %53, %58, %63 in 1 : vector<1x32xf32>, vector<1x32xf32>, vector<1x32xf32>, vector<1x32xf32>, vector<1x32xf32>, vector<1x32xf32>, vector<1x32xf32>, vector<1x32xf32>, vector<1x32xf32>, vector<1x32xf32>, vector<1x32xf32>, vector<1x32xf32> -> vector<1x384xf32>
    %c0_29 = arith.constant 0 : index
    %c0_30 = arith.constant 0 : index
    %65 = vector.load %arg4[%c0_29, %c0_30] : memref<384x128xf32, #tpu.memory_space<vmem>>, vector<384x128xf32>
    %cst_31 = arith.constant dense<0.000000e+00> : vector<1x128xf32>
    %66 = tpu.matmul %64, %65, %cst_31 {dimension_numbers = #tpu.dot_dimension_numbers<[1], [0], [0], [1], [0, 0, 1, 1], [], []>} : vector<1x384xf32>, vector<384x128xf32>, vector<1x128xf32> -> vector<1x128xf32>
    %c0_32 = arith.constant 0 : index
    %c0_33 = arith.constant 0 : index
    %67 = vector.load %arg5[%c0_32, %c0_33] : memref<1x128xf32, #tpu.memory_space<vmem>>, vector<1x128xf32>
    %68 = arith.addf %66, %67 : vector<1x128xf32>
    %cst_34 = arith.constant 0.000000e+00 : f32
    %69 = vector.broadcast %cst_34 : f32 to vector<1x128xf32>
    %70 = arith.cmpf ogt, %68, %69 : vector<1x128xf32>
    %cst_35 = arith.constant 0.00999999977 : f32
    %71 = vector.broadcast %cst_35 : f32 to vector<1x128xf32>
    %72 = arith.mulf %71, %68 : vector<1x128xf32>
    %73 = arith.select %70, %68, %72 : vector<1x128xi1>, vector<1x128xf32>
    %c0_36 = arith.constant 0 : index
    %c0_37 = arith.constant 0 : index
    %74 = vector.load %arg6[%c0_36, %c0_37] : memref<128x32xf32, #tpu.memory_space<vmem>>, vector<128x32xf32>
    %cst_38 = arith.constant dense<0.000000e+00> : vector<1x32xf32>
    %75 = tpu.matmul %73, %74, %cst_38 {dimension_numbers = #tpu.dot_dimension_numbers<[1], [0], [0], [1], [0, 0, 1, 1], [], []>} : vector<1x128xf32>, vector<128x32xf32>, vector<1x32xf32> -> vector<1x32xf32>
    %c0_39 = arith.constant 0 : index
    %c0_40 = arith.constant 0 : index
    %76 = vector.load %arg7[%c0_39, %c0_40] : memref<1x32xf32, #tpu.memory_space<vmem>>, vector<1x32xf32>
    %77 = arith.addf %75, %76 : vector<1x32xf32>
    %cst_41 = arith.constant 0.000000e+00 : f32
    %78 = vector.broadcast %cst_41 : f32 to vector<1x32xf32>
    %79 = arith.cmpf ogt, %77, %78 : vector<1x32xf32>
    %cst_42 = arith.constant 0.00999999977 : f32
    %80 = vector.broadcast %cst_42 : f32 to vector<1x32xf32>
    %81 = arith.mulf %80, %77 : vector<1x32xf32>
    %82 = arith.select %79, %77, %81 : vector<1x32xi1>, vector<1x32xf32>
    %c0_43 = arith.constant 0 : index
    %c0_44 = arith.constant 0 : index
    %83 = vector.load %arg8[%c0_43, %c0_44] : memref<32x128xf32, #tpu.memory_space<vmem>>, vector<32x128xf32>
    %cst_45 = arith.constant dense<0.000000e+00> : vector<1x128xf32>
    %84 = tpu.matmul %82, %83, %cst_45 {dimension_numbers = #tpu.dot_dimension_numbers<[1], [0], [0], [1], [0, 0, 1, 1], [], []>} : vector<1x32xf32>, vector<32x128xf32>, vector<1x128xf32> -> vector<1x128xf32>
    %c0_46 = arith.constant 0 : index
    %c0_47 = arith.constant 0 : index
    %85 = vector.load %arg9[%c0_46, %c0_47] : memref<1x128xf32, #tpu.memory_space<vmem>>, vector<1x128xf32>
    %86 = arith.addf %84, %85 : vector<1x128xf32>
    %c0_48 = arith.constant 0 : index
    %c0_49 = arith.constant 0 : index
    %c0_50 = arith.constant 0 : index
    %87 = vector.load %arg10[%c0_48, %c0_49, %c0_50] : memref<1x1x128xf32, #tpu.memory_space<vmem>>, vector<1x1x128xf32>
    %88 = vector.shape_cast %87 : vector<1x1x128xf32> to vector<1x128xf32>
    %89 = vector.shape_cast %86 : vector<1x128xf32> to vector<1x1x128xf32>
    tpu.vector_store %arg10[%c0_48, %c0_49, %c0_50], %89 {strides = array<i32>} : memref<1x1x128xf32, #tpu.memory_space<vmem>>, vector<1x1x128xf32>,
    return
  }
  func.func @transform_0(%arg0: i32) -> (i32, i32, i32) {
    %c0_i32 = arith.constant 0 : i32
    %c0_i32_0 = arith.constant 0 : i32
    %c0_i32_1 = arith.constant 0 : i32
    return %arg0, %c0_i32, %c0_i32_0 : i32, i32, i32
  }
  func.func @transform_1(%arg0: i32) -> (i32, i32) {
    %c0_i32 = arith.constant 0 : i32
    %c0_i32_0 = arith.constant 0 : i32
    %c0_i32_1 = arith.constant 0 : i32
    return %c0_i32, %c0_i32_0 : i32, i32
  }
  func.func @transform_2(%arg0: i32) -> (i32, i32) {
    %c0_i32 = arith.constant 0 : i32
    %c0_i32_0 = arith.constant 0 : i32
    %c0_i32_1 = arith.constant 0 : i32
    return %c0_i32, %c0_i32_0 : i32, i32
  }
  func.func @transform_3(%arg0: i32) -> (i32, i32) {
    %c0_i32 = arith.constant 0 : i32
    %c0_i32_0 = arith.constant 0 : i32
    %c0_i32_1 = arith.constant 0 : i32
    return %c0_i32, %c0_i32_0 : i32, i32
  }
  func.func @transform_4(%arg0: i32) -> (i32, i32) {
    %c0_i32 = arith.constant 0 : i32
    %c0_i32_0 = arith.constant 0 : i32
    %c0_i32_1 = arith.constant 0 : i32
    return %c0_i32, %c0_i32_0 : i32, i32
  }
  func.func @transform_5(%arg0: i32) -> (i32, i32) {
    %c0_i32 = arith.constant 0 : i32
    %c0_i32_0 = arith.constant 0 : i32
    %c0_i32_1 = arith.constant 0 : i32
    return %c0_i32, %c0_i32_0 : i32, i32
  }
  func.func @transform_6(%arg0: i32) -> (i32, i32) {
    %c0_i32 = arith.constant 0 : i32
    %c0_i32_0 = arith.constant 0 : i32
    %c0_i32_1 = arith.constant 0 : i32
    return %c0_i32, %c0_i32_0 : i32, i32
  }
  func.func @transform_7(%arg0: i32) -> (i32, i32) {
    %c0_i32 = arith.constant 0 : i32
    %c0_i32_0 = arith.constant 0 : i32
    %c0_i32_1 = arith.constant 0 : i32
    return %c0_i32, %c0_i32_0 : i32, i32
  }
  func.func @transform_8(%arg0: i32) -> (i32, i32) {
    %c0_i32 = arith.constant 0 : i32
    %c0_i32_0 = arith.constant 0 : i32
    %c0_i32_1 = arith.constant 0 : i32
    return %c0_i32, %c0_i32_0 : i32, i32
  }
  func.func @transform_9(%arg0: i32) -> (i32, i32, i32) {
    %c0_i32 = arith.constant 0 : i32
    %c0_i32_0 = arith.constant 0 : i32
    %c0_i32_1 = arith.constant 0 : i32
    return %arg0, %c0_i32, %c0_i32_0 : i32, i32, i32
  }
}

</mosaic_0001>

<bundles_post_ra>
// kernel: classifier_forward.1
= control target key start
LH: loop header
LB: loop body
LE: loop exit
PB: predicated region body
PF: predicated region fallthrough
CT: control target
= control target key end

     0   :  { %14 = vsyncpa [#allocation3], 0  ;;  %s6664_s0 = inlined_call_operand.vmem [shape: f32[2,128,1152], index: 0, kind: input, shape index: {}]   ;;  %s6665_s1 = inlined_call_operand.vmem [shape: f32[128,12], index: 1, kind: input, shape index: {}]   ;;  %s6666_s2 = inlined_call_operand.vmem [shape: f32[1152,32], index: 2, kind: input, shape index: {}]   ;;  %s6667_s3 = inlined_call_operand.vmem [shape: f32[384,128], index: 3, kind: input, shape index: {}]   ;;  %s6668_s4 = inlined_call_operand.vmem [shape: f32[1,128], index: 4, kind: input, shape index: {}]   ;;  %s6669_s5 = inlined_call_operand.vmem [shape: f32[128,32], index: 5, kind: input, shape index: {}]   ;;  %s6670_s6 = inlined_call_operand.vmem [shape: f32[1,32], index: 6, kind: input, shape index: {}]   ;;  %s6671_s7 = inlined_call_operand.vmem [shape: f32[32,128], index: 7, kind: input, shape index: {}]   ;;  %s6672_s8 = inlined_call_operand.vmem [shape: f32[1,128], index: 8, kind: input, shape index: {}]   ;;  %s6673_s9 = inlined_call_operand.hbm [shape: f32[2,1,128], index: 9, kind: output, shape index: {}]  }
   0x1   :  { %16 = vsyncpa [#allocation3 + $0x1], 0  ;;  %s4101_s30 = smov 0   ;;  %s4103_s10 = smov 0  }
   0x2   :  { %s4105_s11 = smov 0   ;;  %s4107_s12 = smov 0  }
   0x3 LB: > { %s4122_s13 = sadd.s32 4294967295, %s4031_s12   ;;  %s3256_s14 = sadd.s32 4294967294, %s4031_s12   ;;  %s4031_s12 = sphi %s4107_s12, %s6993_s12   ;;  %s4027_s11 = sphi %s4105_s11, %s6992_s11   ;;  %s4023_s10 = sphi %s4103_s10, %s6991_s10   ;;  %s4019_s30 = sphi %s4101_s30, %s6990_s30  }
   0x4   : > { %s4126_s15 = sadd.s32 1, %s4031_s12   ;;  %s223_s16 = sadd.s32 1, %s4027_s11 }
   0x5   : > { %s220_s17 = ssub.s32 %s4031_s12, %s4126_s15  ;;  %p233_p0 = scmp.ne.s32.totalorder %s4027_s11, %s4023_s10 }
   0x6   : > { %p221_p1 = scmp.eq.s32.totalorder %s220_s17, 0  ;;  %p234_p2 = scmp.eq.s32.totalorder %s4122_s13, 1 }
   0x7   : > { %p239_p3 = scmp.ne.s32.totalorder %s4023_s10, %s4019_s30  ;;  %p240_p4 = scmp.eq.s32.totalorder %s3256_s14, 1 }
   0x8   : > { %s4137_s18 = scalar_select %p221_p1, %s4027_s11, %s223_s16  }
   0x9   : > { %p4139_p5 = por %p234_p2, %p233_p0  ;;  %p4143_p6 = por %p240_p4, %p239_p3 }
   0xa   : > { %p3259_p7 = scmp.ge.s32.totalorder %s4031_s12, 1  ;;  %p290_p8 = scmp.lt.s32.totalorder %s4031_s12, 3 }
   0xc   : > { %p291_p9 = pnand %p3259_p7, %p290_p8 }
   0xe   : > { %294 = sbr.rel (%p291_p9) target bundleno = 1294 (0x50e), region = 56 }
  0x13   : > { %v505_v0 = vld [vmem:[%s6666_s2 + $0xf8] sm:$0xff]  ;;  %v4155_v1 = vld [vmem:[%s6665_s1 + $0x10] sm:$0xff]  ;;  %v4160_v2 = vld [vmem:[%s6665_s1] sm:$0xff]  ;;  %v4033_v3 = vmov 5   ;;  %v6676_v4 = vmov 0   ;;  %p325_p10 = scmp.lt.s32.totalorder %s4122_s13, 1 }
  0x14   : > { %3886 = vset.pattern.permute.xlu0 %v4033_v3  ;;  %3885 = vset.pattern.permute.xlu1 %v6676_v4  ;;  %v489_v5 = vld [vmem:[%s6666_s2 + $0x78] sm:$0xff]  ;;  %v504_v6 = vld [vmem:[%s6666_s2 + $0xf0] sm:$0xff]  ;;  %v503_v8 = vld [vmem:[%s6666_s2 + $0xe8] sm:$0xff]  ;;  %v4035_v62 = vmov 1   ;;  %vm1455_vm0 = vcmask 261120   ;;  %s4046_s28 = smov 96  }
  0x15   : > { %3265 = vmatprep.subr.mxu0 %v505_v0  ;;  %1371 = vperm.xlu1 %3885, %v4155_v1   ;;  %v488_v7 = vld [vmem:[%s6666_s2 + $0x70] sm:$0xff]  ;;  %v4181_v9 = vld [vmem:[%s6665_s1 + $0x18] sm:$0xff]  ;;  %v487_v10 = vld [vmem:[%s6666_s2 + $0x68] sm:$0xff]  ;;  %s4223_s21 = scalar_select %p325_p10, %s4122_s13, 1  ;;  %vm4049_vm1 = vmmov 0   ;;  %vm2817_vm2 = vcmask 523264  }
  0x16   : > { %1962 = vperm.xlu0 %3886, %v4160_v2   ;;  %3266 = vmatpush3.msra.mxu0 %v489_v5  ;;  %v502_v11 = vld [vmem:[%s6666_s2 + $0xe0] sm:$0xff]  ;;  %v501_v13 = vld [vmem:[%s6666_s2 + $0xd8] sm:$0xff]  ;;  %v4200_v14 = vld [vmem:[%s6665_s1 + $0x28] sm:$0xff]  ;;  %s4048_s25 = smov 64   ;;  %vm2819_vm3 = vcmask 785408   ;;  %s323_s16 = sand.u32 1, %s4023_s10  }
  0x17   : > { %3267 = vmatprep.subr.mxu0 %v504_v6  ;;  %v486_v12 = vld [vmem:[%s6666_s2 + $0x60] sm:$0xff]  ;;  %v485_v15 = vld [vmem:[%s6666_s2 + $0x58] sm:$0xff]  ;;  %v500_v16 = vld [vmem:[%s6666_s2 + $0xd0] sm:$0xff]  ;;  %s3828_s27 = smul.u32 1152, %s4223_s21  ;;  %s4045_s21 = smov 32  }
  0x18   : > { %3268 = vmatpush3.msra.mxu0 %v488_v7  ;;  %v484_v17 = vld [vmem:[%s6666_s2 + $0x50] sm:$0xff]  ;;  %v499_v18 = vld [vmem:[%s6666_s2 + $0xc8] sm:$0xff]  ;;  %v4220_v19 = vld [vmem:[%s6665_s1 + $0x38] sm:$0xff]  ;;  %s3262_s17 = sshll.u32 %s4122_s13, 4  ;;  %s4050_s14 = smov [#allocation2]  }
  0x19   : > { %3269 = vmatprep.subr.mxu0 %v503_v8  ;;  %1376 = vperm.xlu1 %3885, %v4181_v9   ;;  %v483_v20 = vld [vmem:[%s6666_s2 + $0x48] sm:$0xff]  ;;  %v537_v21 = vld [vmem:[%s6666_s2 + $0x1f8] sm:$0xff]  ;;  %v498_v22 = vld [vmem:[%s6666_s2 + $0xc0] sm:$0xff]  ;;  %s4282_s22 = scalar_lea.vmem %s6664_s0, %s3828_s27  ;;  %s6629_s26 = scalar_lea.hbm %s6673_s9, %s3262_s17 }
  0x1a   : > { %1974 = vperm.xlu0 %3886, %v4181_v9   ;;  %3270 = vmatpush3.msra.mxu0 %v487_v10  ;;  %v521_v23 = vld [vmem:[%s6666_s2 + $0x178] sm:$0xff]  ;;  %v482_v24 = vld [vmem:[%s6666_s2 + $0x40] sm:$0xff]  ;;  %v536_v25 = vld [vmem:[%s6666_s2 + $0x1f0] sm:$0xff]  ;;  %s3189_s27 = scalar_lea.sflag [#allocation3], %s323_s16  ;;  %s3975_s13 = sshll.u32 %s4050_s14, 4  ;;  %s3976_s13 = int_to_ptr.vmem [resolvable:$false] %s3975_s13 }
  0x1b   : > { %3271 = vmatprep.subr.mxu0 %v502_v11  ;;  %3345 = vmatprep.subr.mxu1 %v537_v21  ;;  %v497_v26 = vld [vmem:[%s6666_s2 + $0xb8] sm:$0xff]  ;;  %v4251_v27 = vld [vmem:[%s6665_s1 + $0x48] sm:$0xff]  ;;  %v4257_v28 = vld [vmem:[%s6665_s1 + $0x40] sm:$0xff] }
  0x1c   : > { %3272 = vmatpush3.msra.mxu0 %v486_v12  ;;  %v481_v29 = vld [vmem:[%s6666_s2 + $0x38] sm:$0xff]  ;;  %3346 = vmatpush3.msra.mxu1 %v521_v23  ;;  %v496_v30 = vld [vmem:[%s6666_s2 + $0xb0] sm:$0xff]  ;;  %v535_v33 = vld [vmem:[%s6666_s2 + $0x1e8] sm:$0xff] }
  0x1d   : > { %3273 = vmatprep.subr.mxu0 %v501_v13  ;;  %1386 = vperm.xlu1 %3885, %v4200_v14   ;;  %v520_v31 = vld [vmem:[%s6666_s2 + $0x170] sm:$0xff]  ;;  %v495_v34 = vld [vmem:[%s6666_s2 + $0xa8] sm:$0xff]  ;;  %v4287_v35 = vld [vmem:[%s6665_s1 + $0x58] sm:$0xff] }
  0x1e   : > { %1982 = vperm.xlu0 %3886, %v4200_v14   ;;  %3274 = vmatpush3.msra.mxu0 %v485_v15  ;;  %v480_v32 = vld [vmem:[%s6666_s2 + $0x30] sm:$0xff]  ;;  %v479_v36 = vld [vmem:[%s6666_s2 + $0x28] sm:$0xff]  ;;  %v494_v38 = vld [vmem:[%s6666_s2 + $0xa0] sm:$0xff] }
  0x1f   : > { %3275 = vmatprep.subr.mxu0 %v500_v16  ;;  %3347 = vmatprep.subr.mxu1 %v536_v25  ;;  %v4295_v37 = vld [vmem:[%s6665_s1 + $0x8] sm:$0xff]  ;;  %v478_v39 = vld [vmem:[%s6666_s2 + $0x20] sm:$0xff]  ;;  %v493_v41 = vld [vmem:[%s6666_s2 + $0x98] sm:$0xff] }
  0x20   : > { %3276 = vmatpush3.msra.mxu0 %v484_v17  ;;  %3348 = vmatpush3.msra.mxu1 %v520_v31  ;;  %v331_v40 = vld [vmem:[%s4282_s22 + $0x8] sm:$0xff]  ;;  %v4316_v43 = vld [vmem:[%s6665_s1 + $0x60] sm:$0xff]  ;;  %v477_v44 = vld [vmem:[%s6666_s2 + $0x18] sm:$0xff] }
  0x21   : > { %3277 = vmatprep.subr.mxu0 %v499_v18  ;;  %1396 = vperm.xlu1 %3885, %v4220_v19   ;;  %v519_v42 = vld [vmem:[%s6666_s2 + $0x168] sm:$0xff]  ;;  %v492_v45 = vld [vmem:[%s6666_s2 + $0x90] sm:$0xff]  ;;  %v534_v47 = vld [vmem:[%s6666_s2 + $0x1e0] sm:$0xff] }
  0x22   : > { %1990 = vperm.xlu0 %3886, %v4220_v19   ;;  %3278 = vmatpush3.msra.mxu0 %v483_v20  ;;  %v476_v46 = vld [vmem:[%s6666_s2 + $0x10] sm:$0xff]  ;;  %v491_v48 = vld [vmem:[%s6666_s2 + $0x88] sm:$0xff]  ;;  %v518_v49 = vld [vmem:[%s6666_s2 + $0x160] sm:$0xff] }
  0x23   : > { %3279 = vmatprep.subr.mxu0 %v498_v22  ;;  %3349 = vmatprep.subr.mxu1 %v535_v33  ;;  %v4341_v50 = vld [vmem:[%s6665_s1 + $0x78] sm:$0xff]  ;;  %v475_v51 = vld [vmem:[%s6666_s2 + $0x8] sm:$0xff]  ;;  %v4349_v52 = vld [vmem:[%s6665_s1 + $0x20] sm:$0xff] }
  0x24   : > { %3280 = vmatpush3.msra.mxu0 %v482_v24  ;;  %682 = vmatprep.mubr.f32.mxu0 %v331_v40  ;;  %v490_v53 = vld [vmem:[%s6666_s2 + $0x80] sm:$0xff]  ;;  %v533_v55 = vld [vmem:[%s6666_s2 + $0x1d8] sm:$0xff]  ;;  %v340_v58 = vld [vmem:[%s4282_s22 + $0x50] sm:$0xff] }
  0x25   : > { %3281 = vmatprep.subr.mxu0 %v497_v26  ;;  %1406 = vperm.xlu1 %3885, %v4251_v27   ;;  %v474_v54 = vld [vmem:[%s6666_s2] sm:$0xff]  ;;  %v517_v57 = vld [vmem:[%s6666_s2 + $0x158] sm:$0xff]  ;;  %v4370_v59 = vld [vmem:[%s6665_s1 + $0x30] sm:$0xff] }
  0x26   : > { %1994 = vperm.xlu0 %3886, %v4257_v28   ;;  %3282 = vmatpush3.msra.mxu0 %v481_v29  ;;  %v330_v56 = vld [vmem:[%s4282_s22] sm:$0xff]  ;;  %v532_v60 = vld [vmem:[%s6666_s2 + $0x1d0] sm:$0xff]  ;;  %v333_v61 = vld [vmem:[%s4282_s22 + $0x18] sm:$0xff] }
  0x27   : > { %3283 = vmatprep.subr.mxu0 %v496_v30  ;;  %3350 = vmatpush3.msra.mxu1 %v519_v42  ;;  %v339_v63 = vld [vmem:[%s4282_s22 + $0x48] sm:$0xff]  ;;  %v516_v0 = vld [vmem:[%s6666_s2 + $0x150] sm:$0xff]  ;;  %v349_v6 = vld [vmem:[%s4282_s22 + $0x98] sm:$0xff] }
  0x28   : > { %3284 = vmatpush3.msra.mxu0 %v480_v32  ;;  %3351 = vmatprep.subr.mxu1 %v534_v47  ;;  %v531_v5 = vld [vmem:[%s6666_s2 + $0x1c8] sm:$0xff]  ;;  %v348_v8 = vld [vmem:[%s4282_s22 + $0x90] sm:$0xff]  ;;  %v530_v10 = vld [vmem:[%s6666_s2 + $0x1c0] sm:$0xff] }
  0x29   : > { %3285 = vmatprep.subr.mxu0 %v495_v34  ;;  %3887 = vset.pattern.permute.xlu1 %v4033_v3  ;;  %v515_v7 = vld [vmem:[%s6666_s2 + $0x148] sm:$0xff]  ;;  %v514_v11 = vld [vmem:[%s6666_s2 + $0x140] sm:$0xff]  ;;  %v529_v13 = vld [vmem:[%s6666_s2 + $0x1b8] sm:$0xff] }
  0x2a   : > { %2006 = vperm.xlu0 %3886, %v4287_v35   ;;  %3286 = vmatpush3.msra.mxu0 %v479_v36  ;;  %v358_v12 = vld [vmem:[%s4282_s22 + $0xe0] sm:$0xff]  ;;  %v513_v15 = vld [vmem:[%s6666_s2 + $0x138] sm:$0xff]  ;;  %v528_v17 = vld [vmem:[%s6666_s2 + $0x1b0] sm:$0xff] }
  0x2b   : > { %1966 = vperm.xlu1 %3887, %v4295_v37   ;;  %3287 = vmatprep.subr.mxu0 %v494_v38  ;;  %v357_v16 = vld [vmem:[%s4282_s22 + $0xd8] sm:$0xff]  ;;  %v512_v18 = vld [vmem:[%s6666_s2 + $0x130] sm:$0xff]  ;;  %v367_v20 = vld [vmem:[%s4282_s22 + $0x128] sm:$0xff] }
  0x2c   : > { %3288 = vmatpush3.msra.mxu0 %v478_v39  ;;  %3352 = vmatpush3.msra.mxu1 %v518_v49  ;;  %v527_v21 = vld [vmem:[%s6666_s2 + $0x1a8] sm:$0xff]  ;;  %v366_v23 = vld [vmem:[%s4282_s22 + $0x120] sm:$0xff]  ;;  %v376_v26 = vld [vmem:[%s4282_s22 + $0x170] sm:$0xff]  ;;  %v6682_v49 = vmov 6  }
  0x2d   : > { %3289 = vmatprep.subr.mxu0 %v493_v41  ;;  %3353 = vmatprep.subr.mxu1 %v533_v55  ;;  %v511_v22 = vld [vmem:[%s6666_s2 + $0x128] sm:$0xff]  ;;  %v526_v24 = vld [vmem:[%s6666_s2 + $0x1a0] sm:$0xff]  ;;  %v525_v29 = vld [vmem:[%s6666_s2 + $0x198] sm:$0xff] }
  0x2e   : > { %2010 = vperm.xlu0 %3886, %v4316_v43   ;;  %3290 = vmatpush3.msra.mxu0 %v477_v44  ;;  %v510_v25 = vld [vmem:[%s6666_s2 + $0x120] sm:$0xff]  ;;  %v509_v30 = vld [vmem:[%s6666_s2 + $0x118] sm:$0xff]  ;;  %v375_v31 = vld [vmem:[%s4282_s22 + $0x168] sm:$0xff] }
  0x2f   : > { %1970 = vperm.xlu1 %3887, %v4155_v1   ;;  %3291 = vmatprep.subr.mxu0 %v492_v45  ;;  %v524_v32 = vld [vmem:[%s6666_s2 + $0x190] sm:$0xff]  ;;  %v385_v34 = vld [vmem:[%s4282_s22 + $0x1b8] sm:$0xff]  ;;  %v523_v36 = vld [vmem:[%s6666_s2 + $0x188] sm:$0xff] }
  0x30   : > { %3292 = vmatpush3.msra.mxu0 %v476_v46  ;;  %3354 = vmatpush3.msra.mxu1 %v517_v57  ;;  %v508_v33 = vld [vmem:[%s6666_s2 + $0x110] sm:$0xff]  ;;  %v507_v38 = vld [vmem:[%s6666_s2 + $0x108] sm:$0xff]  ;;  %v522_v40 = vld [vmem:[%s6666_s2 + $0x180] sm:$0xff] }
  0x31   : > { %3293 = vmatprep.subr.mxu0 %v491_v48  ;;  %3355 = vmatprep.subr.mxu1 %v532_v60  ;;  %v384_v39 = vld [vmem:[%s4282_s22 + $0x1b0] sm:$0xff]  ;;  %v506_v41 = vld [vmem:[%s6666_s2 + $0x100] sm:$0xff]  ;;  %v393_v46 = vld [vmem:[%s4282_s22 + $0x1f8] sm:$0xff] }
  0x32   : > { %2022 = vperm.xlu0 %3886, %v4341_v50   ;;  %3294 = vmatpush3.msra.mxu0 %v475_v51  ;;  %v394_v42 = vld [vmem:[%s4282_s22 + $0x200] sm:$0xff]  ;;  %v332_v44 = vld [vmem:[%s4282_s22 + $0x10] sm:$0xff]  ;;  %v403_v47 = vld [vmem:[%s4282_s22 + $0x248] sm:$0xff] }
  0x33   : > { %1978 = vperm.xlu1 %3887, %v4349_v52   ;;  %3295 = vmatprep.subr.mxu0 %v490_v53  ;;  %v342_v45 = vld [vmem:[%s4282_s22 + $0x60] sm:$0xff]  ;;  %v569_v48 = vld [vmem:[%s6666_s2 + $0x2f8] sm:$0xff]  ;;  %v351_v53 = vld [vmem:[%s4282_s22 + $0xa8] sm:$0xff] }
  0x34   : > { %3296 = vmatpush3.msra.mxu0 %v474_v54  ;;  %827 = vmatprep.mubr.f32.mxu1 %v333_v61  ;;  %v341_v51 = vld [vmem:[%s4282_s22 + $0x58] sm:$0xff]  ;;  %v402_v54 = vld [vmem:[%s4282_s22 + $0x240] sm:$0xff]  ;;  %v552_v60 = vld [vmem:[%s6666_s2 + $0x270] sm:$0xff] }
  0x35   : > { %683 = vmatmul.mubr.f32.vlgmr.msra.gmra.mxu0 %v330_v56  ;;  %3356 = vmatpush3.msra.mxu1 %v516_v0  ;;  %v553_v55 = vld [vmem:[%s6666_s2 + $0x278] sm:$0xff]  ;;  %v412_v56 = vld [vmem:[%s4282_s22 + $0x290] sm:$0xff]  ;;  %v350_v57 = vld [vmem:[%s4282_s22 + $0xa0] sm:$0xff] }
  0x36   : > { %3898 = vset.pattern.permute.xlu0 %v4035_v62  ;;  %687 = vmatprep.mubr.f32.mxu0 %v340_v58  ;;  %v568_v58 = vld [vmem:[%s6666_s2 + $0x2f0] sm:$0xff]  ;;  %v411_v61 = vld [vmem:[%s4282_s22 + $0x288] sm:$0xff] }
  0x37   : > { %1986 = vperm.xlu1 %3887, %v4370_v59   ;;  %1498 = vperm.xlu0 %3898, %v4295_v37   ;;  %v360_v0 = vld [vmem:[%s4282_s22 + $0xf0] sm:$0xff] }
  0x38   : > { %3357 = vmatprep.subr.mxu1 %v531_v5  ;;  %3425 = vmatprep.subr.mxu0 %v569_v48  ;;  %v551_v5 = vld [vmem:[%s6666_s2 + $0x268] sm:$0xff]  ;;  %v542_v48 = vld [vmem:[%s6666_s2 + $0x220] sm:$0xff] }
  0x39   : > { %688 = vmatmul.mubr.f32.gmra.mxu0 %v339_v63  ;;  %3358 = vmatpush3.msra.mxu1 %v515_v7  ;;  %v567_v63 = vld [vmem:[%s6666_s2 + $0x2e8] sm:$0xff]  ;;  %v566_v7 = vld [vmem:[%s6666_s2 + $0x2e0] sm:$0xff] }
  0x3a   : > { %692 = vmatprep.mubr.f32.mxu0 %v349_v6  ;;  %3359 = vmatprep.subr.mxu1 %v530_v10  ;;  %v359_v6 = vld [vmem:[%s4282_s22 + $0xe8] sm:$0xff]  ;;  %v550_v10 = vld [vmem:[%s6666_s2 + $0x260] sm:$0xff] }
  0x3b   : > { %3888 = vset.pattern.permute.xlu1 %v4035_v62  ;;  %1510 = vperm.xlu0 %3898, %v4349_v52  }
  0x3c   : > { %1494 = vperm.xlu1 %3888, %v4160_v2   ;;  %3360 = vmatpush3.msra.mxu1 %v514_v11  ;;  %v420_v11 = vld [vmem:[%s4282_s22 + $0x2d0] sm:$0xff] }
  0x3d   : > { %693 = vmatmul.mubr.f32.gmra.mxu0 %v348_v8  ;;  %3361 = vmatprep.subr.mxu1 %v529_v13  ;;  %v421_v8 = vld [vmem:[%s4282_s22 + $0x2d8] sm:$0xff] }
  0x3e   : > { %697 = vmatprep.mubr.f32.mxu0 %v358_v12  ;;  %3362 = vmatpush3.msra.mxu1 %v513_v15  ;;  %v565_v12 = vld [vmem:[%s6666_s2 + $0x2d8] sm:$0xff] }
  0x3f   : > { %1518 = vperm.xlu0 %3898, %v4370_v59   ;;  %3363 = vmatprep.subr.mxu1 %v528_v17  ;;  %v369_v13 = vld [vmem:[%s4282_s22 + $0x138] sm:$0xff]  ;;  %v564_v17 = vld [vmem:[%s6666_s2 + $0x2d0] sm:$0xff] }
  0x40   : > { %1502 = vperm.xlu1 %3888, %v4155_v1   ;;  %3364 = vmatpush3.msra.mxu1 %v512_v18  ;;  %v549_v15 = vld [vmem:[%s6666_s2 + $0x258] sm:$0xff]  ;;  %v430_v18 = vld [vmem:[%s4282_s22 + $0x320] sm:$0xff] }
  0x41   : > { %698 = vmatmul.mubr.f32.gmra.mxu0 %v357_v16  ;;  %3365 = vmatprep.subr.mxu1 %v527_v21  ;;  %v368_v16 = vld [vmem:[%s4282_s22 + $0x130] sm:$0xff]  ;;  %v429_v21 = vld [vmem:[%s4282_s22 + $0x318] sm:$0xff] }
  0x42   : > { %702 = vmatprep.mubr.f32.mxu0 %v367_v20  ;;  %3366 = vmatpush3.msra.mxu1 %v511_v22  ;;  %v548_v20 = vld [vmem:[%s6666_s2 + $0x250] sm:$0xff]  ;;  %v563_v22 = vld [vmem:[%s6666_s2 + $0x2c8] sm:$0xff] }
  0x43   : > { %1526 = vperm.xlu0 %3898, %v4257_v28   ;;  %3367 = vmatprep.subr.mxu1 %v526_v24  ;;  %v547_v24 = vld [vmem:[%s6666_s2 + $0x248] sm:$0xff] }
  0x44   : > { %1506 = vperm.xlu1 %3888, %v4181_v9   ;;  %3368 = vmatpush3.msra.mxu1 %v510_v25  ;;  %v6681_v25 = vmov 2  }
  0x45   : > { %703 = vmatmul.mubr.f32.gmra.mxu0 %v366_v23  ;;  %3369 = vmatprep.subr.mxu1 %v525_v29  ;;  %v378_v23 = vld [vmem:[%s4282_s22 + $0x180] sm:$0xff] }
  0x46   : > { %707 = vmatprep.mubr.f32.mxu0 %v376_v26  ;;  %3370 = vmatpush3.msra.mxu1 %v509_v30  ;;  %v377_v26 = vld [vmem:[%s4282_s22 + $0x178] sm:$0xff]  ;;  %v562_v29 = vld [vmem:[%s6666_s2 + $0x2c0] sm:$0xff]  ;;  %v439_v30 = vld [vmem:[%s4282_s22 + $0x368] sm:$0xff] }
  0x47   : > { %1538 = vperm.xlu0 %3898, %v4287_v35   ;;  %3371 = vmatprep.subr.mxu1 %v524_v32  ;;  %v438_v32 = vld [vmem:[%s4282_s22 + $0x360] sm:$0xff] }
  0x48   : > { %1514 = vperm.xlu1 %3888, %v4200_v14   ;;  %3372 = vmatpush3.msra.mxu1 %v508_v33  ;;  %v561_v33 = vld [vmem:[%s6666_s2 + $0x2b8] sm:$0xff] }
  0x49   : > { %708 = vmatmul.mubr.f32.gmra.mxu0 %v375_v31  ;;  %3373 = vmatprep.subr.mxu1 %v523_v36  ;;  %v546_v31 = vld [vmem:[%s6666_s2 + $0x240] sm:$0xff]  ;;  %v545_v36 = vld [vmem:[%s6666_s2 + $0x238] sm:$0xff] }
  0x4a   : > { %712 = vmatprep.mubr.f32.mxu0 %v385_v34  ;;  %3374 = vmatpush3.msra.mxu1 %v507_v38  ;;  %v387_v34 = vld [vmem:[%s4282_s22 + $0x1c8] sm:$0xff]  ;;  %v386_v38 = vld [vmem:[%s4282_s22 + $0x1c0] sm:$0xff] }
  0x4b   : > { %1542 = vperm.xlu0 %3898, %v4316_v43   ;;  %3375 = vmatprep.subr.mxu1 %v522_v40  ;;  %v544_v40 = vld [vmem:[%s6666_s2 + $0x230] sm:$0xff] }
  0x4c   : > { %1522 = vperm.xlu1 %3888, %v4220_v19   ;;  %3376 = vmatpush3.msra.mxu1 %v506_v41  ;;  %v447_v41 = vld [vmem:[%s4282_s22 + $0x3a8] sm:$0xff] }
  0x4d   : > { %713 = vmatmul.mubr.f32.gmra.mxu0 %v384_v39  ;;  %828 = vmatmul.mubr.f32.vlgmr.msra.gmra.mxu1 %v332_v44  ;;  %v560_v39 = vld [vmem:[%s6666_s2 + $0x2b0] sm:$0xff] }
  0x4e   : > { %717 = vmatprep.mubr.f32.mxu0 %v394_v42  ;;  %832 = vmatprep.mubr.f32.mxu1 %v342_v45  ;;  %v559_v42 = vld [vmem:[%s6666_s2 + $0x2a8] sm:$0xff]  ;;  %v396_v44 = vld [vmem:[%s4282_s22 + $0x210] sm:$0xff] }
  0x4f   : > { %1554 = vperm.xlu0 %3898, %v4341_v50   ;;  %3426 = vmatpush3.msra.mxu0 %v553_v55  ;;  %v543_v45 = vld [vmem:[%s6666_s2 + $0x228] sm:$0xff]  ;;  %v541_v55 = vld [vmem:[%s6666_s2 + $0x218] sm:$0xff] }
  0x50   : > { %3889 = vset.pattern.permute.xlu1 %v6682_v49  ;;  %3427 = vmatprep.subr.mxu0 %v568_v58  ;;  %v601_v58 = vld [vmem:[%s6666_s2 + $0x3f8] sm:$0xff] }
  0x51   : > { %2083 = vperm.xlu1 %3889, %v4295_v37   ;;  %718 = vmatmul.mubr.f32.gmra.mxu0 %v393_v46  ;;  %v395_v46 = vld [vmem:[%s4282_s22 + $0x208] sm:$0xff] }
  0x52   : > { %722 = vmatprep.mubr.f32.mxu0 %v403_v47  ;;  %833 = vmatmul.mubr.f32.gmra.mxu1 %v341_v51  ;;  %v558_v47 = vld [vmem:[%s6666_s2 + $0x2a0] sm:$0xff]  ;;  %v456_v51 = vld [vmem:[%s4282_s22 + $0x3f0] sm:$0xff] }
  0x53   : > { %3901 = vset.pattern.permute.xlu0 %v6682_v49  ;;  %837 = vmatprep.mubr.f32.mxu1 %v351_v53  ;;  %v557_v53 = vld [vmem:[%s6666_s2 + $0x298] sm:$0xff] }
  0x54   : > { %2079 = vperm.xlu0 %3901, %v4160_v2   ;;  %3428 = vmatpush3.msra.mxu0 %v552_v60  ;;  %v466_v60 = vld [vmem:[%s4282_s22 + $0x440] sm:$0xff] }
  0x55   : > { %2087 = vperm.xlu1 %3889, %v4155_v1   ;;  %723 = vmatmul.mubr.f32.gmra.mxu0 %v402_v54  ;;  %v405_v54 = vld [vmem:[%s4282_s22 + $0x258] sm:$0xff] }
  0x56   : > { %727 = vmatprep.mubr.f32.mxu0 %v412_v56  ;;  %838 = vmatmul.mubr.f32.gmra.mxu1 %v350_v57  ;;  %v404_v56 = vld [vmem:[%s4282_s22 + $0x250] sm:$0xff] }
  0x57   : > { %3429 = vmatprep.subr.mxu0 %v567_v63  ;;  %842 = vmatprep.mubr.f32.mxu1 %v360_v0  ;;  %v556_v57 = vld [vmem:[%s6666_s2 + $0x290] sm:$0xff]  ;;  %v585_v63 = vld [vmem:[%s6666_s2 + $0x378] sm:$0xff] }
  0x58   : > { %2091 = vperm.xlu0 %3901, %v4181_v9   ;;  %3430 = vmatpush3.msra.mxu0 %v551_v5  ;;  %v465_v0 = vld [vmem:[%s4282_s22 + $0x438] sm:$0xff]  ;;  %v555_v5 = vld [vmem:[%s6666_s2 + $0x288] sm:$0xff] }
  0x59   : > { %2095 = vperm.xlu1 %3889, %v4349_v52   ;;  %728 = vmatmul.mubr.f32.gmra.mxu0 %v411_v61  ;;  %v540_v61 = vld [vmem:[%s6666_s2 + $0x210] sm:$0xff] }
  0x5a   : > { %843 = vmatmul.mubr.f32.gmra.mxu1 %v359_v6  ;;  %3431 = vmatprep.subr.mxu0 %v566_v7  ;;  %v600_v6 = vld [vmem:[%s6666_s2 + $0x3f0] sm:$0xff]  ;;  %v414_v7 = vld [vmem:[%s4282_s22 + $0x2a0] sm:$0xff] }
  0x5b   : > { %732 = vmatprep.mubr.f32.mxu0 %v421_v8  ;;  %3432 = vmatpush3.msra.mxu0 %v550_v10  ;;  %v539_v8 = vld [vmem:[%s6666_s2 + $0x208] sm:$0xff]  ;;  %v584_v10 = vld [vmem:[%s6666_s2 + $0x370] sm:$0xff] }
  0x5c   : > { %2099 = vperm.xlu0 %3901, %v4200_v14   ;;  %3433 = vmatprep.subr.mxu0 %v565_v12  ;;  %v554_v12 = vld [vmem:[%s6666_s2 + $0x280] sm:$0xff] }
  0x5d   : > { %2103 = vperm.xlu1 %3889, %v4370_v59   ;;  %733 = vmatmul.mubr.f32.gmra.mxu0 %v420_v11  ;;  %v413_v11 = vld [vmem:[%s4282_s22 + $0x298] sm:$0xff] }
  0x5e   : > { %847 = vmatprep.mubr.f32.mxu1 %v369_v13  ;;  %3434 = vmatpush3.msra.mxu0 %v549_v15  ;;  %v599_v13 = vld [vmem:[%s6666_s2 + $0x3e8] sm:$0xff]  ;;  %v538_v15 = vld [vmem:[%s6666_s2 + $0x200] sm:$0xff] }
  0x5f   : > { %848 = vmatmul.mubr.f32.gmra.mxu1 %v368_v16  ;;  %3435 = vmatprep.subr.mxu0 %v564_v17  ;;  %v335_v16 = vld [vmem:[%s4282_s22 + $0x28] sm:$0xff] }
  0x60   : > { %2107 = vperm.xlu0 %3901, %v4220_v19   ;;  %737 = vmatprep.mubr.f32.mxu0 %v430_v18  ;;  %v583_v17 = vld [vmem:[%s6666_s2 + $0x368] sm:$0xff]  ;;  %v334_v18 = vld [vmem:[%s4282_s22 + $0x20] sm:$0xff] }
  0x61   : > { %3436 = vmatpush3.msra.mxu0 %v548_v20  ;;  %3890 = vset.pattern.permute.xlu1 %v6681_v25  ;;  %v598_v20 = vld [vmem:[%s6666_s2 + $0x3e0] sm:$0xff] }
  0x62   : > { %738 = vmatmul.mubr.f32.gmra.mxu0 %v429_v21  ;;  %3437 = vmatprep.subr.mxu0 %v563_v22  ;;  %v423_v21 = vld [vmem:[%s4282_s22 + $0x2e8] sm:$0xff]  ;;  %v582_v22 = vld [vmem:[%s6666_s2 + $0x360] sm:$0xff] }
  0x63   : > { %1611 = vperm.xlu1 %3890, %v4160_v2   ;;  %852 = vmatprep.mubr.f32.mxu1 %v378_v23  ;;  %v422_v23 = vld [vmem:[%s4282_s22 + $0x2e0] sm:$0xff] }
  0x64   : > { %3438 = vmatpush3.msra.mxu0 %v547_v24  ;;  %853 = vmatmul.mubr.f32.gmra.mxu1 %v377_v26  ;;  %v597_v24 = vld [vmem:[%s6666_s2 + $0x3d8] sm:$0xff]  ;;  %v344_v26 = vld [vmem:[%s4282_s22 + $0x70] sm:$0xff] }
  0x65   : > { %3439 = vmatprep.subr.mxu0 %v562_v29  ;;  %2111 = vperm.xlu0 %3901, %v4257_v28   ;;  %v448_v28 = vld [vmem:[%s4282_s22 + $0x3b0] sm:$0xff]  ;;  %v581_v29 = vld [vmem:[%s6666_s2 + $0x358] sm:$0xff] }
  0x66   : > { %742 = vmatprep.mubr.f32.mxu0 %v439_v30  ;;  %3440 = vmatpush3.msra.mxu0 %v546_v31  ;;  %v343_v30 = vld [vmem:[%s4282_s22 + $0x68] sm:$0xff]  ;;  %v596_v31 = vld [vmem:[%s6666_s2 + $0x3d0] sm:$0xff] }
  0x67   : > { %1619 = vperm.xlu1 %3890, %v4155_v1   ;;  %743 = vmatmul.mubr.f32.gmra.mxu0 %v438_v32  ;;  %v432_v32 = vld [vmem:[%s4282_s22 + $0x330] sm:$0xff] }
  0x68   : > { %3441 = vmatprep.subr.mxu0 %v561_v33  ;;  %857 = vmatprep.mubr.f32.mxu1 %v387_v34  ;;  %v580_v33 = vld [vmem:[%s6666_s2 + $0x350] sm:$0xff] }
  0x69   : > { %3442 = vmatpush3.msra.mxu0 %v545_v36  ;;  %858 = vmatmul.mubr.f32.gmra.mxu1 %v386_v38  ;;  %v4668_v34 = vld [vmem:[%s6665_s1 + $0x50] sm:$0xff]  ;;  %v431_v36 = vld [vmem:[%s4282_s22 + $0x328] sm:$0xff] }
  0x6a   : > { %3443 = vmatprep.subr.mxu0 %v560_v39  ;;  %2123 = vperm.xlu0 %3901, %v4287_v35   ;;  %v457_v35 = vld [vmem:[%s4282_s22 + $0x3f8] sm:$0xff]  ;;  %v595_v38 = vld [vmem:[%s6666_s2 + $0x3c8] sm:$0xff] }
  0x6b   : > { %747 = vmatprep.mubr.f32.mxu0 %v448_v28  ;;  %3444 = vmatpush3.msra.mxu0 %v544_v40  ;;  %v353_v39 = vld [vmem:[%s4282_s22 + $0xb8] sm:$0xff]  ;;  %v579_v28 = vld [vmem:[%s6666_s2 + $0x348] sm:$0xff]  ;;  %v352_v40 = vld [vmem:[%s4282_s22 + $0xb0] sm:$0xff] }
  0x6c   : > { %1623 = vperm.xlu1 %3890, %v4181_v9   ;;  %748 = vmatmul.mubr.f32.gmra.mxu0 %v447_v41  ;;  %v594_v41 = vld [vmem:[%s6666_s2 + $0x3c0] sm:$0xff] }
  0x6d   : > { %3445 = vmatprep.subr.mxu0 %v559_v42  ;;  %862 = vmatprep.mubr.f32.mxu1 %v396_v44  ;;  %v441_v42 = vld [vmem:[%s4282_s22 + $0x378] sm:$0xff]  ;;  %v578_v44 = vld [vmem:[%s6666_s2 + $0x340] sm:$0xff] }
  0x6e   : > { %3446 = vmatpush3.msra.mxu0 %v543_v45  ;;  %863 = vmatmul.mubr.f32.gmra.mxu1 %v395_v46  ;;  %v440_v45 = vld [vmem:[%s4282_s22 + $0x370] sm:$0xff]  ;;  %v593_v46 = vld [vmem:[%s6666_s2 + $0x3b8] sm:$0xff] }
  0x6f   : > { %3447 = vmatprep.subr.mxu0 %v558_v47  ;;  %2127 = vperm.xlu0 %3901, %v4316_v43   ;;  %v362_v47 = vld [vmem:[%s4282_s22 + $0x100] sm:$0xff] }
  0x70   : > { %752 = vmatprep.mubr.f32.mxu0 %v457_v35  ;;  %3448 = vmatpush3.msra.mxu0 %v542_v48  ;;  %v6680_v35 = vmov 7   ;;  %v577_v48 = vld [vmem:[%s6666_s2 + $0x338] sm:$0xff] }
  0x71   : > { %1631 = vperm.xlu1 %3890, %v4200_v14   ;;  %753 = vmatmul.mubr.f32.gmra.mxu0 %v456_v51  ;;  %v361_v51 = vld [vmem:[%s4282_s22 + $0xf8] sm:$0xff] }
  0x72   : > { %3449 = vmatprep.subr.mxu0 %v557_v53  ;;  %867 = vmatprep.mubr.f32.mxu1 %v405_v54  ;;  %v592_v53 = vld [vmem:[%s6666_s2 + $0x3b0] sm:$0xff]  ;;  %v450_v54 = vld [vmem:[%s4282_s22 + $0x3c0] sm:$0xff] }
  0x73   : > { %3450 = vmatpush3.msra.mxu0 %v541_v55  ;;  %868 = vmatmul.mubr.f32.gmra.mxu1 %v404_v56  ;;  %v576_v55 = vld [vmem:[%s6666_s2 + $0x330] sm:$0xff]  ;;  %v449_v56 = vld [vmem:[%s4282_s22 + $0x3b8] sm:$0xff] }
  0x74   : > { %3451 = vmatprep.subr.mxu0 %v556_v57  ;;  %3505 = vmatprep.subr.mxu1 %v601_v58  ;;  %v591_v57 = vld [vmem:[%s6666_s2 + $0x3a8] sm:$0xff] }
  0x75   : > { %2139 = vperm.xlu0 %3901, %v4341_v50   ;;  %757 = vmatprep.mubr.f32.mxu0 %v466_v60  ;;  %v371_v58 = vld [vmem:[%s4282_s22 + $0x148] sm:$0xff] }
  0x76   : > { %3452 = vmatpush3.msra.mxu0 %v540_v61  ;;  %3506 = vmatpush3.msra.mxu1 %v585_v63  ;;  %v575_v60 = vld [vmem:[%s6666_s2 + $0x328] sm:$0xff]  ;;  %v370_v63 = vld [vmem:[%s4282_s22 + $0x140] sm:$0xff] }
  0x77   : > { %758 = vmatmul.mubr.f32.gmra.mxu0 %v465_v0  ;;  %3453 = vmatprep.subr.mxu0 %v555_v5  ;;  %v4721_v61 = vld [vmem:[%s6665_s1 + $0x68] sm:$0xff]  ;;  %v590_v0 = vld [vmem:[%s6666_s2 + $0x3a0] sm:$0xff] }
  0x78   : > { %3507 = vmatprep.subr.mxu1 %v600_v6  ;;  %1639 = vperm.xlu1 %3890, %v4220_v19   ;;  %v459_v5 = vld [vmem:[%s4282_s22 + $0x408] sm:$0xff]  ;;  %v574_v6 = vld [vmem:[%s6666_s2 + $0x320] sm:$0xff] }
  0x79   : > { %872 = vmatprep.mubr.f32.mxu1 %v414_v7  ;;  %3454 = vmatpush3.msra.mxu0 %v539_v8  ;;  %v458_v7 = vld [vmem:[%s4282_s22 + $0x400] sm:$0xff]  ;;  %v589_v8 = vld [vmem:[%s6666_s2 + $0x398] sm:$0xff] }
  0x7a   : > { %3508 = vmatpush3.msra.mxu1 %v584_v10  ;;  %3455 = vmatprep.subr.mxu0 %v554_v12  ;;  %v379_v12 = vld [vmem:[%s4282_s22 + $0x188] sm:$0xff] }
  0x7b   : > { %873 = vmatmul.mubr.f32.gmra.mxu1 %v413_v11  ;;  %3509 = vmatprep.subr.mxu1 %v599_v13  ;;  %v573_v11 = vld [vmem:[%s6666_s2 + $0x318] sm:$0xff]  ;;  %v588_v13 = vld [vmem:[%s6666_s2 + $0x390] sm:$0xff] }
  0x7c   : > { %3904 = vset.pattern.permute.xlu0 %v6681_v25  ;;  %3456 = vmatpush3.msra.mxu0 %v538_v15  ;;  %v468_v15 = vld [vmem:[%s4282_s22 + $0x450] sm:$0xff] }
  0x7d   : > { %972 = vmatprep.mubr.f32.mxu0 %v335_v16  ;;  %3510 = vmatpush3.msra.mxu1 %v583_v17  ;;  %v572_v17 = vld [vmem:[%s6666_s2 + $0x310] sm:$0xff] }
  0x7e   : > { %1615 = vperm.xlu0 %3904, %v4295_v37   ;;  %973 = vmatmul.mubr.f32.vlgmr.msra.gmra.mxu0 %v334_v18  ;;  %v467_v18 = vld [vmem:[%s4282_s22 + $0x448] sm:$0xff] }
  0x7f   : > { %3511 = vmatprep.subr.mxu1 %v598_v20  ;;  %3891 = vset.pattern.permute.xlu1 %v4033_v3  ;;  %v389_v20 = vld [vmem:[%s4282_s22 + $0x1d8] sm:$0xff] }
  0x80   : > { %877 = vmatprep.mubr.f32.mxu1 %v423_v21  ;;  %3512 = vmatpush3.msra.mxu1 %v582_v22  ;;  %v571_v21 = vld [vmem:[%s6666_s2 + $0x308] sm:$0xff]  ;;  %v388_v22 = vld [vmem:[%s4282_s22 + $0x1d0] sm:$0xff] }
  0x81   : > { %1998 = vperm.xlu1 %3891, %v4251_v27   ;;  %878 = vmatmul.mubr.f32.gmra.mxu1 %v422_v23  ;;  %v586_v23 = vld [vmem:[%s6666_s2 + $0x380] sm:$0xff] }
  0x82   : > { %3513 = vmatprep.subr.mxu1 %v597_v24  ;;  %977 = vmatprep.mubr.f32.mxu0 %v344_v26  ;;  %v337_v26 = vld [vmem:[%s4282_s22 + $0x38] sm:$0xff] }
  0x83   : > { %3514 = vmatpush3.msra.mxu1 %v581_v29  ;;  %1627 = vperm.xlu0 %3904, %v4349_v52   ;;  %v398_v29 = vld [vmem:[%s4282_s22 + $0x220] sm:$0xff] }
  0x84   : > { %978 = vmatmul.mubr.f32.gmra.mxu0 %v343_v30  ;;  %3515 = vmatprep.subr.mxu1 %v596_v31  ;;  %v397_v30 = vld [vmem:[%s4282_s22 + $0x218] sm:$0xff]  ;;  %v346_v31 = vld [vmem:[%s4282_s22 + $0x80] sm:$0xff] }
  0x85   : > { %882 = vmatprep.mubr.f32.mxu1 %v432_v32  ;;  %3516 = vmatpush3.msra.mxu1 %v580_v33  ;;  %v407_v33 = vld [vmem:[%s4282_s22 + $0x268] sm:$0xff] }
  0x86   : > { %2002 = vperm.xlu1 %3891, %v4668_v34   ;;  %883 = vmatmul.mubr.f32.gmra.mxu1 %v431_v36  ;;  %v617_v36 = vld [vmem:[%s6666_s2 + $0x478] sm:$0xff] }
  0x87   : > { %3517 = vmatprep.subr.mxu1 %v595_v38  ;;  %982 = vmatprep.mubr.f32.mxu0 %v353_v39  ;;  %v345_v38 = vld [vmem:[%s4282_s22 + $0x78] sm:$0xff]  ;;  %v406_v39 = vld [vmem:[%s4282_s22 + $0x260] sm:$0xff] }
  0x88   : > { %3518 = vmatpush3.msra.mxu1 %v579_v28  ;;  %1635 = vperm.xlu0 %3904, %v4370_v59   ;;  %v355_v28 = vld [vmem:[%s4282_s22 + $0xc8] sm:$0xff] }
  0x89   : > { %983 = vmatmul.mubr.f32.gmra.mxu0 %v352_v40  ;;  %3519 = vmatprep.subr.mxu1 %v594_v41  ;;  %v416_v41 = vld [vmem:[%s4282_s22 + $0x2b0] sm:$0xff] }
  0x8a   : > { %887 = vmatprep.mubr.f32.mxu1 %v441_v42  ;;  %3520 = vmatpush3.msra.mxu1 %v578_v44  ;;  %v415_v44 = vld [vmem:[%s4282_s22 + $0x2a8] sm:$0xff] }
  0x8b   : > { %3892 = vset.pattern.permute.xlu1 %v6680_v35  ;;  %888 = vmatmul.mubr.f32.gmra.mxu1 %v440_v45  ;;  %v615_v45 = vld [vmem:[%s6666_s2 + $0x468] sm:$0xff] }
  0x8c   : > { %3521 = vmatprep.subr.mxu1 %v593_v46  ;;  %2196 = vperm.xlu1 %3892, %v4160_v2   ;;  %v364_v46 = vld [vmem:[%s4282_s22 + $0x110] sm:$0xff] }
  0x8d   : > { %987 = vmatprep.mubr.f32.mxu0 %v362_v47  ;;  %3522 = vmatpush3.msra.mxu1 %v577_v48 }
  0x8e   : > { %1647 = vperm.xlu0 %3904, %v4251_v27   ;;  %988 = vmatmul.mubr.f32.gmra.mxu0 %v361_v51  ;;  %v614_v51 = vld [vmem:[%s6666_s2 + $0x460] sm:$0xff] }
  0x8f   : > { %3523 = vmatprep.subr.mxu1 %v592_v53  ;;  %892 = vmatprep.mubr.f32.mxu1 %v450_v54  ;;  %v425_v53 = vld [vmem:[%s4282_s22 + $0x2f8] sm:$0xff]  ;;  %v424_v54 = vld [vmem:[%s4282_s22 + $0x2f0] sm:$0xff] }
  0x90   : > { %v4713_v2 = vpop.permute.xlu1 %1371  ;;  %3524 = vmatpush3.msra.mxu1 %v576_v55  ;;  %2204 = vperm.xlu1 %3892, %v4155_v1   ;;  %v380_v1 = vld [vmem:[%s4282_s22 + $0x190] sm:$0xff]  ;;  %v613_v55 = vld [vmem:[%s6666_s2 + $0x458] sm:$0xff] }
  0x91   : > { %6707 = vst [vmem:[#allocation5_spill] sm:$0xff] %v4713_v2  ;;  %893 = vmatmul.mubr.f32.gmra.mxu1 %v449_v56  ;;  %3525 = vmatprep.subr.mxu1 %v591_v57  ;;  %v4791_v40 = vpop.permute.xlu0 %1962  ;;  %v373_v57 = vld [vmem:[%s4282_s22 + $0x158] sm:$0xff] }
  0x92   : > { %992 = vmatprep.mubr.f32.mxu0 %v371_v58  ;;  %3526 = vmatpush3.msra.mxu1 %v575_v60  ;;  %6712 = vst [vmem:[#allocation10_spill] sm:$0xff] %v4791_v40  ;;  %v6683_v58 = vmov 3  }
  0x93   : > { %1663 = vperm.xlu0 %3904, %v4721_v61   ;;  %993 = vmatmul.mubr.f32.gmra.mxu0 %v370_v63  ;;  %v4833_v63 = vld [vmem:[%s6665_s1] sm:$0xff] }
  0x94   : > { %v4737_v10 = vpop.permute.xlu1 %1376  ;;  %3527 = vmatprep.subr.mxu1 %v590_v0  ;;  %897 = vmatprep.mubr.f32.mxu1 %v459_v5  ;;  %v612_v0 = vld [vmem:[%s6666_s2 + $0x450] sm:$0xff]  ;;  %v434_v5 = vld [vmem:[%s4282_s22 + $0x340] sm:$0xff] }
  0x95   : > { %6708 = vst [vmem:[#allocation6_spill] sm:$0xff] %v4737_v10  ;;  %3528 = vmatpush3.msra.mxu1 %v574_v6  ;;  %2208 = vperm.xlu1 %3892, %v4181_v9   ;;  %v587_v9 = vld [vmem:[%s6666_s2 + $0x388] sm:$0xff]  ;;  %v4808_v47 = vpop.permute.xlu0 %1974  ;;  %v6685_v10 = vmov 11  }
  0x96   : > { %898 = vmatmul.mubr.f32.gmra.mxu1 %v458_v7  ;;  %3529 = vmatprep.subr.mxu1 %v589_v8  ;;  %6714 = vst [vmem:[#allocation12_spill] sm:$0xff] %v4808_v47  ;;  %v433_v7 = vld [vmem:[%s4282_s22 + $0x338] sm:$0xff]  ;;  %v611_v8 = vld [vmem:[%s6666_s2 + $0x448] sm:$0xff] }
  0x97   : > { %997 = vmatprep.mubr.f32.mxu0 %v380_v1  ;;  %3530 = vmatpush3.msra.mxu1 %v573_v11  ;;  %v382_v1 = vld [vmem:[%s4282_s22 + $0x1a0] sm:$0xff]  ;;  %v381_v11 = vld [vmem:[%s4282_s22 + $0x198] sm:$0xff] }
  0x98   : > { %v4749_v16 = vpop.permute.xlu1 %1386  ;;  %3906 = vset.pattern.permute.xlu0 %v6680_v35  ;;  %998 = vmatmul.mubr.f32.gmra.mxu0 %v379_v12  ;;  %v610_v12 = vld [vmem:[%s6666_s2 + $0x440] sm:$0xff] }
  0x99   : > { %6709 = vst [vmem:[#allocation7_spill] sm:$0xff] %v4749_v16  ;;  %3531 = vmatprep.subr.mxu1 %v588_v13  ;;  %2200 = vperm.xlu0 %3906, %v4295_v37   ;;  %v570_v37 = vld [vmem:[%s6666_s2 + $0x300] sm:$0xff]  ;;  %v4828_v60 = vpop.permute.xlu0 %1982 }
  0x9a   : > { %902 = vmatprep.mubr.f32.mxu1 %v468_v15  ;;  %3532 = vmatpush3.msra.mxu1 %v572_v17  ;;  %6717 = vst [vmem:[#allocation15_spill] sm:$0xff] %v4828_v60  ;;  %v443_v15 = vld [vmem:[%s4282_s22 + $0x388] sm:$0xff] }
  0x9b   : > { %2216 = vperm.xlu1 %3892, %v4200_v14   ;;  %903 = vmatmul.mubr.f32.gmra.mxu1 %v467_v18  ;;  %v336_v14 = vld [vmem:[%s4282_s22 + $0x30] sm:$0xff]  ;;  %v4867_v18 = vld [vmem:[%s6665_s1 + $0x8] sm:$0xff] }
  0x9c   : > { %v4769_v24 = vpop.permute.xlu1 %1396  ;;  %3533 = vmatprep.subr.mxu1 %v587_v9  ;;  %1002 = vmatprep.mubr.f32.mxu0 %v389_v20  ;;  %v442_v9 = vld [vmem:[%s4282_s22 + $0x380] sm:$0xff]  ;;  %v609_v20 = vld [vmem:[%s6666_s2 + $0x438] sm:$0xff] }
  0x9d   : > { %6710 = vst [vmem:[#allocation8_spill] sm:$0xff] %v4769_v24  ;;  %3534 = vmatpush3.msra.mxu1 %v571_v21  ;;  %1003 = vmatmul.mubr.f32.gmra.mxu0 %v388_v22  ;;  %v4858_v13 = vpop.permute.xlu0 %1990  ;;  %v391_v21 = vld [vmem:[%s4282_s22 + $0x1e8] sm:$0xff]  ;;  %v390_v22 = vld [vmem:[%s4282_s22 + $0x1e0] sm:$0xff] }
  0x9e   : > { %3535 = vmatprep.subr.mxu1 %v586_v23  ;;  %2212 = vperm.xlu0 %3906, %v4349_v52   ;;  %6719 = vst [vmem:[#allocation17_spill] sm:$0xff] %v4858_v13  ;;  %v608_v23 = vld [vmem:[%s6666_s2 + $0x430] sm:$0xff]  ;;  %v6773_v13 = vmov 9  }
  0x9f   : > { %3536 = vmatpush3.msra.mxu1 %v570_v37  ;;  %1117 = vmatprep.mubr.f32.mxu1 %v337_v26  ;;  %v4884_v26 = vld [vmem:[%s6665_s1 + $0x18] sm:$0xff] }
  0xa0   : > { %v4780_v32 = vpop.permute.xlu1 %1406  ;;  %2224 = vperm.xlu1 %3892, %v4220_v19   ;;  %1118 = vmatmul.mubr.f32.vlgmr.msra.gmra.mxu1 %v336_v14  ;;  %v616_v19 = vld [vmem:[%s6666_s2 + $0x470] sm:$0xff] }
  0xa1   : > { %6711 = vst [vmem:[#allocation9_spill] sm:$0xff] %v4780_v32  ;;  %1007 = vmatprep.mubr.f32.mxu0 %v398_v29  ;;  %1122 = vmatprep.mubr.f32.mxu1 %v346_v31  ;;  %v452_v14 = vld [vmem:[%s4282_s22 + $0x3d0] sm:$0xff]  ;;  %v4888_v29 = vpop.permute.xlu0 %1994  ;;  %v607_v31 = vld [vmem:[%s6666_s2 + $0x428] sm:$0xff] }
  0xa2   : > { %1008 = vmatmul.mubr.f32.gmra.mxu0 %v397_v30  ;;  %2220 = vperm.xlu0 %3906, %v4370_v59   ;;  %v354_v59 = vld [vmem:[%s4282_s22 + $0xc0] sm:$0xff]  ;;  %6722 = vst [vmem:[#allocation20_spill] sm:$0xff] %v4888_v29  ;;  %v451_v30 = vld [vmem:[%s4282_s22 + $0x3c8] sm:$0xff] }
  0xa3   : > { %1012 = vmatprep.mubr.f32.mxu0 %v407_v33  ;;  %3691 = vmatprep.subr.mxu0 %v617_v36  ;;  %v400_v33 = vld [vmem:[%s4282_s22 + $0x230] sm:$0xff] }
  0xa4   : > { %3893 = vset.pattern.permute.xlu1 %v4035_v62  ;;  %1123 = vmatmul.mubr.f32.gmra.mxu1 %v345_v38  ;;  %v399_v38 = vld [vmem:[%s4282_s22 + $0x228] sm:$0xff] }
  0xa5   : > { %1530 = vperm.xlu1 %3893, %v4251_v27   ;;  %1127 = vmatprep.mubr.f32.mxu1 %v355_v28  ;;  %v461_v28 = vld [vmem:[%s4282_s22 + $0x418] sm:$0xff] }
  0xa6   : > { %v4799_v42 = vpop.permute.xlu1 %1966  ;;  %1013 = vmatmul.mubr.f32.gmra.mxu0 %v406_v39  ;;  %2232 = vperm.xlu0 %3906, %v4251_v27   ;;  %v363_v27 = vld [vmem:[%s4282_s22 + $0x108] sm:$0xff] }
  0xa7   : > { %6713 = vst [vmem:[#allocation11_spill] sm:$0xff] %v4799_v42  ;;  %3692 = vmatpush3.msra.mxu0 %v617_v36  ;;  %1017 = vmatprep.mubr.f32.mxu0 %v416_v41  ;;  %v4905_v39 = vld [vmem:[%s6665_s1 + $0x28] sm:$0xff]  ;;  %v460_v41 = vld [vmem:[%s4282_s22 + $0x410] sm:$0xff] }
  0xa8   : > { %3693 = vmatprep.subr.mxu0 %v616_v19  ;;  %1128 = vmatmul.mubr.f32.gmra.mxu1 %v354_v59  ;;  %v605_v59 = vld [vmem:[%s6666_s2 + $0x418] sm:$0xff] }
  0xa9   : > { %3694 = vmatpush3.msra.mxu0 %v616_v19  ;;  %1534 = vperm.xlu1 %3893, %v4668_v34   ;;  %v4912_v19 = vld [vmem:[%s6665_s1 + $0x30] sm:$0xff] }
  0xaa   : > { %v4810_v48 = vpop.permute.xlu1 %1970  ;;  %1018 = vmatmul.mubr.f32.gmra.mxu0 %v415_v44  ;;  %3695 = vmatprep.subr.mxu0 %v615_v45  ;;  %v4919_v44 = vpop.permute.xlu0 %2006 }
  0xab   : > { %6715 = vst [vmem:[#allocation13_spill] sm:$0xff] %v4810_v48  ;;  %2244 = vperm.xlu0 %3906, %v4316_v43   ;;  %1132 = vmatprep.mubr.f32.mxu1 %v364_v46  ;;  %v372_v43 = vld [vmem:[%s4282_s22 + $0x150] sm:$0xff]  ;;  %6724 = vst [vmem:[#allocation22_spill] sm:$0xff] %v4919_v44 }
  0xac   : > { %3696 = vmatpush3.msra.mxu0 %v615_v45  ;;  %1133 = vmatmul.mubr.f32.gmra.mxu1 %v363_v27  ;;  %v409_v45 = vld [vmem:[%s4282_s22 + $0x278] sm:$0xff]  ;;  %v408_v27 = vld [vmem:[%s4282_s22 + $0x270] sm:$0xff] }
  0xad   : > { %3697 = vmatprep.subr.mxu0 %v614_v51  ;;  %1022 = vmatprep.mubr.f32.mxu0 %v425_v53  ;;  %v4931_v53 = vld [vmem:[%s6665_s1 + $0x38] sm:$0xff] }
  0xae   : > { %v4823_v56 = vpop.permute.xlu1 %1978  ;;  %3698 = vmatpush3.msra.mxu0 %v614_v51  ;;  %3894 = vset.pattern.permute.xlu1 %v6683_v58  ;;  %v604_v51 = vld [vmem:[%s6666_s2 + $0x410] sm:$0xff] }
  0xaf   : > { %6716 = vst [vmem:[#allocation14_spill] sm:$0xff] %v4823_v56  ;;  %1023 = vmatmul.mubr.f32.gmra.mxu0 %v424_v54  ;;  %3699 = vmatprep.subr.mxu0 %v613_v55  ;;  %v470_v54 = vld [vmem:[%s4282_s22 + $0x460] sm:$0xff] }
  0xb0   : > { %1728 = vperm.xlu1 %3894, %v4833_v63   ;;  %2256 = vperm.xlu0 %3906, %v4341_v50   ;;  %v4851_v50 = vld [vmem:[%s6665_s1 + $0x10] sm:$0xff] }
  0xb1   : > { %1137 = vmatprep.mubr.f32.mxu1 %v373_v57  ;;  %3700 = vmatpush3.msra.mxu0 %v613_v55  ;;  %v4938_v55 = vld [vmem:[%s6665_s1 + $0x48] sm:$0xff]  ;;  %v469_v57 = vld [vmem:[%s4282_s22 + $0x458] sm:$0xff] }
  0xb2   : > { %v4841_v6 = vpop.permute.xlu1 %1986  ;;  %1138 = vmatmul.mubr.f32.gmra.mxu1 %v372_v43  ;;  %3701 = vmatprep.subr.mxu0 %v612_v0  ;;  %v603_v43 = vld [vmem:[%s6666_s2 + $0x408] sm:$0xff] }
  0xb3   : > { %6718 = vst [vmem:[#allocation16_spill] sm:$0xff] %v4841_v6  ;;  %1027 = vmatprep.mubr.f32.mxu0 %v434_v5  ;;  %3702 = vmatpush3.msra.mxu0 %v612_v0  ;;  %v4947_v5 = vpop.permute.xlu0 %2010 }
  0xb4   : > { %1736 = vperm.xlu1 %3894, %v4851_v50   ;;  %1028 = vmatmul.mubr.f32.gmra.mxu0 %v433_v7  ;;  %6727 = vst [vmem:[#allocation25_spill] sm:$0xff] %v4947_v5  ;;  %v418_v7 = vld [vmem:[%s4282_s22 + $0x2c0] sm:$0xff] }
  0xb5   : > { %3703 = vmatprep.subr.mxu0 %v611_v8  ;;  %3908 = vset.pattern.permute.xlu0 %v6683_v58 }
  0xb6   : > { %1142 = vmatprep.mubr.f32.mxu1 %v382_v1  ;;  %3704 = vmatpush3.msra.mxu0 %v611_v8  ;;  %v417_v8 = vld [vmem:[%s4282_s22 + $0x2b8] sm:$0xff]  ;;  %v602_v1 = vld [vmem:[%s6666_s2 + $0x400] sm:$0xff] }
  0xb7   : > { %v4862_v17 = vpop.permute.xlu1 %1494  ;;  %1732 = vperm.xlu0 %3908, %v4867_v18   ;;  %1143 = vmatmul.mubr.f32.gmra.mxu1 %v381_v11  ;;  %v338_v11 = vld [vmem:[%s4282_s22 + $0x40] sm:$0xff] }
  0xb8   : > { %6720 = vst [vmem:[#allocation18_spill] sm:$0xff] %v4862_v17  ;;  %3705 = vmatprep.subr.mxu0 %v610_v12  ;;  %1032 = vmatprep.mubr.f32.mxu0 %v443_v15 }
  0xb9   : > { %3706 = vmatpush3.msra.mxu0 %v610_v12  ;;  %1740 = vperm.xlu1 %3894, %v4884_v26   ;;  %v427_v12 = vld [vmem:[%s4282_s22 + $0x308] sm:$0xff] }
  0xba   : > { %1033 = vmatmul.mubr.f32.gmra.mxu0 %v442_v9  ;;  %3707 = vmatprep.subr.mxu0 %v609_v20  ;;  %v347_v9 = vld [vmem:[%s4282_s22 + $0x88] sm:$0xff] }
  0xbb   : > { %v4879_v37 = vpop.permute.xlu1 %1502  ;;  %1147 = vmatprep.mubr.f32.mxu1 %v391_v21  ;;  %3708 = vmatpush3.msra.mxu0 %v609_v20  ;;  %v4962_v20 = vpop.permute.xlu0 %2022  ;;  %v426_v21 = vld [vmem:[%s4282_s22 + $0x300] sm:$0xff] }
  0xbc   : > { %6721 = vst [vmem:[#allocation19_spill] sm:$0xff] %v4879_v37  ;;  %1744 = vperm.xlu0 %3908, %v4349_v52   ;;  %1148 = vmatmul.mubr.f32.gmra.mxu1 %v390_v22  ;;  %v606_v52 = vld [vmem:[%s6666_s2 + $0x420] sm:$0xff]  ;;  %6729 = vst [vmem:[#allocation27_spill] sm:$0xff] %v4962_v20  ;;  %v356_v22 = vld [vmem:[%s4282_s22 + $0xd0] sm:$0xff]  ;;  %v6687_v20 = vmov 4  }
  0xbd   : > { %3709 = vmatprep.subr.mxu0 %v608_v23  ;;  %1037 = vmatprep.mubr.f32.mxu0 %v452_v14 }
  0xbe   : > { %3710 = vmatpush3.msra.mxu0 %v608_v23  ;;  %1748 = vperm.xlu1 %3894, %v4905_v39   ;;  %v436_v23 = vld [vmem:[%s4282_s22 + $0x350] sm:$0xff] }
  0xbf   : > { %v4896_v36 = vpop.permute.xlu1 %1506  ;;  %1038 = vmatmul.mubr.f32.gmra.mxu0 %v451_v30  ;;  %3711 = vmatprep.subr.mxu0 %v607_v31  ;;  %v6678_v30 = vmov 9  }
  0xc0   : > { %6723 = vst [vmem:[#allocation21_spill] sm:$0xff] %v4896_v36  ;;  %1152 = vmatprep.mubr.f32.mxu1 %v400_v33  ;;  %3712 = vmatpush3.msra.mxu0 %v607_v31  ;;  %v365_v31 = vld [vmem:[%s4282_s22 + $0x118] sm:$0xff]  ;;  %v435_v33 = vld [vmem:[%s4282_s22 + $0x348] sm:$0xff] }
  0xc1   : > { %1752 = vperm.xlu0 %3908, %v4912_v19   ;;  %1153 = vmatmul.mubr.f32.gmra.mxu1 %v399_v38  ;;  %v374_v38 = vld [vmem:[%s4282_s22 + $0x160] sm:$0xff] }
  0xc2   : > { %3713 = vmatprep.subr.mxu0 %v606_v52  ;;  %1042 = vmatprep.mubr.f32.mxu0 %v461_v28  ;;  %v445_v28 = vld [vmem:[%s4282_s22 + $0x398] sm:$0xff] }
  0xc3   : > { %v4922_v46 = vpop.permute.xlu1 %1514  ;;  %3714 = vmatpush3.msra.mxu0 %v606_v52  ;;  %1756 = vperm.xlu1 %3894, %v4931_v53   ;;  %v4975_v52 = vpop.permute.xlu0 %1498 }
  0xc4   : > { %6725 = vst [vmem:[#allocation23_spill] sm:$0xff] %v4922_v46  ;;  %1043 = vmatmul.mubr.f32.gmra.mxu0 %v460_v41  ;;  %3715 = vmatprep.subr.mxu0 %v605_v59  ;;  %6731 = vst [vmem:[#allocation29_spill] sm:$0xff] %v4975_v52 }
  0xc5   : > { %1157 = vmatprep.mubr.f32.mxu1 %v409_v45  ;;  %3716 = vmatpush3.msra.mxu0 %v605_v59  ;;  %v4984_v59 = vld [vmem:[%s6665_s1 + $0x40] sm:$0xff]  ;;  %v383_v45 = vld [vmem:[%s4282_s22 + $0x1a8] sm:$0xff] }
  0xc6   : > { %1764 = vperm.xlu0 %3908, %v4938_v55   ;;  %1158 = vmatmul.mubr.f32.gmra.mxu1 %v408_v27  ;;  %v444_v27 = vld [vmem:[%s4282_s22 + $0x390] sm:$0xff] }
  0xc7   : > { %v4945_v0 = vpop.permute.xlu1 %1522  ;;  %3717 = vmatprep.subr.mxu0 %v604_v51  ;;  %1047 = vmatprep.mubr.f32.mxu0 %v470_v54  ;;  %v454_v54 = vld [vmem:[%s4282_s22 + $0x3e0] sm:$0xff] }
  0xc8   : > { %6726 = vst [vmem:[#allocation24_spill] sm:$0xff] %v4945_v0  ;;  %3718 = vmatpush3.msra.mxu0 %v604_v51  ;;  %3895 = vset.pattern.permute.xlu1 %v6682_v49  ;;  %v392_v51 = vld [vmem:[%s4282_s22 + $0x1f0] sm:$0xff] }
  0xc9   : > { %1048 = vmatmul.mubr.f32.gmra.mxu0 %v469_v57  ;;  %3719 = vmatprep.subr.mxu0 %v603_v43  ;;  %v401_v57 = vld [vmem:[%s4282_s22 + $0x238] sm:$0xff] }
  0xca   : > { %1162 = vmatprep.mubr.f32.mxu1 %v418_v7  ;;  %3720 = vmatpush3.msra.mxu0 %v603_v43  ;;  %v4996_v7 = vpop.permute.xlu0 %1510 }
  0xcb   : > { %2115 = vperm.xlu1 %3895, %v4938_v55   ;;  %1780 = vperm.xlu0 %3908, %v4721_v61   ;;  %6734 = vst [vmem:[#allocation32_spill] sm:$0xff] %v4996_v7 }
  0xcc   : > { %v4958_v15 = vpop.permute.xlu1 %2083  ;;  %1163 = vmatmul.mubr.f32.gmra.mxu1 %v417_v8  ;;  %3721 = vmatprep.subr.mxu0 %v602_v1  ;;  %v453_v8 = vld [vmem:[%s4282_s22 + $0x3d8] sm:$0xff] }
  0xcd   : > { %6728 = vst [vmem:[#allocation26_spill] sm:$0xff] %v4958_v15  ;;  %3723 = vmatprep.mubr.f32.mxu0 %v338_v11  ;;  %3722 = vmatpush3.msra.mxu0 %v602_v1  ;;  %v410_v1 = vld [vmem:[%s4282_s22 + $0x280] sm:$0xff]  ;;  %v463_v11 = vld [vmem:[%s4282_s22 + $0x428] sm:$0xff] }
  0xce   : > { %1167 = vmatprep.mubr.f32.mxu1 %v427_v12  ;;  %3724 = vmatmul.mubr.f32.vlgmr.msra.gmra.mxu0 %v347_v9  ;;  %v5005_v12 = vld [vmem:[%s6665_s1 + $0x58] sm:$0xff]  ;;  %v419_v9 = vld [vmem:[%s4282_s22 + $0x2c8] sm:$0xff] }
  0xcf   : > { %2119 = vperm.xlu1 %3895, %v4668_v34   ;;  %3910 = vset.pattern.permute.xlu0 %v6678_v30 }
  0xd0   : > { %v4968_v14 = vpop.permute.xlu1 %2087  ;;  %1168 = vmatmul.mubr.f32.gmra.mxu1 %v426_v21  ;;  %2430 = vperm.xlu0 %3910, %v4833_v63   ;;  %v462_v21 = vld [vmem:[%s4282_s22 + $0x420] sm:$0xff] }
  0xd1   : > { %6730 = vst [vmem:[#allocation28_spill] sm:$0xff] %v4968_v14  ;;  %3726 = vmatprep.mubr.f32.mxu0 %v356_v22  ;;  %1172 = vmatprep.mubr.f32.mxu1 %v436_v23  ;;  %v428_v22 = vld [vmem:[%s4282_s22 + $0x310] sm:$0xff]  ;;  %v6753_v14 = vmov 6  }
  0xd2   : > { %3727 = vmatmul.mubr.f32.gmra.mxu0 %v365_v31  ;;  %v5014_v31 = vpop.permute.xlu0 %1518 }
  0xd3   : > { %3896 = vset.pattern.permute.xlu1 %v6681_v25  ;;  %3729 = vmatprep.mubr.f32.mxu0 %v374_v38  ;;  %6736 = vst [vmem:[#allocation34_spill] sm:$0xff] %v5014_v31  ;;  %v437_v38 = vld [vmem:[%s4282_s22 + $0x358] sm:$0xff] }
  0xd4   : > { %v4979_v41 = vpop.permute.xlu1 %2095  ;;  %1173 = vmatmul.mubr.f32.gmra.mxu1 %v435_v33  ;;  %1643 = vperm.xlu1 %3896, %v4984_v59   ;;  %v472_v33 = vld [vmem:[%s4282_s22 + $0x470] sm:$0xff] }
  0xd5   : > { %6732 = vst [vmem:[#allocation30_spill] sm:$0xff] %v4979_v41  ;;  %2442 = vperm.xlu0 %3910, %v4884_v26   ;;  %1177 = vmatprep.mubr.f32.mxu1 %v445_v28  ;;  %v471_v28 = vld [vmem:[%s4282_s22 + $0x468] sm:$0xff] }
  0xd6   : > { %3730 = vmatmul.mubr.f32.gmra.mxu0 %v383_v45  ;;  %v446_v45 = vld [vmem:[%s4282_s22 + $0x3a0] sm:$0xff] }
  0xd7   : > { %3732 = vmatprep.mubr.f32.mxu0 %v392_v51 }
  0xd8   : > { %1178 = vmatmul.mubr.f32.gmra.mxu1 %v444_v27  ;;  %1651 = vperm.xlu1 %3896, %v4668_v34   ;;  %v4994_v43 = vpop.permute.xlu1 %2103  ;;  %v5026_v27 = vld [vmem:[%s6665_s1 + $0x70] sm:$0xff] }
  0xd9   : > { %6733 = vst [vmem:[#allocation31_spill] sm:$0xff] %v4994_v43  ;;  %2450 = vperm.xlu0 %3910, %v4905_v39   ;;  %1182 = vmatprep.mubr.f32.mxu1 %v454_v54  ;;  %6737 = vst [vmem:[#allocation35_spill] sm:$0xff] %v5026_v27  ;;  %v5031_v54 = vpop.permute.xlu0 %1526 }
  0xda   : > { %3733 = vmatmul.mubr.f32.gmra.mxu0 %v401_v57  ;;  %6739 = vst [vmem:[#allocation37_spill] sm:$0xff] %v5031_v54  ;;  %v464_v57 = vld [vmem:[%s4282_s22 + $0x430] sm:$0xff] }
  0xdb   : > { %3735 = vmatprep.mubr.f32.mxu0 %v410_v1 }
  0xdc   : > { %1183 = vmatmul.mubr.f32.gmra.mxu1 %v453_v8  ;;  %1655 = vperm.xlu1 %3896, %v5005_v12   ;;  %v473_v8 = vld [vmem:[%s4282_s22 + $0x478] sm:$0xff] }
  0xdd   : > { %2458 = vperm.xlu0 %3910, %v4931_v53   ;;  %1187 = vmatprep.mubr.f32.mxu1 %v463_v11  ;;  %v5041_v11 = vpop.permute.xlu0 %1538 }
  0xde   : > { %v5012_v23 = vpop.permute.xlu1 %1611  ;;  %3736 = vmatmul.mubr.f32.gmra.mxu0 %v419_v9  ;;  %6741 = vst [vmem:[#allocation39_spill] sm:$0xff] %v5041_v11  ;;  %v6674_v9 = vmov 10  }
  0xdf   : > { %6735 = vst [vmem:[#allocation33_spill] sm:$0xff] %v5012_v23  ;;  %3738 = vmatprep.mubr.f32.mxu0 %v428_v22 }
  0xe0   : > { %1188 = vmatmul.mubr.f32.gmra.mxu1 %v462_v21  ;;  %3897 = vset.pattern.permute.xlu1 %v4033_v3  ;;  %v455_v3 = vld [vmem:[%s4282_s22 + $0x3e8] sm:$0xff]  ;;  %s3977_s22 = scalar_lea.vmem %s3976_s13, 32 }
  0xe1   : > { %2462 = vperm.xlu0 %3910, %v4984_v59   ;;  %2014 = vperm.xlu1 %3897, %v4721_v61   ;;  %v5049_v22 = vpop.permute.xlu0 %1542 }
  0xe2   : > { %1192 = vmatprep.mubr.f32.mxu1 %v472_v33  ;;  %3739 = vmatmul.mubr.f32.gmra.mxu0 %v437_v38  ;;  %v5029_v51 = vpop.permute.xlu1 %1619  ;;  %6743 = vst [vmem:[#allocation41_spill] sm:$0xff] %v5049_v22  ;;  %v5054_v33 = vld [vmem:[%s6665_s1 + $0x20] sm:$0xff] }
  0xe3   : > { %3741 = vmatprep.mubr.f32.mxu0 %v446_v45  ;;  %6738 = vst [vmem:[#allocation36_spill] sm:$0xff] %v5029_v51 }
  0xe4   : > { %1193 = vmatmul.mubr.f32.gmra.mxu1 %v471_v28 }
  0xe5   : > { %2474 = vperm.xlu0 %3910, %v5005_v12   ;;  %2018 = vperm.xlu1 %3897, %v5026_v27  }
  0xe6   : > { %3742 = vmatmul.mubr.f32.gmra.mxu0 %v455_v3  ;;  %v5061_v3 = vpop.permute.xlu0 %1554 }
  0xe7   : > { %3744 = vmatprep.mubr.f32.mxu0 %v464_v57  ;;  %v5039_v1 = vpop.permute.xlu1 %1623  ;;  %6745 = vst [vmem:[#allocation43_spill] sm:$0xff] %v5061_v3 }
  0xe8   : > { %6740 = vst [vmem:[#allocation38_spill] sm:$0xff] %v5039_v1 }
  0xe9   : > { %2482 = vperm.xlu0 %3910, %v4721_v61   ;;  %3899 = vset.pattern.permute.xlu1 %v6680_v35 }
  0xea   : > { %3745 = vmatmul.mubr.f32.gmra.mxu0 %v473_v8  ;;  %2228 = vperm.xlu1 %3899, %v4984_v59   ;;  %v5069_v25 = vpop.permute.xlu0 %2079 }
  0xeb   : > { %6747 = vst [vmem:[#allocation45_spill] sm:$0xff] %v5069_v25 }
  0xec   : > { %v5047_v21 = vpop.permute.xlu1 %1631 }
  0xed   : > { %3917 = vset.pattern.permute.xlu0 %v6674_v9  ;;  %6742 = vst [vmem:[#allocation40_spill] sm:$0xff] %v5047_v21 }
  0xee   : > { %2551 = vperm.xlu0 %3917, %v4867_v18   ;;  %2236 = vperm.xlu1 %3899, %v4668_v34  }
  0xf2   : > { %2563 = vperm.xlu0 %3917, %v5054_v33   ;;  %2240 = vperm.xlu1 %3899, %v5005_v12  }
  0xf3   : > { %v5059_v28 = vpop.permute.xlu1 %1639 }
  0xf4   : > { %6744 = vst [vmem:[#allocation42_spill] sm:$0xff] %v5059_v28 }
  0xf5   : > { %v3297_v38 = vpop.f32.mrf.mxu0 }
  0xf6   : > { %2571 = vperm.xlu0 %3917, %v4912_v19   ;;  %3900 = vset.pattern.permute.xlu1 %v4035_v62  ;;  %v6748_v62 = vmov 3  }
  0xf7   : > { %v3298_v45 = vpop.f32.mrf.mxu0  ;;  %1546 = vperm.xlu1 %3900, %v4721_v61  }
  0xf8   : > { %v3299_v57 = vadd.f32 %v3298_v45, %v3297_v38 }
  0xf9   : > { %v3300_v8 = vpop.f32.mrf.mxu0 }
  0xfa   : > { %2579 = vperm.xlu0 %3917, %v4984_v59  }
  0xfb   : > { %v3301_v9 = vpop.f32.mrf.mxu0  ;;  %1550 = vperm.xlu1 %3900, %v5026_v27  }
  0xfc   : > { %v3302_v4 = vadd.f32 %v3301_v9, %v3300_v8  ;;  %v5067_v30 = vpop.permute.xlu1 %1998  ;;  %v5079_v8 = vpop.permute.xlu0 %2091 }
  0xfd   : > { %6746 = vst [vmem:[#allocation44_spill] sm:$0xff] %v5067_v30  ;;  %v3303_v35 = vpop.f32.mrf.mxu0  ;;  %6750 = vst [vmem:[#allocation47_spill] sm:$0xff] %v5079_v8 }
  0xfe   : > { %2591 = vperm.xlu0 %3917, %v5005_v12  }
  0xff   : > { %v3304_v49 = vpop.f32.mrf.mxu0  ;;  %3902 = vset.pattern.permute.xlu1 %v6748_v62 }
 0x100   : > { %v5072_v58 = vadd.f32 %v3304_v49, %v3303_v35  ;;  %1760 = vperm.xlu1 %3902, %v4984_v59   ;;  %v5090_v43 = vpop.permute.xlu0 %2099 }
 0x101   : > { %v3306_v38 = vpop.f32.mrf.mxu0  ;;  %v5077_v9 = vpop.permute.xlu1 %2002  ;;  %6752 = vst [vmem:[#allocation49_spill] sm:$0xff] %v5090_v43 }
 0x102   : > { %2599 = vperm.xlu0 %3917, %v4721_v61   ;;  %6749 = vst [vmem:[#allocation46_spill] sm:$0xff] %v5077_v9 }
 0x103   : > { %v3307_v45 = vpop.f32.mrf.mxu0 }
 0x104   : > { %v5081_v32 = vadd.f32 %v3307_v45, %v3306_v38  ;;  %1768 = vperm.xlu1 %3902, %v4668_v34  }
 0x105   : > { %v3309_v24 = vpop.f32.mrf.mxu0 }
 0x106   : > { %3920 = vset.pattern.permute.xlu0 %v6685_v10 }
 0x107   : > { %v3310_v49 = vpop.f32.mrf.mxu0  ;;  %2668 = vperm.xlu0 %3920, %v4867_v18   ;;  %v5088_v2 = vpop.permute.xlu1 %2196 }
 0x108   : > { %v5086_v35 = vadd.f32 %v3310_v49, %v3309_v24  ;;  %6751 = vst [vmem:[#allocation48_spill] sm:$0xff] %v5088_v2  ;;  %1772 = vperm.xlu1 %3902, %v5005_v12   ;;  %v5100_v49 = vpop.permute.xlu0 %2107 }
 0x109   : > { %v3312_v16 = vpop.f32.mrf.mxu0  ;;  %6755 = vst [vmem:[#allocation51_spill] sm:$0xff] %v5100_v49 }
 0x10b   : > { %v3313_v38 = vpop.f32.mrf.mxu0  ;;  %2680 = vperm.xlu0 %3920, %v5054_v33   ;;  %v5097_v10 = vpop.permute.xlu1 %2204 }
 0x10c   : > { %v5094_v45 = vadd.f32 %v3313_v38, %v3312_v16  ;;  %3903 = vset.pattern.permute.xlu1 %v6753_v14  ;;  %6754 = vst [vmem:[#allocation50_spill] sm:$0xff] %v5097_v10  ;;  %v5113_v21 = vpop.permute.xlu0 %2111 }
 0x10d   : > { %v3315_v8 = vpop.f32.mrf.mxu0  ;;  %2131 = vperm.xlu1 %3903, %v4721_v61   ;;  %v3377_v15 = vpop.f32.mrf.mxu1  ;;  %6757 = vst [vmem:[#allocation53_spill] sm:$0xff] %v5113_v21 }
 0x10f   : > { %v3316_v24 = vpop.f32.mrf.mxu0  ;;  %2688 = vperm.xlu0 %3920, %v4912_v19   ;;  %v3378_v25 = vpop.f32.mrf.mxu1 }
 0x110   : > { %v5103_v43 = vadd.f32 %v3316_v24, %v3315_v8  ;;  %v5106_v16 = vpop.permute.xlu1 %2208  ;;  %v3379_v38 = vadd.f32 %v3378_v25, %v3377_v15  ;;  %v6758_v24 = vmov 2   ;;  %v5121_v25 = vld [vmem:[%s6665_s1 + $0x60] sm:$0xff] }
 0x111   : > { %v3318_v41 = vpop.f32.mrf.mxu0  ;;  %2135 = vperm.xlu1 %3903, %v5026_v27   ;;  %6756 = vst [vmem:[#allocation52_spill] sm:$0xff] %v5106_v16  ;;  %6760 = vst [vmem:[#allocation55_spill] sm:$0xff] %v5121_v25  ;;  %v5135_v16 = vpop.permute.xlu0 %2123 }
 0x112   : > { %v3380_v1 = vpop.f32.mrf.mxu1  ;;  %v5111_v51 = vadd.f32 %v3379_v38, %v3299_v57  ;;  %6762 = vst [vmem:[#allocation57_spill] sm:$0xff] %v5135_v16 }
 0x113   : > { %v3319_v14 = vpop.f32.mrf.mxu0  ;;  %2696 = vperm.xlu0 %3920, %v4984_v59  }
 0x114   : > { %v5109_v28 = vadd.f32 %v3319_v14, %v3318_v41  ;;  %v3381_v8 = vpop.f32.mrf.mxu1 }
 0x115   : > { %v3321_v49 = vpop.f32.mrf.mxu0  ;;  %3905 = vset.pattern.permute.xlu1 %v6758_v24  ;;  %v3382_v10 = vadd.f32 %v3381_v8, %v3380_v1  ;;  %v5154_v16 = vpop.permute.xlu0 %2127 }
 0x116   : > { %v5116_v23 = vpop.permute.xlu1 %2216  ;;  %1659 = vperm.xlu1 %3905, %v5121_v25   ;;  %v3383_v41 = vpop.f32.mrf.mxu1  ;;  %6764 = vst [vmem:[#allocation59_spill] sm:$0xff] %v5154_v16 }
 0x117   : > { %6759 = vst [vmem:[#allocation54_spill] sm:$0xff] %v5116_v23  ;;  %v3322_v2 = vpop.f32.mrf.mxu0  ;;  %2708 = vperm.xlu0 %3920, %v5005_v12   ;;  %v5127_v57 = vadd.f32 %v3382_v10, %v3302_v4 }
 0x118   : > { %v5125_v15 = vadd.f32 %v3322_v2, %v3321_v49  ;;  %v3384_v14 = vpop.f32.mrf.mxu1  ;;  %v5143_v49 = vld [vmem:[%s6665_s1 + $0x78] sm:$0xff] }
 0x119   : > { %v3324_v38 = vpop.f32.mrf.mxu0  ;;  %v3385_v24 = vadd.f32 %v3384_v14, %v3383_v41 }
 0x11a   : > { %1667 = vperm.xlu1 %3905, %v5026_v27   ;;  %v3386_v23 = vpop.f32.mrf.mxu1 }
 0x11b   : > { %v3325_v21 = vpop.f32.mrf.mxu0  ;;  %2712 = vperm.xlu0 %3920, %v5121_v25   ;;  %v5131_v1 = vpop.permute.xlu1 %2224  ;;  %v5138_v2 = vadd.f32 %v3385_v24, %v5072_v58 }
 0x11c   : > { %6761 = vst [vmem:[#allocation56_spill] sm:$0xff] %v5131_v1  ;;  %v5133_v8 = vadd.f32 %v3325_v21, %v3324_v38  ;;  %v3387_v10 = vpop.f32.mrf.mxu1  ;;  %v6765_v1 = vmov 7  }
 0x11d   : > { %v3327_v4 = vpop.f32.mrf.mxu0  ;;  %v3388_v12 = vadd.f32 %v3387_v10, %v3386_v23 }
 0x11e   : > { %1671 = vperm.xlu1 %3905, %v5143_v49  }
 0x11f   : > { %2724 = vperm.xlu0 %3920, %v5143_v49   ;;  %v3328_v21 = vpop.f32.mrf.mxu0  ;;  %v3389_v41 = vpop.f32.mrf.mxu1  ;;  %v5150_v14 = vadd.f32 %v3388_v12, %v5081_v32 }
 0x120   : > { %v5147_v38 = vpop.permute.xlu1 %1530  ;;  %v5152_v58 = vadd.f32 %v3328_v21, %v3327_v4 }
 0x121   : > { %6763 = vst [vmem:[#allocation58_spill] sm:$0xff] %v5147_v38  ;;  %v3390_v24 = vpop.f32.mrf.mxu1 }
 0x122   : > { %v3330_v23 = vpop.f32.mrf.mxu0  ;;  %v3391_v10 = vadd.f32 %v3390_v24, %v3389_v41  ;;  %3907 = vset.pattern.permute.xlu1 %v6765_v1 }
 0x123   : > { %3923 = vset.pattern.permute.xlu0 %v6687_v20  ;;  %2248 = vperm.xlu1 %3907, %v4721_v61   ;;  %v5169_v20 = vpop.permute.xlu0 %2139 }
 0x124   : > { %1849 = vperm.xlu0 %3923, %v4867_v18   ;;  %v5161_v5 = vadd.f32 %v3391_v10, %v5086_v35  ;;  %v3331_v32 = vpop.f32.mrf.mxu0  ;;  %v5163_v4 = vpop.permute.xlu1 %1534  ;;  %6767 = vst [vmem:[#allocation61_spill] sm:$0xff] %v5169_v20 }
 0x125   : > { %6766 = vst [vmem:[#allocation60_spill] sm:$0xff] %v5163_v4  ;;  %v5165_v12 = vadd.f32 %v3331_v32, %v3330_v23  ;;  %v3392_v21 = vpop.f32.mrf.mxu1 }
 0x127   : > { %v3393_v41 = vpop.f32.mrf.mxu1  ;;  %2252 = vperm.xlu1 %3907, %v5026_v27   ;;  %v3333_v1 = vpop.f32.mrf.mxu0 }
 0x128   : > { %1861 = vperm.xlu0 %3923, %v5054_v33   ;;  %v3394_v24 = vadd.f32 %v3393_v41, %v3392_v21  ;;  %v5181_v41 = vpop.permute.xlu0 %1615 }
 0x129   : > { %v3334_v35 = vpop.f32.mrf.mxu0  ;;  %v3395_v10 = vpop.f32.mrf.mxu1  ;;  %6769 = vst [vmem:[#allocation63_spill] sm:$0xff] %v5181_v41 }
 0x12a   : > { %v5172_v16 = vadd.f32 %v3394_v24, %v5094_v45  ;;  %v5176_v9 = vadd.f32 %v3334_v35, %v3333_v1 }
 0x12b   : > { %v5174_v44 = vpop.permute.xlu1 %1728  ;;  %3909 = vset.pattern.permute.xlu1 %v6748_v62  ;;  %v3396_v23 = vpop.f32.mrf.mxu1 }
 0x12c   : > { %6768 = vst [vmem:[#allocation62_spill] sm:$0xff] %v5174_v44  ;;  %1869 = vperm.xlu0 %3923, %v4912_v19   ;;  %1776 = vperm.xlu1 %3909, %v5121_v25   ;;  %v3336_v32 = vpop.f32.mrf.mxu0  ;;  %v3397_v21 = vadd.f32 %v3396_v23, %v3395_v10  ;;  %v5196_v41 = vpop.permute.xlu0 %1627 }
 0x12d   : > { %6771 = vst [vmem:[#allocation65_spill] sm:$0xff] %v5196_v41 }
 0x12e   : > { %v5184_v45 = vadd.f32 %v3397_v21, %v5103_v43  ;;  %v3337_v24 = vpop.f32.mrf.mxu0  ;;  %v3398_v62 = vpop.f32.mrf.mxu1 }
 0x12f   : > { %v5187_v20 = vpop.permute.xlu1 %1736  ;;  %v5189_v1 = vadd.f32 %v3337_v24, %v3336_v32 }
 0x130   : > { %1877 = vperm.xlu0 %3923, %v4984_v59   ;;  %6770 = vst [vmem:[#allocation64_spill] sm:$0xff] %v5187_v20  ;;  %1784 = vperm.xlu1 %3909, %v5026_v27   ;;  %v3399_v30 = vpop.f32.mrf.mxu1 }
 0x131   : > { %v3339_v35 = vpop.f32.mrf.mxu0  ;;  %v3400_v10 = vadd.f32 %v3399_v30, %v3398_v62 }
 0x133   : > { %v3340_v23 = vpop.f32.mrf.mxu0  ;;  %v3401_v21 = vpop.f32.mrf.mxu1  ;;  %v5201_v32 = vadd.f32 %v3400_v10, %v5109_v28  ;;  %v6776_v10 = vmov 0  }
 0x134   : > { %1885 = vperm.xlu0 %3923, %v4668_v34   ;;  %1788 = vperm.xlu1 %3909, %v5143_v49   ;;  %v5194_v43 = vadd.f32 %v3340_v23, %v3339_v35  ;;  %v5198_v48 = vpop.permute.xlu1 %1740  ;;  %v5213_v28 = vpop.permute.xlu0 %1635 }
 0x135   : > { %6772 = vst [vmem:[#allocation66_spill] sm:$0xff] %v5198_v48  ;;  %v3402_v29 = vpop.f32.mrf.mxu1  ;;  %6775 = vst [vmem:[#allocation68_spill] sm:$0xff] %v5213_v28 }
 0x136   : > { %v3403_v34 = vadd.f32 %v3402_v29, %v3401_v21 }
 0x137   : > { %v3342_v24 = vpop.f32.mrf.mxu0 }
 0x138   : > { %1897 = vperm.xlu0 %3923, %v4721_v61   ;;  %3911 = vset.pattern.permute.xlu1 %v6773_v13  ;;  %v5211_v23 = vadd.f32 %v3403_v34, %v5125_v15  ;;  %v5224_v34 = vpop.permute.xlu0 %1647 }
 0x139   : > { %v3343_v30 = vpop.f32.mrf.mxu0  ;;  %2434 = vperm.xlu1 %3911, %v4867_v18   ;;  %v5208_v35 = vpop.permute.xlu1 %1748  ;;  %6778 = vst [vmem:[#allocation70_spill] sm:$0xff] %v5224_v34 }
 0x13a   : > { %v5206_v62 = vadd.f32 %v3343_v30, %v3342_v24  ;;  %6774 = vst [vmem:[#allocation67_spill] sm:$0xff] %v5208_v35 }
 0x13b   : > { %v3404_v41 = vpop.f32.mrf.mxu1 }
 0x13c   : > { %3926 = vset.pattern.permute.xlu0 %v6776_v10  ;;  %v5237_v56 = vpop.permute.xlu0 %1663 }
 0x13d   : > { %1361 = vperm.xlu0 %3926, %v4833_v63   ;;  %v3405_v61 = vpop.f32.mrf.mxu1  ;;  %2438 = vperm.xlu1 %3911, %v4851_v50   ;;  %6780 = vst [vmem:[#allocation72_spill] sm:$0xff] %v5237_v56 }
 0x13e   : > { %v3406_v29 = vadd.f32 %v3405_v61, %v3404_v41  ;;  %v3457_v21 = vpop.f32.mrf.mxu0  ;;  %v5218_v47 = vpop.permute.xlu1 %1756 }
 0x13f   : > { %6777 = vst [vmem:[#allocation69_spill] sm:$0xff] %v5218_v47 }
 0x140   : > { %v5221_v24 = vadd.f32 %v3406_v29, %v5133_v8  ;;  %v3458_v15 = vpop.f32.mrf.mxu0 }
 0x141   : > { %1366 = vperm.xlu0 %3926, %v4867_v18   ;;  %2446 = vperm.xlu1 %3911, %v5054_v33   ;;  %v3407_v30 = vpop.f32.mrf.mxu1  ;;  %v3459_v28 = vadd.f32 %v3458_v15, %v3457_v21 }
 0x143   : > { %v5228_v10 = vadd.f32 %v3459_v28, %v5111_v51  ;;  %v3408_v6 = vpop.f32.mrf.mxu1 }
 0x144   : > { %v3460_v41 = vpop.f32.mrf.mxu0  ;;  %v3409_v61 = vadd.f32 %v3408_v6, %v3407_v30  ;;  %v6781_v6 = vmov 10  }
 0x145   : > { %1381 = vperm.xlu0 %3926, %v5054_v33   ;;  %2454 = vperm.xlu1 %3911, %v4912_v19  }
 0x146   : > { %v5232_v8 = vpop.permute.xlu1 %2115  ;;  %v3461_v29 = vpop.f32.mrf.mxu0  ;;  %v5235_v60 = vadd.f32 %v3409_v61, %v5152_v58 }
 0x147   : > { %6779 = vst [vmem:[#allocation71_spill] sm:$0xff] %v5232_v8  ;;  %v3410_v34 = vpop.f32.mrf.mxu1  ;;  %v3462_v40 = vadd.f32 %v3461_v29, %v3460_v41  ;;  %v5251_v8 = vpop.permute.xlu0 %2200 }
 0x148   : > { %6783 = vst [vmem:[#allocation74_spill] sm:$0xff] %v5251_v8 }
 0x149   : > { %1391 = vperm.xlu0 %3926, %v4912_v19   ;;  %v5241_v51 = vadd.f32 %v3462_v40, %v5127_v57  ;;  %v3411_v28 = vpop.f32.mrf.mxu1  ;;  %v3463_v21 = vpop.f32.mrf.mxu0  ;;  %3912 = vset.pattern.permute.xlu1 %v6781_v6 }
 0x14a   : > { %v5244_v15 = vpop.permute.xlu1 %2119  ;;  %v3412_v30 = vadd.f32 %v3411_v28, %v3410_v34  ;;  %2547 = vperm.xlu1 %3912, %v4833_v63  }
 0x14b   : > { %6782 = vst [vmem:[#allocation73_spill] sm:$0xff] %v5244_v15  ;;  %v3464_v58 = vpop.f32.mrf.mxu0  ;;  %v3413_v41 = vpop.f32.mrf.mxu1 }
 0x14c   : > { %v5248_v61 = vadd.f32 %v3412_v30, %v5165_v12  ;;  %v3465_v29 = vadd.f32 %v3464_v58, %v3463_v21  ;;  %v5262_v12 = vld [vmem:[%s6665_s1 + $0x50] sm:$0xff]  ;;  %v5274_v8 = vpop.permute.xlu0 %2212 }
 0x14d   : > { %1401 = vperm.xlu0 %3926, %v4984_v59   ;;  %v3414_v57 = vpop.f32.mrf.mxu1  ;;  %6786 = vst [vmem:[#allocation77_spill] sm:$0xff] %v5274_v8 }
 0x14e   : > { %v5254_v40 = vadd.f32 %v3465_v29, %v5138_v2  ;;  %2555 = vperm.xlu1 %3912, %v4851_v50   ;;  %v3415_v34 = vadd.f32 %v3414_v57, %v3413_v41  ;;  %v3466_v28 = vpop.f32.mrf.mxu0 }
 0x14f   : > { %v5257_v15 = vpop.permute.xlu1 %1643 }
 0x150   : > { %6784 = vst [vmem:[#allocation75_spill] sm:$0xff] %v5257_v15  ;;  %v5266_v21 = vadd.f32 %v3415_v34, %v5176_v9  ;;  %v3467_v2 = vpop.f32.mrf.mxu0 }
 0x151   : > { %1411 = vperm.xlu0 %3926, %v5262_v12   ;;  %v3416_v30 = vpop.f32.mrf.mxu1  ;;  %v3468_v58 = vadd.f32 %v3467_v2, %v3466_v28 }
 0x152   : > { %2559 = vperm.xlu1 %3912, %v4884_v26  }
 0x153   : > { %v5269_v29 = vpop.permute.xlu1 %1651  ;;  %v3417_v56 = vpop.f32.mrf.mxu1  ;;  %v5272_v41 = vadd.f32 %v3468_v58, %v5150_v14 }
 0x154   : > { %6785 = vst [vmem:[#allocation76_spill] sm:$0xff] %v5269_v29  ;;  %v3418_v57 = vadd.f32 %v3417_v56, %v3416_v30  ;;  %v3469_v15 = vpop.f32.mrf.mxu0 }
 0x155   : > { %1421 = vperm.xlu0 %3926, %v5121_v25  }
 0x156   : > { %v5278_v9 = vadd.f32 %v3418_v57, %v5189_v1  ;;  %v3419_v34 = vpop.f32.mrf.mxu1  ;;  %v3470_v42 = vpop.f32.mrf.mxu0  ;;  %2567 = vperm.xlu1 %3912, %v4905_v39  }
 0x157   : > { %v5281_v28 = vpop.permute.xlu1 %1655  ;;  %v3471_v2 = vadd.f32 %v3470_v42, %v3469_v15  ;;  %v5291_v57 = vpop.permute.xlu0 %2220  ;;  %v6689_v15 = vmov 8  }
 0x158   : > { %6787 = vst [vmem:[#allocation78_spill] sm:$0xff] %v5278_v9  ;;  %6788 = vst [vmem:[#allocation79_spill] sm:$0xff] %v5281_v28  ;;  %v3420_v29 = vpop.f32.mrf.mxu1  ;;  %v3472_v30 = vpop.f32.mrf.mxu0 }
 0x159   : > { %1436 = vperm.xlu0 %3926, %v5143_v49   ;;  %v5285_v56 = vadd.f32 %v3471_v2, %v5161_v5  ;;  %v3421_v14 = vadd.f32 %v3420_v29, %v3419_v34  ;;  %6791 = vst [vmem:[#allocation82_spill] sm:$0xff] %v5291_v57 }
 0x15a   : > { %2575 = vperm.xlu1 %3912, %v4931_v53   ;;  %v3473_v58 = vpop.f32.mrf.mxu0 }
 0x15b   : > { %6789 = vst [vmem:[#allocation80_spill] sm:$0xff] %v5285_v56  ;;  %v5289_v1 = vadd.f32 %v3421_v14, %v5194_v43  ;;  %v5293_v8 = vpop.f32.mrf.mxu1  ;;  %v3474_v28 = vadd.f32 %v3473_v58, %v3472_v30  ;;  %v5314_v30 = vpop.permute.xlu0 %2232 }
 0x15c   : > { %v5295_v42 = vpop.permute.xlu1 %2014  ;;  %6795 = vst [vmem:[#allocation86_spill] sm:$0xff] %v5314_v30 }
 0x15d   : > { %6790 = vst [vmem:[#allocation81_spill] sm:$0xff] %v5289_v1  ;;  %6792 = vst [vmem:[#allocation83_spill] sm:$0xff] %v5295_v42  ;;  %3929 = vset.pattern.permute.xlu0 %v6689_v15  ;;  %v5300_v5 = vadd.f32 %v3474_v28, %v5172_v16  ;;  %v5302_v29 = vpop.f32.mrf.mxu1  ;;  %v5304_v43 = vpop.f32.mrf.mxu0 }
 0x15e   : > { %2317 = vperm.xlu0 %3929, %v4867_v18   ;;  %3913 = vset.pattern.permute.xlu1 %v6773_v13 }
 0x15f   : > { %6793 = vst [vmem:[#allocation84_spill] sm:$0xff] %v5300_v5  ;;  %2466 = vperm.xlu1 %3913, %v4938_v55   ;;  %v5308_v34 = vpop.f32.mrf.mxu0  ;;  %v5333_v30 = vpop.permute.xlu0 %2244 }
 0x160   : > { %v5310_v2 = vpop.permute.xlu1 %2018  ;;  %v5312_v14 = vpop.f32.mrf.mxu1  ;;  %6797 = vst [vmem:[#allocation88_spill] sm:$0xff] %v5333_v30 }
 0x161   : > { %6794 = vst [vmem:[#allocation85_spill] sm:$0xff] %v5310_v2 }
 0x162   : > { %2329 = vperm.xlu0 %3929, %v5054_v33   ;;  %v5317_v18 = vpop.f32.mrf.mxu0  ;;  %v5319_v16 = vpop.f32.mrf.mxu1  ;;  %v6798_v33 = vmov 11  }
 0x163   : > { %2470 = vperm.xlu1 %3913, %v5262_v12   ;;  %v5353_v4 = vpop.permute.xlu0 %2256 }
 0x164   : > { %v5322_v28 = vpop.f32.mrf.mxu0  ;;  %v5324_v58 = vpop.f32.mrf.mxu1  ;;  %6800 = vst [vmem:[#allocation90_spill] sm:$0xff] %v5353_v4 }
 0x165   : > { %v5326_v15 = vpop.permute.xlu1 %2228 }
 0x166   : > { %6796 = vst [vmem:[#allocation87_spill] sm:$0xff] %v5326_v15  ;;  %2337 = vperm.xlu0 %3929, %v4912_v19   ;;  %v5329_v57 = vpop.f32.mrf.mxu0  ;;  %v5331_v2 = vpop.f32.mrf.mxu1 }
 0x167   : > { %3914 = vset.pattern.permute.xlu1 %v6798_v33  ;;  %v5372_v4 = vpop.permute.xlu0 %1732 }
 0x168   : > { %v5336_v42 = vpop.f32.mrf.mxu0  ;;  %2664 = vperm.xlu1 %3914, %v4833_v63   ;;  %v5339_v3 = vpop.f32.mrf.mxu1  ;;  %6803 = vst [vmem:[#allocation93_spill] sm:$0xff] %v5372_v4 }
 0x169   : > { %v5341_v22 = vpop.permute.xlu1 %2236 }
 0x16a   : > { %6799 = vst [vmem:[#allocation89_spill] sm:$0xff] %v5341_v22  ;;  %2345 = vperm.xlu0 %3929, %v4984_v59   ;;  %v5344_v15 = vpop.f32.mrf.mxu0  ;;  %v5346_v19 = vpop.f32.mrf.mxu1 }
 0x16c   : > { %v5348_v11 = vpop.f32.mrf.mxu0  ;;  %2672 = vperm.xlu1 %3914, %v4851_v50   ;;  %v5351_v30 = vpop.f32.mrf.mxu1 }
 0x16d   : > { %v5355_v38 = vpop.permute.xlu1 %2240 }
 0x16e   : > { %6801 = vst [vmem:[#allocation91_spill] sm:$0xff] %v5355_v38  ;;  %2353 = vperm.xlu0 %3929, %v5262_v12   ;;  %v5360_v22 = vpop.f32.mrf.mxu1 }
 0x16f   : > { %v5358_v63 = vpop.f32.mrf.mxu0 }
 0x170   : > { %2676 = vperm.xlu1 %3914, %v4884_v26  }
 0x171   : > { %v5363_v59 = vpop.f32.mrf.mxu0 }
 0x172   : > { %2361 = vperm.xlu0 %3929, %v5121_v25   ;;  %v5366_v54 = vpop.f32.mrf.mxu1  ;;  %v5368_v50 = vpop.permute.xlu1 %1546 }
 0x173   : > { %6802 = vst [vmem:[#allocation92_spill] sm:$0xff] %v5368_v50  ;;  %v5382_v50 = vpop.permute.xlu0 %1744 }
 0x174   : > { %v5370_v31 = vpop.f32.mrf.mxu1  ;;  %2684 = vperm.xlu1 %3914, %v4905_v39   ;;  %v5375_v38 = vpop.f32.mrf.mxu0  ;;  %6805 = vst [vmem:[#allocation95_spill] sm:$0xff] %v5382_v50 }
 0x176   : > { %2369 = vperm.xlu0 %3929, %v5026_v27   ;;  %v5378_v0 = vpop.permute.xlu1 %1550  ;;  %v3491_v26 = vpop.f32.mrf.mxu0 }
 0x177   : > { %6804 = vst [vmem:[#allocation94_spill] sm:$0xff] %v5378_v0  ;;  %v3552_v46 = vpop.f32.mrf.mxu1 }
 0x178   : > { %2692 = vperm.xlu1 %3914, %v4931_v53   ;;  %v5390_v53 = vpop.permute.xlu0 %1752 }
 0x179   : > { %v3553_v37 = vpop.f32.mrf.mxu1  ;;  %6808 = vst [vmem:[#allocation98_spill] sm:$0xff] %v5390_v53 }
 0x17a   : > { %v3493_v7 = vpop.f32.mrf.mxu0  ;;  %3945 = vset.pattern.permute.xlu0 %v6798_v33 }
 0x17b   : > { %v5384_v47 = vpop.permute.xlu1 %1760 }
 0x17c   : > { %6806 = vst [vmem:[#allocation96_spill] sm:$0xff] %v5384_v47  ;;  %v3494_v35 = vpop.f32.mrf.mxu0  ;;  %3915 = vset.pattern.permute.xlu1 %v6781_v6  ;;  %v3555_v39 = vpop.f32.mrf.mxu1 }
 0x17d   : > { %2583 = vperm.xlu1 %3915, %v4938_v55   ;;  %v5399_v6 = vpop.permute.xlu0 %1764 }
 0x17e   : > { %v3556_v0 = vpop.f32.mrf.mxu1  ;;  %6810 = vst [vmem:[#allocation100_spill] sm:$0xff] %v5399_v6 }
 0x17f   : > { %v3496_v20 = vpop.f32.mrf.mxu0  ;;  %v5388_v36 = vpop.permute.xlu1 %1768 }
 0x180   : > { %6807 = vst [vmem:[#allocation97_spill] sm:$0xff] %v5388_v36 }
 0x181   : > { %v3497_v48 = vpop.f32.mrf.mxu0  ;;  %2587 = vperm.xlu1 %3915, %v5262_v12   ;;  %v3558_v17 = vpop.f32.mrf.mxu1 }
 0x182   : > { %v5412_v5 = vpop.permute.xlu0 %1780 }
 0x183   : > { %v5393_v44 = vpop.permute.xlu1 %1772  ;;  %v3559_v47 = vpop.f32.mrf.mxu1  ;;  %6816 = vst [vmem:[#allocation106_spill] sm:$0xff] %v5412_v5  ;;  %v3542_v5 = vadd.f32 %v5331_v2, %v5324_v58 }
 0x184   : > { %6809 = vst [vmem:[#allocation99_spill] sm:$0xff] %v5393_v44  ;;  %v3499_v50 = vpop.f32.mrf.mxu0 }
 0x185   : > { %3916 = vset.pattern.permute.xlu1 %v6773_v13 }
 0x186   : > { %v3500_v52 = vpop.f32.mrf.mxu0  ;;  %2478 = vperm.xlu1 %3916, %v5121_v25   ;;  %v5397_v4 = vpop.f32.mrf.mxu1  ;;  %v3424_v25 = vadd.f32 %v5302_v29, %v5293_v8 }
 0x188   : > { %v5401_v36 = vpop.permute.xlu1 %2131  ;;  %v3562_v53 = vpop.f32.mrf.mxu1  ;;  %v5430_v29 = vadd.f32 %v3424_v25, %v5206_v62  ;;  %v3489_v25 = vadd.f32 %v5363_v59, %v5358_v63 }
 0x189   : > { %6811 = vst [vmem:[#allocation101_spill] sm:$0xff] %v5401_v36  ;;  %v5403_v1 = vpop.f32.mrf.mxu0  ;;  %v3477_v36 = vadd.f32 %v5308_v34, %v5304_v43  ;;  %v3483_v43 = vadd.f32 %v5336_v42, %v5329_v57  ;;  %v3545_v34 = vadd.f32 %v5346_v19, %v5339_v3  ;;  %v5446_v3 = vpop.permute.xlu0 %2430  ;;  %v3492_v42 = vadd.f32 %v3491_v26, %v5375_v38 }
 0x18a   : > { %6812 = vst [vmem:[#allocation102_spill] sm:$0xff] %v5403_v1  ;;  %2486 = vperm.xlu1 %3916, %v5026_v27   ;;  %v3539_v27 = vadd.f32 %v5319_v16, %v5312_v14  ;;  %v3486_v14 = vadd.f32 %v5348_v11, %v5344_v15  ;;  %v3551_v11 = vadd.f32 %v5370_v31, %v5366_v54 }
 0x18b   : > { %v5406_v9 = vpop.f32.mrf.mxu0  ;;  %v1005_v2 = vadd.f32 %v3477_v36, %v5184_v45  ;;  %v3554_v15 = vadd.f32 %v3553_v37, %v3552_v46  ;;  %v3495_v36 = vadd.f32 %v3494_v35, %v3493_v7  ;;  %v1015_v58 = vadd.f32 %v3483_v43, %v5211_v23  ;;  %v6817_v35 = vld [vmem:[#allocation84_spill] sm:$0xff] }
 0x18c   : > { %6813 = vst [vmem:[#allocation103_spill] sm:$0xff] %v5406_v9  ;;  %v5408_v44 = vpop.f32.mrf.mxu1  ;;  %v5410_v56 = vpop.permute.xlu1 %2135  ;;  %v1120_v62 = vadd.f32 %v3539_v27, %v5228_v10  ;;  %v1125_v27 = vadd.f32 %v3542_v5, %v5241_v51  ;;  %v1020_v19 = vadd.f32 %v3486_v14, %v5221_v24  ;;  %v3498_v31 = vadd.f32 %v3497_v48, %v3496_v20  ;;  %v6818_v20 = vld [vmem:[#allocation80_spill] sm:$0xff] }
 0x18d   : > { %6814 = vst [vmem:[#allocation104_spill] sm:$0xff] %v5408_v44  ;;  %6815 = vst [vmem:[#allocation105_spill] sm:$0xff] %v5410_v56  ;;  %v3480_v56 = vadd.f32 %v5322_v28, %v5317_v18  ;;  %v3548_v18 = vadd.f32 %v5360_v22, %v5351_v30  ;;  %v3557_v30 = vadd.f32 %v3556_v0, %v3555_v39  ;;  %v5482_v39 = vpop.permute.xlu0 %2442 }
 0x18e   : > { %v3565_v13 = vpop.f32.mrf.mxu1  ;;  %v3725_v6 = vpop.f32.mrf.mxu0  ;;  %2490 = vperm.xlu1 %3916, %v5143_v49   ;;  %v3560_v28 = vadd.f32 %v3559_v47, %v3558_v17  ;;  %v1130_v54 = vadd.f32 %v3545_v34, %v5254_v40  ;;  %v1025_v46 = vadd.f32 %v3489_v25, %v5235_v60  ;;  %v3501_v7 = vadd.f32 %v3500_v52, %v3499_v50 }
 0x18f   : > { %v1010_v22 = vadd.f32 %v3480_v56, %v5201_v32  ;;  %v5459_v38 = vadd.f32 %v3725_v6, %v1125_v27  ;;  %v1135_v47 = vadd.f32 %v3548_v18, %v5272_v41  ;;  %v1030_v0 = vadd.f32 %v3492_v42, %v5248_v61  ;;  %v6820_v41 = vld [vmem:[#allocation78_spill] sm:$0xff]  ;;  %v6830_v42 = vld [vmem:[#allocation29_spill] sm:$0xff] }
 0x190   : > { %v5421_v9 = vpop.f32.mrf.mxu1  ;;  %v1264_v44 = vpop.f32.mrf.mxu0  ;;  %v5465_v32 = vadd.f32 %v3495_v36, %v5266_v21  ;;  %v1145_v48 = vadd.f32 %v3554_v15, %v6817_v35  ;;  %v1140_v23 = vadd.f32 %v3551_v11, %v6818_v20  ;;  %v3563_v60 = vadd.f32 %v3562_v53, %v5397_v4  ;;  %6825 = vst [vmem:[#allocation78_spill] sm:$0xff] %v5482_v39  ;;  %v6829_v11 = vld [vmem:[#allocation55_spill] sm:$0xff]  ;;  %v6833_v27 = vld [vmem:[#allocation18_spill] sm:$0xff] }
 0x191   : > { %v5427_v1 = vpop.permute.xlu1 %1659  ;;  %v5470_v52 = vadd.f32 %v1264_v44, %v1120_v62  ;;  %v1155_v40 = vadd.f32 %v3560_v28, %v1010_v22  ;;  %v5475_v56 = vadd.f32 %v3498_v31, %v6820_v41  ;;  %v6821_v61 = vld [vmem:[#allocation102_spill] sm:$0xff]  ;;  %v6826_v44 = vld [vmem:[#allocation81_spill] sm:$0xff]  ;;  %v6827_v34 = vmov 10  }
 0x192   : > { %v3568_v8 = vpop.f32.mrf.mxu1  ;;  %v3728_v16 = vpop.f32.mrf.mxu0  ;;  %3918 = vset.pattern.permute.xlu1 %v6798_v33  ;;  %v5485_v4 = vadd.f32 %v3501_v7, %v6826_v44  ;;  %v1558_v15 = vadd.f32 %v6830_v42, %v5459_v38  ;;  %v1160_v22 = vadd.f32 %v3563_v60, %v1015_v58  ;;  %v6835_v7 = vld [vmem:[#allocation21_spill] sm:$0xff]  ;;  %v6838_v60 = vld [vmem:[#allocation35_spill] sm:$0xff]  ;;  %v6842_v42 = vld [vmem:[#allocation98_spill] sm:$0xff] }
 0x193   : > { %2700 = vperm.xlu1 %3918, %v4938_v55   ;;  %v6822_v21 = vld [vmem:[#allocation103_spill] sm:$0xff]  ;;  %v5480_v50 = vadd.f32 %v3728_v16, %v1135_v47  ;;  %v1557_v31 = vadd.f32 %v6833_v27, %v5470_v52 }
 0x194   : > { %v3570_v57 = vpop.f32.mrf.mxu1  ;;  %v1274_v45 = vpop.f32.mrf.mxu0  ;;  %v3504_v5 = vadd.f32 %v6822_v21, %v6821_v61  ;;  %v6823_v63 = vld [vmem:[#allocation104_spill] sm:$0xff]  ;;  %v6839_v61 = vld [vmem:[#allocation67_spill] sm:$0xff] }
 0x195   : > { %v5453_v10 = vpop.permute.xlu1 %1667  ;;  %v3566_v59 = vadd.f32 %v3565_v13, %v6823_v63  ;;  %6824 = vst [vmem:[#allocation80_spill] sm:$0xff] %v5480_v50  ;;  %v5487_v53 = vadd.f32 %v1274_v45, %v1130_v54  ;;  %v3569_v13 = vadd.f32 %v3568_v8, %v5421_v9  ;;  %v6834_v54 = vld [vmem:[#allocation66_spill] sm:$0xff]  ;;  %v1560_v47 = vadd.f32 %v6835_v7, %v5480_v50 }
 0x196   : > { %v3571_v55 = vpop.f32.mrf.mxu1  ;;  %v3731_v37 = vpop.f32.mrf.mxu0  ;;  %v1050_v9 = vadd.f32 %v3504_v5, %v5430_v29 }
 0x197   : > { %2704 = vperm.xlu1 %3918, %v5262_v12   ;;  %v1150_v12 = vadd.f32 %v3557_v30, %v1005_v2  ;;  %v6828_v2 = vld [vmem:[#allocation93_spill] sm:$0xff]  ;;  %v3572_v16 = vadd.f32 %v3571_v55, %v3570_v57  ;;  %v5495_v25 = vadd.f32 %v3731_v37, %v1145_v48  ;;  %v6832_v30 = vld [vmem:[#allocation62_spill] sm:$0xff]  ;;  %v1165_v8 = vadd.f32 %v3566_v59, %v1020_v19  ;;  %v6836_v48 = vld [vmem:[#allocation64_spill] sm:$0xff]  ;;  %v5528_v5 = vpop.permute.xlu0 %2450 }
 0x198   : > { %v3573_v17 = vpop.f32.mrf.mxu1  ;;  %v1284_v24 = vpop.f32.mrf.mxu0  ;;  %v1792_v18 = vadd.f32 %v6828_v2, %v5459_v38  ;;  %v1791_v28 = vadd.f32 %v6832_v30, %v5470_v52  ;;  %v1794_v37 = vadd.f32 %v6834_v54, %v5480_v50  ;;  %v1793_v20 = vadd.f32 %v6836_v48, %v5487_v53  ;;  %v6845_v54 = vld [vmem:[#allocation23_spill] sm:$0xff] }
 0x199   : > { %v5472_v51 = vpop.permute.xlu1 %1671  ;;  %v5489_v43 = vadd.f32 %v1284_v24, %v1140_v23  ;;  %v6837_v23 = vld [vmem:[#allocation95_spill] sm:$0xff]  ;;  %v1170_v41 = vadd.f32 %v3569_v13, %v1025_v46  ;;  %v1796_v21 = vadd.f32 %v6839_v61, %v5495_v25  ;;  %v5536_v2 = vsel %vm1455_vm0, %v1557_v31, -inf  ;;  %v6846_v61 = vld [vmem:[#allocation24_spill] sm:$0xff] }
 0x19a   : > { %6819 = vst [vmem:[#allocation84_spill] sm:$0xff] %v5472_v51  ;;  %v3574_v6 = vpop.f32.mrf.mxu1  ;;  %v3734_v26 = vpop.f32.mrf.mxu0  ;;  %v5520_v29 = vsel %vm1455_vm0, %v1792_v18, -inf  ;;  %v5541_v13 = vsel %vm1455_vm0, %v1794_v37, -inf  ;;  %v1562_v37 = vadd.f32 %v6845_v54, %v5495_v25 }
 0x19b   : > { %3919 = vset.pattern.permute.xlu1 %v6827_v34  ;;  %v5500_v36 = vadd.f32 %v3734_v26, %v1155_v40  ;;  %v1795_v24 = vadd.f32 %v6837_v23, %v5489_v43  ;;  %v1175_v40 = vadd.f32 %v3572_v16, %v1030_v0  ;;  %v3575_v63 = vadd.f32 %v3574_v6, %v3573_v17  ;;  %v6840_v26 = vld [vmem:[#allocation69_spill] sm:$0xff]  ;;  %v6841_v16 = vld [vmem:[#allocation19_spill] sm:$0xff] }
 0x19c   : > { %v3576_v14 = vpop.f32.mrf.mxu1  ;;  %v1294_v62 = vpop.f32.mrf.mxu0  ;;  %2595 = vperm.xlu1 %3919, %v6829_v11   ;;  %v5533_v34 = vsel %vm1455_vm0, %v1791_v28, -inf  ;;  %v1559_v17 = vadd.f32 %v6841_v16, %v5487_v53  ;;  %v5546_v6 = vsel %vm1455_vm0, %v1560_v47, -inf  ;;  %v5562_v27 = vsel %vm1455_vm0, %v1796_v21, -inf }
 0x19d   : > { %6831 = vst [vmem:[#allocation102_spill] sm:$0xff] %v5500_v36  ;;  %v5513_v35 = vadd.f32 %v1294_v62, %v1150_v12  ;;  %v5526_v12 = vsel %vm1455_vm0, %v1558_v15, -inf  ;;  %v1798_v44 = vadd.f32 %v6840_v26, %v5500_v36  ;;  %v1564_v21 = vadd.f32 %v6846_v61, %v5500_v36  ;;  %v5579_v26 = vpop.permute.xlu0 %2458 }
 0x19e   : > { %v3577_v45 = vpop.f32.mrf.mxu1  ;;  %v3737_v57 = vpop.f32.mrf.mxu0  ;;  %6847 = vst [vmem:[#allocation104_spill] sm:$0xff] %v5579_v26 }
 0x19f   : > { %v5507_v55 = vpop.permute.xlu1 %2248  ;;  %v3578_v46 = vadd.f32 %v3577_v45, %v3576_v14  ;;  %v1797_v15 = vadd.f32 %v6842_v42, %v5513_v35  ;;  %v5553_v14 = vsel %vm1455_vm0, %v1793_v20, -inf  ;;  %v5556_v45 = vsel %vm1455_vm0, %v1795_v24, -inf }
 0x1a0   : > { %v3579_v58 = vpop.f32.mrf.mxu1  ;;  %v1304_v19 = vpop.f32.mrf.mxu0  ;;  %2603 = vperm.xlu1 %3919, %v6838_v60   ;;  %v5568_v7 = vadd.f32 %v3737_v57, %v1165_v8  ;;  %v1180_v20 = vadd.f32 %v3575_v63, %v5465_v32  ;;  %v5572_v23 = vsel %vm1455_vm0, %v1798_v44, -inf  ;;  %v6848_v32 = vld [vmem:[#allocation96_spill] sm:$0xff] }
 0x1a1   : > { %v5548_v62 = vadd.f32 %v1304_v19, %v1160_v22  ;;  %v6844_v22 = vld [vmem:[#allocation32_spill] sm:$0xff]  ;;  %v5586_v63 = vsel %vm1455_vm0, %v1797_v15, -inf  ;;  %v5601_v15 = vld [vmem:[%s6665_s1 + $0x68] sm:$0xff] }
 0x1a2   : > { %v3580_v59 = vpop.f32.mrf.mxu1  ;;  %v3740_v0 = vpop.f32.mrf.mxu0  ;;  %v1561_v31 = vadd.f32 %v6844_v22, %v5489_v43  ;;  %v1575_v22 = vsel %vm1455_vm0, %v1559_v17, -inf }
 0x1a3   : > { %v5538_v18 = vpop.permute.xlu1 %2252  ;;  %v5558_v30 = vadd.f32 %v3740_v0, %v1175_v40  ;;  %v3581_v47 = vadd.f32 %v3580_v59, %v3579_v58  ;;  %v1799_v58 = vadd.f32 %v6848_v32, %v5548_v62  ;;  %v6850_v0 = vld [vmem:[#allocation99_spill] sm:$0xff] }
 0x1a4   : > { %v3582_v11 = vpop.f32.mrf.mxu1  ;;  %v1314_v28 = vpop.f32.mrf.mxu0  ;;  %2607 = vperm.xlu1 %3919, %v5143_v49   ;;  %v1185_v49 = vadd.f32 %v3578_v46, %v5475_v56  ;;  %v6849_v56 = vld [vmem:[#allocation34_spill] sm:$0xff] }
 0x1a5   : > { %6843 = vst [vmem:[#allocation103_spill] sm:$0xff] %v5558_v30  ;;  %v5581_v8 = vadd.f32 %v1314_v28, %v1170_v41  ;;  %v1563_v59 = vadd.f32 %v6849_v56, %v5513_v35  ;;  %v1802_v16 = vadd.f32 %v6850_v0, %v5558_v30  ;;  %v1818_v41 = vmax.f32 %v5541_v13, %v5572_v23  ;;  %v6853_v23 = vld [vmem:[#allocation58_spill] sm:$0xff]  ;;  %v6856_v0 = vld [vmem:[#allocation39_spill] sm:$0xff] }
 0x1a6   : > { %v3583_v48 = vpop.f32.mrf.mxu1  ;;  %v3743_v19 = vpop.f32.mrf.mxu0 }
 0x1a7   : > { %v3584_v24 = vadd.f32 %v3583_v48, %v3582_v11  ;;  %v1777_v57 = vpop.permute.xlu1 %1776  ;;  %v1577_v11 = vsel %vm1455_vm0, %v1561_v31, -inf  ;;  %v5608_v54 = vadd.f32 %v3743_v19, %v1185_v49  ;;  %v1816_v31 = vmax.f32 %v5553_v14, %v5586_v63  ;;  %v6852_v48 = vld [vmem:[#allocation37_spill] sm:$0xff] }
 0x1a8   : > { %v1324_v44 = vpop.f32.mrf.mxu0  ;;  %3921 = vset.pattern.permute.xlu1 %v6798_v33  ;;  %v1190_v33 = vadd.f32 %v3581_v47, %v5485_v4  ;;  %v1819_v4 = vsel %vm1455_vm0, %v1799_v58, -inf  ;;  %v6854_v47 = vld [vmem:[#allocation60_spill] sm:$0xff]  ;;  %v1578_v17 = vmax.f32 %v5536_v2, %v1577_v11  ;;  %v1579_v49 = vsel %vm1455_vm0, %v1562_v37, -inf  ;;  %v6855_v14 = vld [vmem:[#allocation97_spill] sm:$0xff] }
 0x1a9   : > { %v1195_v46 = vadd.f32 %v3584_v24, %v1050_v9  ;;  %v5596_v42 = vadd.f32 %v1324_v44, %v1180_v20  ;;  %2716 = vperm.xlu1 %3921, %v5601_v15   ;;  %v6851_v9 = vld [vmem:[#allocation100_spill] sm:$0xff]  ;;  %v1565_v20 = vadd.f32 %v6852_v48, %v5548_v62  ;;  %v1566_v24 = vadd.f32 %v6853_v23, %v5568_v7  ;;  %v5628_v48 = vpop.permute.xlu0 %2462  ;;  %v6858_v2 = vld [vmem:[#allocation41_spill] sm:$0xff] }
 0x1aa   : > { %v1800_v28 = vadd.f32 %v6851_v9, %v5568_v7  ;;  %v3746_v13 = vpop.f32.mrf.mxu0  ;;  %v1567_v32 = vadd.f32 %v6854_v47, %v5581_v8  ;;  %v1801_v63 = vadd.f32 %v6855_v14, %v5581_v8  ;;  %v1825_v44 = vsel %vm1455_vm0, %v1802_v16, -inf  ;;  %6857 = vst [vmem:[#allocation81_spill] sm:$0xff] %v5628_v48  ;;  %v6860_v16 = vld [vmem:[#allocation92_spill] sm:$0xff] }
 0x1ab   : > { %v1785_v61 = vpop.permute.xlu1 %1784  ;;  %v5621_v19 = vadd.f32 %v3746_v13, %v1195_v46  ;;  %v1568_v9 = vadd.f32 %v6856_v0, %v5558_v30  ;;  %v1569_v37 = vadd.f32 %v6858_v2, %v5596_v42  ;;  %v1581_v46 = vsel %vm1455_vm0, %v1563_v59, -inf  ;;  %v6859_v13 = vld [vmem:[#allocation106_spill] sm:$0xff] }
 0x1ac   : > { %v1334_v56 = vpop.f32.mrf.mxu0  ;;  %v1583_v11 = vsel %vm1455_vm0, %v1564_v21, -inf  ;;  %v1804_v23 = vadd.f32 %v6859_v13, %v5608_v54  ;;  %v1570_v47 = vadd.f32 %v6860_v16, %v5608_v54  ;;  %v1580_v14 = vmax.f32 %v5526_v12, %v1579_v49  ;;  %v6861_v0 = vld [vmem:[#allocation94_spill] sm:$0xff]  ;;  %v6862_v13 = vld [vmem:[#allocation43_spill] sm:$0xff] }
 0x1ad   : > { %v5630_v58 = vadd.f32 %v1334_v56, %v1190_v33  ;;  %2720 = vperm.xlu1 %3921, %v6838_v60   ;;  %v1585_v33 = vsel %vm1455_vm0, %v1565_v20, -inf  ;;  %v1803_v60 = vadd.f32 %v1777_v57, %v5596_v42  ;;  %v1587_v59 = vsel %vm1455_vm0, %v1566_v24, -inf }
 0x1ae   : > { %v1589_v21 = vsel %vm1455_vm0, %v1567_v32, -inf  ;;  %v1572_v26 = vadd.f32 %v6862_v13, %v5621_v19  ;;  %v1582_v16 = vmax.f32 %v1575_v22, %v1581_v46  ;;  %v1584_v12 = vmax.f32 %v5546_v6, %v1583_v11  ;;  %v5660_v32 = vld [vmem:[%s6665_s1] sm:$0xff]  ;;  %v5664_v46 = vpop.permute.xlu0 %2474 }
 0x1af   : > { %v1789_v56 = vpop.permute.xlu1 %1788  ;;  %v1571_v2 = vadd.f32 %v6861_v0, %v5630_v58  ;;  %v1805_v20 = vadd.f32 %v1785_v61, %v5630_v58  ;;  %v6863_v49 = vmov 4   ;;  %v1586_v57 = vmax.f32 %v1578_v17, %v1585_v33  ;;  %6864 = vst [vmem:[#allocation93_spill] sm:$0xff] %v5664_v46 }
 0x1b0   : > { %v1806_v40 = vadd.f32 %v1789_v56, %v5621_v19  ;;  %v1591_v39 = vsel %vm1455_vm0, %v1568_v9, -inf  ;;  %v1593_v0 = vsel %vm1455_vm0, %v1569_v37, -inf  ;;  %v1823_v24 = vsel %vm1455_vm0, %v1801_v63, -inf }
 0x1b1   : > { %3922 = vset.pattern.permute.xlu1 %v6863_v49  ;;  %v1588_v22 = vmax.f32 %v1580_v14, %v1587_v59  ;;  %v1590_v6 = vmax.f32 %v1582_v16, %v1589_v21  ;;  %v1595_v61 = vsel %vm1455_vm0, %v1570_v47, -inf  ;;  %v1592_v9 = vmax.f32 %v1584_v12, %v1591_v39 }
 0x1b2   : > { %1845 = vperm.xlu1 %3922, %v5660_v32   ;;  %v1833_v17 = vsel %vm1455_vm0, %v1806_v40, -inf  ;;  %v1594_v11 = vmax.f32 %v1586_v57, %v1593_v0  ;;  %v1597_v37 = vsel %vm1455_vm0, %v1571_v2, -inf  ;;  %v1821_v63 = vsel %vm1455_vm0, %v1800_v28, -inf  ;;  %v6867_v57 = vld [vmem:[#allocation11_spill] sm:$0xff] }
 0x1b3   : > { %v1826_v33 = vmax.f32 %v1818_v41, %v1825_v44  ;;  %v1598_v13 = vmax.f32 %v1590_v6, %v1597_v37  ;;  %v1599_v48 = vsel %vm1455_vm0, %v1572_v26, -inf  ;;  %v1827_v14 = vsel %vm1455_vm0, %v1803_v60, -inf  ;;  %v5682_v44 = vld [vmem:[%s6665_s1 + $0x10] sm:$0xff] }
 0x1b4   : > { %v5669_v56 = vpop.permute.xlu1 %2434  ;;  %v1831_v47 = vsel %vm1455_vm0, %v1805_v20, -inf  ;;  %v1596_v59 = vmax.f32 %v1588_v22, %v1595_v61  ;;  %v1600_v21 = vmax.f32 %v1592_v9, %v1599_v48  ;;  %v1814_v39 = vmax.f32 %v5520_v29, %v5562_v27  ;;  %v5693_v20 = vld [vmem:[%s6665_s1 + $0x18] sm:$0xff] }
 0x1b5   : > { %v6865_v40 = vmax.f32 %v5533_v34, %v5556_v45  ;;  %v1824_v28 = vmax.f32 %v1816_v31, %v1823_v24  ;;  %v1834_v41 = vmax.f32 %v1826_v33, %v1833_v17  ;;  %v1829_v26 = vsel %vm1455_vm0, %v1804_v23, -inf  ;;  %v5688_v34 = vpop.permute.xlu0 %2482  ;;  %v6868_v24 = vld [vmem:[#allocation14_spill] sm:$0xff] }
 0x1b6   : > { %1853 = vperm.xlu1 %3922, %v5682_v44   ;;  %v1601_v60 = vmax.f32 %v1594_v11, %v1596_v59  ;;  %v1602_v48 = vmax.f32 %v1598_v13, %v1600_v21  ;;  %v1822_v16 = vmax.f32 %v1814_v39, %v1821_v63  ;;  %6866 = vst [vmem:[#allocation55_spill] sm:$0xff] %v5688_v34  ;;  %v6869_v17 = vld [vmem:[#allocation10_spill] sm:$0xff]  ;;  %v6870_v11 = vld [vmem:[#allocation15_spill] sm:$0xff]  ;;  %v6871_v63 = vld [vmem:[#allocation16_spill] sm:$0xff] }
 0x1b7   : > { %v1820_v2 = vmax.f32 %v6865_v40, %v1819_v4  ;;  %v1832_v29 = vmax.f32 %v1824_v28, %v1831_v47  ;;  %v2026_v0 = vadd.f32 %v6867_v57, %v5459_v38  ;;  %v2029_v22 = vadd.f32 %v6868_v24, %v5489_v43  ;;  %v6873_v59 = vld [vmem:[#allocation17_spill] sm:$0xff]  ;;  %v6874_v39 = vld [vmem:[#allocation20_spill] sm:$0xff] }
 0x1b8   : > { %v5686_v27 = vpop.permute.xlu1 %2438  ;;  %v1603_v45 = vmax.f32 %v1601_v60, %v1602_v48  ;;  %v1830_v31 = vmax.f32 %v1822_v16, %v1829_v26  ;;  %v2025_v9 = vadd.f32 %v6869_v17, %v5470_v52  ;;  %v2030_v37 = vadd.f32 %v6870_v11, %v5495_v25  ;;  %v5717_v28 = vld [vmem:[%s6665_s1 + $0x28] sm:$0xff]  ;;  %v6877_v60 = vld [vmem:[#allocation44_spill] sm:$0xff]  ;;  %v6882_v17 = vld [vmem:[#allocation83_spill] sm:$0xff] }
 0x1b9   : > { %v1828_v12 = vmax.f32 %v1820_v2, %v1827_v14  ;;  %v1836_v4 = vmax.f32 %v1832_v29, %v1834_v41  ;;  %v2031_v33 = vadd.f32 %v6871_v63, %v5513_v35  ;;  %v6872_v14 = vld [vmem:[#allocation12_spill] sm:$0xff]  ;;  %v2032_v21 = vadd.f32 %v6873_v59, %v5500_v36  ;;  %6875 = vst [vmem:[#allocation29_spill] sm:$0xff] %v5717_v28  ;;  %v6876_v41 = vld [vmem:[#allocation13_spill] sm:$0xff]  ;;  %v6878_v16 = vld [vmem:[#allocation46_spill] sm:$0xff]  ;;  %v5726_v29 = vpop.permute.xlu0 %2551 }
 0x1ba   : > { %1857 = vperm.xlu1 %3922, %v5693_v20   ;;  %v1604_v23 = vrot.slane %v1603_v45, 4  ;;  %v2028_v47 = vadd.f32 %v6872_v14, %v5480_v50  ;;  %v2033_v40 = vadd.f32 %v6874_v39, %v5548_v62  ;;  %v2027_v26 = vadd.f32 %v6876_v41, %v5487_v53  ;;  %6879 = vst [vmem:[#allocation62_spill] sm:$0xff] %v5726_v29  ;;  %v6883_v63 = vld [vmem:[#allocation85_spill] sm:$0xff]  ;;  %v6884_v41 = vld [vmem:[#allocation27_spill] sm:$0xff] }
 0x1bb   : > { %v1835_v6 = vmax.f32 %v1828_v12, %v1830_v31  ;;  %v2034_v48 = vadd.f32 %v6877_v60, %v5568_v7  ;;  %v2035_v12 = vadd.f32 %v6878_v16, %v5581_v8  ;;  %v6880_v31 = vld [vmem:[#allocation22_spill] sm:$0xff]  ;;  %v2045_v24 = vsel %vm1455_vm0, %v2029_v22, -inf }
 0x1bc   : > { %v5700_v61 = vpop.permute.xlu1 %2446  ;;  %v1605_v13 = vmax.f32 %v1603_v45, %v1604_v23  ;;  %v6881_v23 = vld [vmem:[#allocation25_spill] sm:$0xff]  ;;  %v2038_v11 = vadd.f32 %v6882_v17, %v5608_v54  ;;  %v2039_v14 = vadd.f32 %v6883_v63, %v5630_v58  ;;  %v2047_v59 = vsel %vm1455_vm0, %v2030_v37, -inf }
 0x1bd   : > { %v1837_v2 = vmax.f32 %v1835_v6, %v1836_v4  ;;  %v2036_v4 = vadd.f32 %v6880_v31, %v5558_v30  ;;  %v2037_v57 = vadd.f32 %v6881_v23, %v5596_v42  ;;  %v2049_v39 = vsel %vm1455_vm0, %v2031_v33, -inf  ;;  %v5749_v23 = vld [vmem:[%s6665_s1 + $0x38] sm:$0xff]  ;;  %v5758_v51 = vpop.permute.xlu0 %2563 }
 0x1be   : > { %1865 = vperm.xlu1 %3922, %v5717_v28   ;;  %v1606_v45 = vrot.slane %v1605_v13, 2  ;;  %v2040_v60 = vadd.f32 %v6884_v41, %v5621_v19  ;;  %v2041_v16 = vsel %vm1455_vm0, %v2025_v9, -inf  ;;  %v2051_v31 = vsel %vm1455_vm0, %v2032_v21, -inf  ;;  %6885 = vst [vmem:[#allocation18_spill] sm:$0xff] %v5749_v23  ;;  %6886 = vst [vmem:[#allocation66_spill] sm:$0xff] %v5758_v51 }
 0x1bf   : > { %v2053_v22 = vsel %vm1455_vm0, %v2033_v40, -inf  ;;  %v2042_v37 = vsel %vm1455_vm0, %v2026_v0, -inf  ;;  %v2043_v33 = vsel %vm1455_vm0, %v2027_v26, -inf  ;;  %v2046_v17 = vmax.f32 %v2041_v16, %v2045_v24 }
 0x1c0   : > { %v5733_v6 = vpop.permute.xlu1 %2454  ;;  %v2055_v63 = vsel %vm1455_vm0, %v2034_v48, -inf  ;;  %v1607_v41 = vmax.f32 %v1605_v13, %v1606_v45  ;;  %v2044_v9 = vsel %vm1455_vm0, %v2028_v47, -inf  ;;  %v2048_v21 = vmax.f32 %v2042_v37, %v2047_v59  ;;  %v5767_v45 = vld [vmem:[%s6665_s1 + $0x48] sm:$0xff] }
 0x1c1   : > { %v2050_v29 = vmax.f32 %v2043_v33, %v2049_v39  ;;  %v2052_v40 = vmax.f32 %v2044_v9, %v2051_v31  ;;  %v2054_v46 = vmax.f32 %v2046_v17, %v2053_v22  ;;  %v2057_v34 = vsel %vm1455_vm0, %v2035_v12, -inf  ;;  %v5780_v31 = vpop.permute.xlu0 %2571  ;;  %v6892_v17 = vld [vmem:[#allocation48_spill] sm:$0xff]  ;;  %v6893_v9 = vld [vmem:[#allocation50_spill] sm:$0xff] }
 0x1c2   : > { %1873 = vperm.xlu1 %3922, %v5749_v23   ;;  %v2059_v28 = vsel %vm1455_vm0, %v2036_v4, -inf  ;;  %v2056_v0 = vmax.f32 %v2048_v21, %v2055_v63  ;;  %v2061_v26 = vsel %vm1455_vm0, %v2037_v57, -inf  ;;  %v2063_v47 = vsel %vm1455_vm0, %v2038_v11, -inf  ;;  %v5777_v11 = vld [vmem:[%s6665_s1 + $0x58] sm:$0xff]  ;;  %6890 = vst [vmem:[#allocation35_spill] sm:$0xff] %v5780_v31 }
 0x1c3   : > { %v2058_v24 = vmax.f32 %v2050_v29, %v2057_v34  ;;  %v2060_v48 = vmax.f32 %v2052_v40, %v2059_v28  ;;  %v2062_v13 = vmax.f32 %v2054_v46, %v2061_v26  ;;  %v1838_v12 = vrot.slane %v1837_v2, 4  ;;  %6889 = vst [vmem:[#allocation95_spill] sm:$0xff] %v5777_v11  ;;  %v6894_v40 = vld [vmem:[#allocation52_spill] sm:$0xff]  ;;  %v6895_v26 = vld [vmem:[#allocation77_spill] sm:$0xff] }
 0x1c4   : > { %v2065_v4 = vsel %vm1455_vm0, %v2039_v14, -inf  ;;  %v2067_v59 = vsel %vm1455_vm0, %v2040_v60, -inf  ;;  %v1608_v39 = vrot.slane %v1607_v41, 1  ;;  %v2064_v16 = vmax.f32 %v2056_v0, %v2063_v47  ;;  %v6891_v60 = vld [vmem:[#allocation74_spill] sm:$0xff] }
 0x1c5   : > { %v5760_v23 = vpop.permute.xlu1 %2547  ;;  %v2066_v57 = vmax.f32 %v2058_v24, %v2065_v4  ;;  %v2068_v34 = vmax.f32 %v2060_v48, %v2067_v59  ;;  %v5782_v14 = vmax.f32 %v1837_v2, %v1838_v12  ;;  %v2260_v22 = vadd.f32 %v6891_v60, %v5459_v38  ;;  %v6896_v2 = vld [vmem:[#allocation54_spill] sm:$0xff]  ;;  %v6898_v4 = vld [vmem:[#allocation56_spill] sm:$0xff]  ;;  %v5821_v31 = vpop.permute.xlu0 %2579 }
 0x1c6   : > { %6887 = vst [vmem:[#allocation21_spill] sm:$0xff] %v5760_v23  ;;  %1881 = vperm.xlu1 %3922, %v5767_v45   ;;  %v2069_v46 = vmax.f32 %v2062_v13, %v2064_v16  ;;  %v5786_v37 = vmax.f32 %v1607_v41, %v1608_v39  ;;  %v2259_v63 = vadd.f32 %v6892_v17, %v5470_v52  ;;  %v6897_v13 = vld [vmem:[#allocation82_spill] sm:$0xff]  ;;  %v6899_v39 = vld [vmem:[#allocation87_spill] sm:$0xff]  ;;  %6906 = vst [vmem:[#allocation67_spill] sm:$0xff] %v5821_v31 }
 0x1c7   : > { %v2070_v29 = vmax.f32 %v2066_v57, %v2068_v34  ;;  %v2261_v21 = vadd.f32 %v6893_v9, %v5487_v53  ;;  %v2262_v0 = vadd.f32 %v6894_v40, %v5480_v50  ;;  %v2263_v24 = vadd.f32 %v6895_v26, %v5489_v43  ;;  %v6900_v57 = vld [vmem:[#allocation86_spill] sm:$0xff]  ;;  %v6903_v17 = vld [vmem:[#allocation91_spill] sm:$0xff]  ;;  %v6904_v40 = vld [vmem:[#allocation88_spill] sm:$0xff] }
 0x1c8   : > { %v2264_v48 = vadd.f32 %v6896_v2, %v5495_v25  ;;  %v2265_v41 = vadd.f32 %v6897_v13, %v5513_v35  ;;  %v2266_v59 = vadd.f32 %v6898_v4, %v5500_v36  ;;  %v2267_v16 = vadd.f32 %v6899_v39, %v5548_v62  ;;  %v6905_v39 = vld [vmem:[#allocation90_spill] sm:$0xff] }
 0x1c9   : > { %v5772_v28 = vpop.permute.xlu1 %2555  ;;  %v2071_v33 = vmax.f32 %v2069_v46, %v2070_v29  ;;  %v2268_v34 = vadd.f32 %v6900_v57, %v5568_v7  ;;  %v6901_v46 = vmov 0   ;;  %v6902_v29 = vld [vmem:[#allocation89_spill] sm:$0xff]  ;;  %v2270_v9 = vadd.f32 %v6903_v17, %v5558_v30 }
 0x1ca   : > { %6888 = vst [vmem:[#allocation64_spill] sm:$0xff] %v5772_v28  ;;  %1889 = vperm.xlu1 %3922, %v5777_v11   ;;  %v2269_v60 = vadd.f32 %v6902_v29, %v5581_v8  ;;  %v2271_v26 = vadd.f32 %v6904_v40, %v5596_v42  ;;  %v2272_v2 = vadd.f32 %v5507_v55, %v5608_v54  ;;  %v2275_v29 = vsel %vm1455_vm0, %v2259_v63, -inf }
 0x1cb   : > { %v2072_v12 = vrot.slane %v2071_v33, 4  ;;  %v2273_v4 = vadd.f32 %v5538_v18, %v5630_v58  ;;  %v2274_v57 = vadd.f32 %v6905_v39, %v5621_v19  ;;  %v2276_v17 = vsel %vm1455_vm0, %v2260_v22, -inf }
 0x1cc   : > { %v2277_v40 = vsel %vm1455_vm0, %v2261_v21, -inf  ;;  %v2278_v28 = vsel %vm1455_vm0, %v2262_v0, -inf  ;;  %v2279_v55 = vsel %vm1455_vm0, %v2263_v24, -inf  ;;  %v2281_v18 = vsel %vm1455_vm0, %v2264_v48, -inf }
 0x1cd   : > { %v2560_v47 = vpop.permute.xlu1 %2559  ;;  %v2073_v13 = vmax.f32 %v2071_v33, %v2072_v12  ;;  %v2280_v12 = vmax.f32 %v2275_v29, %v2279_v55  ;;  %v2283_v39 = vsel %vm1455_vm0, %v2265_v41, -inf  ;;  %v2282_v23 = vmax.f32 %v2276_v17, %v2281_v18  ;;  %v3968_v29 = vld [vmem:[%s6665_s1 + $0x60] sm:$0xff] }
 0x1ce   : > { %3924 = vset.pattern.permute.xlu1 %v6901_v46  ;;  %v2284_v63 = vmax.f32 %v2277_v40, %v2283_v39  ;;  %v2285_v31 = vsel %vm1455_vm0, %v2266_v59, -inf  ;;  %v2287_v22 = vsel %vm1455_vm0, %v2267_v16, -inf  ;;  %v2289_v24 = vsel %vm1455_vm0, %v2268_v34, -inf }
 0x1cf   : > { %1416 = vperm.xlu1 %3924, %v5777_v11   ;;  %v2074_v33 = vrot.slane %v2073_v13, 2  ;;  %v2286_v0 = vmax.f32 %v2278_v28, %v2285_v31  ;;  %v2288_v11 = vmax.f32 %v2280_v12, %v2287_v22  ;;  %v2290_v48 = vmax.f32 %v2282_v23, %v2289_v24  ;;  %v5841_v31 = vpop.permute.xlu0 %2591 }
 0x1d0   : > { %v2291_v41 = vsel %vm1455_vm0, %v2269_v60, -inf  ;;  %v2293_v17 = vsel %vm1455_vm0, %v2270_v9, -inf  ;;  %v2295_v59 = vsel %vm1455_vm0, %v2271_v26, -inf  ;;  %6907 = vst [vmem:[#allocation69_spill] sm:$0xff] %v5841_v31  ;;  %v2297_v34 = vsel %vm1455_vm0, %v2272_v2, -inf  ;;  %v3969_v9 = vld [vmem:[%s6665_s1 + $0x70] sm:$0xff] }
 0x1d1   : > { %v5827_v51 = vpop.permute.xlu1 %2567  ;;  %v2075_v21 = vmax.f32 %v2073_v13, %v2074_v33  ;;  %v2294_v13 = vmax.f32 %v2286_v0, %v2293_v17  ;;  %v2296_v28 = vmax.f32 %v2288_v11, %v2295_v59  ;;  %v2299_v55 = vsel %vm1455_vm0, %v2273_v4, -inf  ;;  %v5859_v0 = vld [vmem:[%s6665_s1 + $0x78] sm:$0xff] }
 0x1d2   : > { %v2301_v33 = vsel %vm1455_vm0, %v2274_v57, -inf  ;;  %v2298_v12 = vmax.f32 %v2290_v48, %v2297_v34  ;;  %v1840_v26 = vrot.slane %v5782_v14, 2  ;;  %v2613_v4 = vadd.f32 %v2560_v47, %v5480_v50 }
 0x1d3   : > { %3925 = vset.pattern.permute.xlu1 %v6863_v49  ;;  %v2076_v40 = vrot.slane %v2075_v21, 1  ;;  %v2292_v49 = vmax.f32 %v2284_v63, %v2291_v41  ;;  %v2302_v18 = vmax.f32 %v2294_v13, %v2301_v33  ;;  %v5853_v22 = vpop.permute.xlu0 %2599  ;;  %v2494_v13 = vadd.f32 %v5669_v56, %v5459_v38 }
 0x1d4   : > { %1893 = vperm.xlu1 %3925, %v3968_v29   ;;  %v2303_v39 = vmax.f32 %v2296_v28, %v2298_v12  ;;  %v5864_v47 = vsel %vm1455_vm0, %v2613_v4, -inf  ;;  %v2497_v28 = vadd.f32 %v5700_v61, %v5489_v43  ;;  %v2499_v56 = vadd.f32 %v5733_v6, %v5513_v35 }
 0x1d5   : > { %v2576_v16 = vpop.permute.xlu1 %2575  ;;  %v2077_v23 = vmax.f32 %v2075_v21, %v2076_v40  ;;  %v2300_v60 = vmax.f32 %v2292_v49, %v2299_v55  ;;  %6908 = vst [vmem:[#allocation19_spill] sm:$0xff] %v5864_v47 }
 0x1d6   : > { %v2617_v21 = vadd.f32 %v2576_v16, %v5500_v36  ;;  %v5895_v61 = vsel %vm1455_vm0, %v2497_v28, -inf }
 0x1d7   : > { %v3930_v11 = vpack.i.bf16 %v5786_v37, %v2077_v23  ;;  %v2304_v63 = vmax.f32 %v2300_v60, %v2302_v18  ;;  %v1841_v37 = vmax.f32 %v5782_v14, %v1840_v26  ;;  %v5873_v40 = vpop.permute.xlu0 %2668  ;;  %v2493_v23 = vadd.f32 %v5446_v3, %v5470_v52 }
 0x1d8   : > { %1901 = vperm.xlu1 %3925, %v3969_v9   ;;  %v5867_v48 = vsel %vm1455_vm0, %v2617_v21, -inf  ;;  %6910 = vst [vmem:[#allocation32_spill] sm:$0xff] %v5873_v40  ;;  %v5892_v18 = vsel %vm1455_vm0, %v2494_v13, -inf  ;;  %v6920_v13 = vld [vmem:[#allocation63_spill] sm:$0xff] }
 0x1d9   : > { %3931 = vrot.lane.b32.xlu0 %v3930_v11, %s4045_s21  ;;  %v2305_v57 = vmax.f32 %v2303_v39, %v2304_v63  ;;  %6909 = vst [vmem:[#allocation98_spill] sm:$0xff] %v5867_v48  ;;  %v1842_v59 = vrot.slane %v1841_v37, 1  ;;  %v6913_v11 = vmov 8   ;;  %v5906_v6 = vsel %vm1455_vm0, %v2493_v23, -inf }
 0x1da   : > { %v2467_v2 = vpop.permute.xlu1 %2466  ;;  %v5913_v63 = vadd.f32 %v5686_v27, %v5487_v53  ;;  %v1675_v28 = vadd.f32 %v6920_v13, %v5459_v38  ;;  %v6928_v13 = vld [vmem:[#allocation79_spill] sm:$0xff] }
 0x1db   : > { %v2306_v24 = vrot.slane %v2305_v57, 4  ;;  %v1843_v34 = vmax.f32 %v1841_v37, %v1842_v59  ;;  %v5887_v60 = vpop.permute.xlu0 %2680  ;;  %v2502_v26 = vadd.f32 %v2467_v2, %v5568_v7  ;;  %v5918_v2 = vsel %vm1455_vm0, %v2499_v56, -inf  ;;  %v6916_v37 = vld [vmem:[#allocation65_spill] sm:$0xff] }
 0x1dc   : > { %1905 = vperm.xlu1 %3925, %v5859_v0  }
 0x1dd   : > { %v2307_v41 = vmax.f32 %v2305_v57, %v2306_v24  ;;  %v5921_v4 = vsel %vm1455_vm0, %v2502_v26, -inf  ;;  %v6915_v57 = vld [vmem:[#allocation33_spill] sm:$0xff]  ;;  %v1678_v24 = vadd.f32 %v6916_v37, %v5489_v43  ;;  %v6925_v26 = vld [vmem:[#allocation75_spill] sm:$0xff]  ;;  %v6927_v37 = vld [vmem:[#allocation76_spill] sm:$0xff] }
 0x1de   : > { %v2471_v29 = vpop.permute.xlu1 %2470  ;;  %v1674_v21 = vadd.f32 %v6915_v57, %v5470_v52 }
 0x1df   : > { %v2308_v16 = vrot.slane %v2307_v41, 2  ;;  %v5929_v27 = vpop.permute.xlu0 %2688 }
 0x1e0   : > { %3927 = vset.pattern.permute.xlu1 %v6901_v46  ;;  %v2498_v46 = vadd.f32 %v5528_v5, %v5495_v25  ;;  %6918 = vst [vmem:[#allocation34_spill] sm:$0xff] %v5929_v27 }
 0x1e1   : > { %1426 = vperm.xlu1 %3927, %v5601_v15   ;;  %v2309_v49 = vmax.f32 %v2307_v41, %v2308_v16  ;;  %v6917_v41 = vld [vmem:[#allocation40_spill] sm:$0xff]  ;;  %v5932_v16 = vadd.f32 %v2471_v29, %v5581_v8 }
 0x1e2   : > { %v5903_v5 = vsel %vm1455_vm0, %v2498_v46, -inf  ;;  %v1679_v59 = vadd.f32 %v6917_v41, %v5495_v25  ;;  %v6922_v46 = vld [vmem:[#allocation38_spill] sm:$0xff]  ;;  %v1684_v41 = vadd.f32 %v6927_v37, %v5581_v8 }
 0x1e3   : > { %v5875_v14 = vpop.permute.xlu1 %2664  ;;  %v2310_v55 = vrot.slane %v2309_v49, 1  ;;  %v1677_v23 = vadd.f32 %v6922_v46, %v5480_v50  ;;  %v1686_v46 = vadd.f32 %v5427_v1, %v5596_v42  ;;  %v1691_v1 = vsel %vm1455_vm0, %v1675_v28, -inf }
 0x1e4   : > { %6911 = vst [vmem:[#allocation23_spill] sm:$0xff] %v5875_v14 }
 0x1e5   : > { %1431 = vperm.xlu1 %3927, %v3969_v9   ;;  %v2311_v12 = vmax.f32 %v2309_v49, %v2310_v55  ;;  %v1693_v27 = vsel %vm1455_vm0, %v1677_v23, -inf  ;;  %v2841_v23 = vld [vmem:[%s6667_s3 + $0x70] sm:$0xff] }
 0x1e7   : > { %v5881_v33 = vpop.permute.xlu1 %2672  ;;  %v3940_v9 = vpack.i.bf16 %v1843_v34, %v2311_v12  ;;  %v6921_v34 = vld [vmem:[#allocation36_spill] sm:$0xff] }
 0x1e8   : > { %6912 = vst [vmem:[#allocation24_spill] sm:$0xff] %v5881_v33  ;;  %v1676_v55 = vadd.f32 %v6921_v34, %v5487_v53  ;;  %v6923_v12 = vld [vmem:[#allocation68_spill] sm:$0xff]  ;;  %v1685_v34 = vadd.f32 %v6928_v13, %v5558_v30 }
 0x1e9   : > { %3928 = vset.pattern.permute.xlu1 %v6913_v11  ;;  %3941 = vrot.lane.b32.xlu0 %v3940_v9, %s4046_s28  ;;  %v1680_v56 = vadd.f32 %v6923_v12, %v5513_v35  ;;  %v6924_v9 = vld [vmem:[#allocation42_spill] sm:$0xff]  ;;  %v6929_v12 = vld [vmem:[#allocation72_spill] sm:$0xff] }
 0x1ea   : > { %2313 = vperm.xlu1 %3928, %v5660_v32   ;;  %v1681_v29 = vadd.f32 %v6924_v9, %v5500_v36  ;;  %v6926_v11 = vld [vmem:[#allocation70_spill] sm:$0xff]  ;;  %v1687_v17 = vadd.f32 %v6929_v12, %v5608_v54  ;;  %v1688_v9 = vadd.f32 %v5453_v10, %v5630_v58  ;;  %v1694_v32 = vsel %vm1455_vm0, %v1678_v24, -inf  ;;  %v6931_v13 = vld [vmem:[#allocation84_spill] sm:$0xff] }
 0x1eb   : > { %v5900_v3 = vpop.permute.xlu1 %2676  ;;  %v1683_v57 = vadd.f32 %v6926_v11, %v5568_v7  ;;  %v1696_v11 = vsel %vm1455_vm0, %v1679_v59, -inf  ;;  %v1689_v39 = vadd.f32 %v6931_v13, %v5621_v19  ;;  %v1692_v12 = vsel %vm1455_vm0, %v1676_v55, -inf  ;;  %v2858_v10 = vld [vmem:[%s6667_s3 + $0xf8] sm:$0xff]  ;;  %v5987_v13 = vpop.permute.xlu0 %2696 }
 0x1ec   : > { %6914 = vst [vmem:[#allocation96_spill] sm:$0xff] %v5900_v3  ;;  %v1698_v59 = vsel %vm1455_vm0, %v1680_v56, -inf  ;;  %v1700_v28 = vsel %vm1455_vm0, %v1681_v29, -inf  ;;  %3617 = vmatprep.subr.mxu1 %v2858_v10  ;;  %6932 = vst [vmem:[#allocation37_spill] sm:$0xff] %v5987_v13  ;;  %v1697_v48 = vmax.f32 %v1691_v1, %v1696_v11  ;;  %v1706_v29 = vsel %vm1455_vm0, %v1684_v41, -inf  ;;  %v2856_v10 = vld [vmem:[%s6667_s3 + $0xe8] sm:$0xff] }
 0x1ed   : > { %v1699_v47 = vmax.f32 %v1692_v12, %v1698_v59  ;;  %v1701_v33 = vmax.f32 %v1693_v27, %v1700_v28  ;;  %v2840_v27 = vld [vmem:[%s6667_s3 + $0x68] sm:$0xff]  ;;  %v1716_v59 = vsel %vm1455_vm0, %v1689_v39, -inf  ;;  %v6009_v28 = vsel %vm1455_vm0, %v5913_v63, -inf  ;;  %v2855_v39 = vld [vmem:[%s6667_s3 + $0xe0] sm:$0xff] }
 0x1ee   : > { %2321 = vperm.xlu1 %3928, %v5682_v44   ;;  %v1682_v44 = vadd.f32 %v6925_v26, %v5548_v62  ;;  %v1690_v26 = vsel %vm1455_vm0, %v1674_v21, -inf  ;;  %v2842_v21 = vld [vmem:[%s6667_s3 + $0x78] sm:$0xff]  ;;  %v6934_v11 = vld [vmem:[#allocation29_spill] sm:$0xff] }
 0x1ef   : > { %v5935_v49 = vpop.permute.xlu1 %2684  ;;  %v1695_v24 = vmax.f32 %v1690_v26, %v1694_v32  ;;  %3618 = vmatpush3.msra.mxu1 %v2842_v21  ;;  %v6933_v32 = vld [vmem:[#allocation81_spill] sm:$0xff]  ;;  %v1707_v1 = vmax.f32 %v1699_v47, %v1706_v29  ;;  %v1710_v21 = vsel %vm1455_vm0, %v1686_v46, -inf  ;;  %v6935_v47 = vld [vmem:[#allocation78_spill] sm:$0xff] }
 0x1f0   : > { %6919 = vst [vmem:[#allocation99_spill] sm:$0xff] %v5935_v49  ;;  %v1702_v55 = vsel %vm1455_vm0, %v1682_v44, -inf  ;;  %v1704_v49 = vsel %vm1455_vm0, %v1683_v57, -inf  ;;  %v2501_v56 = vadd.f32 %v6933_v32, %v5548_v62  ;;  %v1708_v44 = vsel %vm1455_vm0, %v1685_v34, -inf  ;;  %v2839_v63 = vld [vmem:[%s6667_s3 + $0x60] sm:$0xff]  ;;  %v6026_v32 = vpop.permute.xlu0 %2708 }
 0x1f1   : > { %v1703_v26 = vmax.f32 %v1695_v24, %v1702_v55  ;;  %v1705_v57 = vmax.f32 %v1697_v48, %v1704_v49  ;;  %v1709_v12 = vmax.f32 %v1701_v33, %v1708_v44  ;;  %v1714_v24 = vsel %vm1455_vm0, %v1688_v9, -inf  ;;  %v6936_v33 = vld [vmem:[#allocation104_spill] sm:$0xff]  ;;  %6937 = vst [vmem:[#allocation58_spill] sm:$0xff] %v6026_v32  ;;  %v6957_v32 = vld [vmem:[#allocation101_spill] sm:$0xff] }
 0x1f2   : > { %2325 = vperm.xlu1 %3928, %v5693_v20   ;;  %v2857_v20 = vld [vmem:[%s6667_s3 + $0xf0] sm:$0xff]  ;;  %v2496_v48 = vadd.f32 %v6935_v47, %v5480_v50  ;;  %v2500_v49 = vadd.f32 %v6936_v33, %v5500_v36  ;;  %v1715_v46 = vmax.f32 %v1707_v1, %v1714_v24  ;;  %v6939_v44 = vmax.f32 %v5892_v18, %v5903_v5  ;;  %v6943_v47 = vld [vmem:[#allocation45_spill] sm:$0xff] }
 0x1f3   : > { %v5965_v37 = vpop.permute.xlu1 %2692  ;;  %3619 = vmatprep.subr.mxu1 %v2857_v20  ;;  %v1711_v34 = vmax.f32 %v1703_v26, %v1710_v21  ;;  %v1712_v20 = vsel %vm1455_vm0, %v1687_v17, -inf  ;;  %v1717_v9 = vmax.f32 %v1709_v12, %v1716_v59  ;;  %v6938_v26 = vld [vmem:[#allocation55_spill] sm:$0xff]  ;;  %v6047_v21 = vsel %vm1455_vm0, %v5932_v16, -inf  ;;  %v6944_v33 = vld [vmem:[#allocation30_spill] sm:$0xff]  ;;  %v6959_v3 = vld [vmem:[#allocation61_spill] sm:$0xff] }
 0x1f4   : > { %6930 = vst [vmem:[#allocation100_spill] sm:$0xff] %v5965_v37  ;;  %3620 = vmatpush3.msra.mxu1 %v2841_v23  ;;  %v1713_v55 = vmax.f32 %v1705_v57, %v1712_v20  ;;  %v2854_v23 = vld [vmem:[%s6667_s3 + $0xd8] sm:$0xff]  ;;  %v6030_v29 = vadd.f32 %v6938_v26, %v5608_v54  ;;  %v6941_v57 = vld [vmem:[#allocation93_spill] sm:$0xff]  ;;  %v6942_v18 = vmax.f32 %v5906_v6, %v5895_v61  ;;  %v6057_v24 = vsel %vm1455_vm0, %v2496_v48, -inf  ;;  %v6945_v61 = vld [vmem:[#allocation26_spill] sm:$0xff] }
 0x1f5   : > { %3621 = vmatprep.subr.mxu1 %v2856_v10  ;;  %v6036_v10 = vmax.f32 %v6939_v44, %v5921_v4  ;;  %v2504_v1 = vadd.f32 %v6941_v57, %v5558_v30  ;;  %v2838_v12 = vld [vmem:[%s6667_s3 + $0x58] sm:$0xff]  ;;  %v6060_v59 = vsel %vm1455_vm0, %v2500_v49, -inf  ;;  %v2142_v16 = vadd.f32 %v6943_v47, %v5470_v52  ;;  %v6947_v48 = vld [vmem:[#allocation49_spill] sm:$0xff]  ;;  %v2853_v49 = vld [vmem:[%s6667_s3 + $0xd0] sm:$0xff] }
 0x1f6   : > { %2333 = vperm.xlu1 %3928, %v6934_v11   ;;  %3622 = vmatpush3.msra.mxu1 %v2840_v27  ;;  %v6940_v27 = vld [vmem:[#allocation18_spill] sm:$0xff]  ;;  %v2521_v11 = vsel %vm1455_vm0, %v2501_v56, -inf  ;;  %v1718_v4 = vmax.f32 %v1711_v34, %v1713_v55  ;;  %v1719_v56 = vmax.f32 %v1715_v46, %v1717_v9  ;;  %v2143_v6 = vadd.f32 %v6945_v61, %v5459_v38  ;;  %v6946_v34 = vld [vmem:[#allocation28_spill] sm:$0xff]  ;;  %v6948_v44 = vld [vmem:[#allocation31_spill] sm:$0xff] }
 0x1f7   : > { %3623 = vmatprep.subr.mxu1 %v2855_v39  ;;  %v6054_v5 = vmax.f32 %v6942_v18, %v2521_v11  ;;  %v2146_v39 = vadd.f32 %v6944_v33, %v5489_v43  ;;  %v2144_v46 = vadd.f32 %v6946_v34, %v5487_v53  ;;  %v2147_v55 = vadd.f32 %v6947_v48, %v5495_v25  ;;  %v2837_v9 = vld [vmem:[%s6667_s3 + $0x50] sm:$0xff]  ;;  %v6953_v33 = vld [vmem:[#allocation73_spill] sm:$0xff] }
 0x1f8   : > { %v6002_v41 = vpop.permute.xlu1 %2583  ;;  %3624 = vmatpush3.msra.mxu1 %v2839_v63  ;;  %v1720_v26 = vmax.f32 %v1718_v4, %v1719_v56  ;;  %v2852_v63 = vld [vmem:[%s6667_s3 + $0xc8] sm:$0xff]  ;;  %v6949_v11 = vld [vmem:[#allocation51_spill] sm:$0xff]  ;;  %v2152_v61 = vadd.f32 %v6953_v33, %v5581_v8 }
 0x1f9   : > { %3625 = vmatprep.subr.mxu1 %v2854_v23  ;;  %v6083_v23 = vsel %vm1455_vm0, %v2504_v1, -inf  ;;  %v2149_v57 = vadd.f32 %v6949_v11, %v5500_v36  ;;  %v2836_v4 = vld [vmem:[%s6667_s3 + $0x48] sm:$0xff]  ;;  %v6951_v56 = vld [vmem:[#allocation47_spill] sm:$0xff]  ;;  %v2162_v13 = vsel %vm1455_vm0, %v2146_v39, -inf  ;;  %v2160_v37 = vsel %vm1455_vm0, %v2144_v46, -inf }
 0x1fa   : > { %2341 = vperm.xlu1 %3928, %v6940_v27   ;;  %3626 = vmatpush3.msra.mxu1 %v2838_v12  ;;  %v2148_v27 = vadd.f32 %v6948_v44, %v5513_v35  ;;  %v6950_v12 = vld [vmem:[#allocation53_spill] sm:$0xff]  ;;  %v6952_v1 = vld [vmem:[#allocation71_spill] sm:$0xff]  ;;  %v6102_v44 = vpop.permute.xlu0 %2712  ;;  %v1721_v11 = vrot.slane %v1720_v26, 4 }
 0x1fb   : > { %v2150_v18 = vadd.f32 %v6950_v12, %v5548_v62  ;;  %3627 = vmatprep.subr.mxu1 %v2853_v49  ;;  %v2151_v47 = vadd.f32 %v6952_v1, %v5568_v7  ;;  %v6954_v34 = vld [vmem:[#allocation57_spill] sm:$0xff]  ;;  %6955 = vst [vmem:[#allocation60_spill] sm:$0xff] %v6102_v44  ;;  %v6956_v12 = vld [vmem:[#allocation59_spill] sm:$0xff]  ;;  %v2164_v44 = vsel %vm1455_vm0, %v2147_v55, -inf  ;;  %v2168_v55 = vsel %vm1455_vm0, %v2149_v57, -inf }
 0x1fc   : > { %v6049_v20 = vpop.permute.xlu1 %2587  ;;  %v2153_v48 = vadd.f32 %v6954_v34, %v5558_v30  ;;  %3628 = vmatpush3.msra.mxu1 %v2837_v9  ;;  %v2154_v17 = vadd.f32 %v6956_v12, %v5596_v42  ;;  %v6958_v1 = vld [vmem:[#allocation105_spill] sm:$0xff]  ;;  %v2157_v34 = vadd.f32 %v6959_v3, %v5621_v19  ;;  %v2158_v9 = vsel %vm1455_vm0, %v2142_v16, -inf  ;;  %v2850_v39 = vld [vmem:[%s6667_s3 + $0xb8] sm:$0xff] }
 0x1fd   : > { %3629 = vmatprep.subr.mxu1 %v2852_v63  ;;  %v2156_v33 = vadd.f32 %v6958_v1, %v5630_v58  ;;  %v2851_v12 = vld [vmem:[%s6667_s3 + $0xc0] sm:$0xff]  ;;  %v6960_v3 = vld [vmem:[#allocation95_spill] sm:$0xff]  ;;  %v2166_v16 = vsel %vm1455_vm0, %v2148_v27, -inf  ;;  %v1722_v40 = vmax.f32 %v1720_v26, %v1721_v11  ;;  %v2172_v57 = vsel %vm1455_vm0, %v2151_v47, -inf }
 0x1fe   : > { %2349 = vperm.xlu1 %3928, %v5767_v45   ;;  %v2145_v45 = vadd.f32 %v6951_v56, %v5480_v50  ;;  %v2155_v56 = vadd.f32 %v6957_v32, %v5608_v54  ;;  %3630 = vmatpush3.msra.mxu1 %v2836_v4  ;;  %v2835_v32 = vld [vmem:[%s6667_s3 + $0x40] sm:$0xff]  ;;  %v2170_v4 = vsel %vm1455_vm0, %v2150_v18, -inf  ;;  %v2834_v1 = vld [vmem:[%s6667_s3 + $0x38] sm:$0xff]  ;;  %v2159_v50 = vsel %vm1455_vm0, %v2143_v6, -inf  ;;  %v6138_v6 = vpop.permute.xlu0 %2724 }
 0x1ff   : > { %3631 = vmatprep.subr.mxu1 %v2851_v12  ;;  %v2165_v27 = vmax.f32 %v2159_v50, %v2164_v44  ;;  %v2174_v18 = vsel %vm1455_vm0, %v2152_v61, -inf  ;;  %v2167_v31 = vmax.f32 %v2160_v37, %v2166_v16  ;;  %v2178_v50 = vsel %vm1455_vm0, %v2154_v17, -inf  ;;  %v2833_v37 = vld [vmem:[%s6667_s3 + $0x30] sm:$0xff] }
 0x200   : > { %v2161_v36 = vsel %vm1455_vm0, %v2145_v45, -inf  ;;  %3632 = vmatpush3.msra.mxu1 %v2835_v32  ;;  %v2180_v26 = vsel %vm1455_vm0, %v2155_v56, -inf  ;;  %v2520_v17 = vmax.f32 %v6057_v24, %v6060_v59  ;;  %v2531_v24 = vsel %vm1455_vm0, %v6030_v29, -inf }
 0x201   : > { %v2479_v49 = vpop.permute.xlu1 %2478  ;;  %3633 = vmatprep.subr.mxu1 %v2850_v39  ;;  %v2169_v30 = vmax.f32 %v2161_v36, %v2168_v55  ;;  %v2173_v45 = vmax.f32 %v2165_v27, %v2172_v57  ;;  %v2175_v47 = vmax.f32 %v2167_v31, %v2174_v18  ;;  %v2849_v36 = vld [vmem:[%s6667_s3 + $0xb0] sm:$0xff]  ;;  %v2184_v31 = vsel %vm1455_vm0, %v2157_v34, -inf  ;;  %v2832_v39 = vld [vmem:[%s6667_s3 + $0x28] sm:$0xff] }
 0x202   : > { %v2505_v63 = vadd.f32 %v2479_v49, %v5596_v42  ;;  %2357 = vperm.xlu1 %3928, %v6960_v3   ;;  %v2163_v49 = vmax.f32 %v2158_v9, %v2162_v13  ;;  %3634 = vmatpush3.msra.mxu1 %v2834_v1  ;;  %v2176_v13 = vsel %vm1455_vm0, %v2153_v48, -inf  ;;  %v2182_v48 = vsel %vm1455_vm0, %v2156_v33, -inf  ;;  %v6964_v18 = vld [vmem:[#allocation62_spill] sm:$0xff] }
 0x203   : > { %v2177_v61 = vmax.f32 %v2169_v30, %v2176_v13  ;;  %3635 = vmatprep.subr.mxu1 %v2849_v36  ;;  %v2848_v30 = vld [vmem:[%s6667_s3 + $0xa8] sm:$0xff]  ;;  %v2181_v56 = vmax.f32 %v2173_v45, %v2180_v26  ;;  %v2183_v9 = vmax.f32 %v2175_v47, %v2182_v48  ;;  %v6961_v59 = vmax.f32 %v6009_v28, %v5918_v2  ;;  %v2847_v36 = vld [vmem:[%s6667_s3 + $0xa0] sm:$0xff]  ;;  %v2830_v48 = vld [vmem:[%s6667_s3 + $0x18] sm:$0xff] }
 0x204   : > { %v2171_v14 = vmax.f32 %v2163_v49, %v2170_v4  ;;  %v2529_v46 = vsel %vm1455_vm0, %v2505_v63, -inf  ;;  %3636 = vmatpush3.msra.mxu1 %v2833_v37  ;;  %v2528_v63 = vmax.f32 %v2520_v17, %v6083_v23  ;;  %v1723_v55 = vrot.slane %v1722_v40, 2  ;;  %v6173_v49 = vpop.permute.xlu0 %1849  ;;  %v6962_v2 = vld [vmem:[#allocation21_spill] sm:$0xff]  ;;  %v6963_v23 = vld [vmem:[#allocation66_spill] sm:$0xff] }
 0x205   : > { %v2487_v3 = vpop.permute.xlu1 %2486  ;;  %v2185_v32 = vmax.f32 %v2177_v61, %v2184_v31  ;;  %v2526_v33 = vmax.f32 %v6961_v59, %v6047_v21  ;;  %v2530_v34 = vmax.f32 %v6054_v5, %v2529_v46  ;;  %3637 = vmatprep.subr.mxu1 %v2848_v30  ;;  %v2532_v29 = vmax.f32 %v6036_v10, %v2531_v24  ;;  %v2831_v37 = vld [vmem:[%s6667_s3 + $0x20] sm:$0xff] }
 0x206   : > { %v2507_v12 = vadd.f32 %v2487_v3, %v5630_v58  ;;  %2365 = vperm.xlu1 %3928, %v5601_v15   ;;  %v2179_v44 = vmax.f32 %v2171_v14, %v2178_v50  ;;  %3638 = vmatpush3.msra.mxu1 %v2832_v39  ;;  %v2610_v28 = vadd.f32 %v6962_v2, %v5470_v52  ;;  %v6966_v24 = vld [vmem:[#allocation64_spill] sm:$0xff] }
 0x207   : > { %v2187_v1 = vmax.f32 %v2183_v9, %v2185_v32  ;;  %v2615_v21 = vadd.f32 %v5827_v51, %v5495_v25  ;;  %v2614_v57 = vadd.f32 %v6963_v23, %v5489_v43  ;;  %v2537_v46 = vmax.f32 %v2530_v34, %v2532_v29  ;;  %3639 = vmatprep.subr.mxu1 %v2847_v36  ;;  %v2845_v32 = vld [vmem:[%s6667_s3 + $0x90] sm:$0xff] }
 0x208   : > { %v2533_v15 = vsel %vm1455_vm0, %v2507_v12, -inf  ;;  %v2186_v4 = vmax.f32 %v2179_v44, %v2181_v56  ;;  %v2611_v12 = vadd.f32 %v6964_v18, %v5459_v38  ;;  %v2619_v13 = vadd.f32 %v6002_v41, %v5568_v7  ;;  %v6201_v41 = vpop.permute.xlu0 %1861  ;;  %v6965_v56 = vld [vmem:[#allocation67_spill] sm:$0xff]  ;;  %3640 = vmatpush3.msra.mxu1 %v2831_v37  ;;  %v2843_v18 = vld [vmem:[%s6667_s3 + $0x80] sm:$0xff] }
 0x209   : > { %v2491_v11 = vpop.permute.xlu1 %2490  ;;  %v2534_v3 = vmax.f32 %v2526_v33, %v2533_v15  ;;  %v1724_v50 = vmax.f32 %v1722_v40, %v1723_v55  ;;  %v2626_v47 = vsel %vm1455_vm0, %v2610_v28, -inf  ;;  %v2632_v51 = vsel %vm1455_vm0, %v2615_v21, -inf  ;;  %v2846_v40 = vld [vmem:[%s6667_s3 + $0x98] sm:$0xff]  ;;  %v2828_v28 = vld [vmem:[%s6667_s3 + $0x8] sm:$0xff] }
 0x20a   : > { %v2508_v14 = vadd.f32 %v2491_v11, %v5621_v19  ;;  %2373 = vperm.xlu1 %3928, %v5859_v0   ;;  %v2188_v5 = vmax.f32 %v2186_v4, %v2187_v1  ;;  %v2630_v15 = vsel %vm1455_vm0, %v2614_v57, -inf  ;;  %v2627_v11 = vsel %vm1455_vm0, %v2611_v12, -inf  ;;  %3641 = vmatprep.subr.mxu1 %v2846_v40  ;;  %v2844_v4 = vld [vmem:[%s6667_s3 + $0x88] sm:$0xff]  ;;  %v6967_v1 = vld [vmem:[#allocation35_spill] sm:$0xff] }
 0x20b   : > { %v2640_v31 = vsel %vm1455_vm0, %v2619_v13, -inf  ;;  %v1725_v30 = vrot.slane %v1724_v50, 1  ;;  %v2618_v9 = vadd.f32 %v6965_v56, %v5548_v62  ;;  %v2631_v39 = vmax.f32 %v2626_v47, %v2630_v15  ;;  %3642 = vmatpush3.msra.mxu1 %v2830_v48  ;;  %v6968_v36 = vld [vmem:[#allocation23_spill] sm:$0xff] }
 0x20c   : > { %v2535_v16 = vsel %vm1455_vm0, %v2508_v14, -inf  ;;  %v2189_v26 = vrot.slane %v2188_v5, 4  ;;  %v2612_v59 = vadd.f32 %v6966_v24, %v5487_v53  ;;  %v2633_v33 = vmax.f32 %v2627_v11, %v2632_v51  ;;  %3643 = vmatprep.subr.mxu1 %v2845_v32  ;;  %v6235_v12 = vpop.permute.xlu0 %1869  ;;  %v2873_v56 = vld [vmem:[%s6667_s3 + $0x170] sm:$0xff]  ;;  %v6971_v32 = vld [vmem:[#allocation32_spill] sm:$0xff] }
 0x20d   : > { %v2536_v27 = vmax.f32 %v2528_v63, %v2535_v16  ;;  %v2829_v63 = vld [vmem:[%s6667_s3 + $0x10] sm:$0xff]  ;;  %v2623_v16 = vadd.f32 %v5853_v22, %v5608_v54  ;;  %v2616_v29 = vadd.f32 %v6967_v1, %v5513_v35  ;;  %v4047_v21 = vmov 0.0  }
 0x20e   : > { %v6180_v0 = vpop.permute.xlu1 %2700  ;;  %v2190_v61 = vmax.f32 %v2188_v5, %v2189_v26  ;;  %3747 = vmatprep.subr.mxu0 %v4047_v21  ;;  %v1726_v22 = vmax.f32 %v1724_v50, %v1725_v30  ;;  %v2638_v57 = vsel %vm1455_vm0, %v2618_v9, -inf  ;;  %3644 = vmatpush3.msra.mxu1 %v2829_v63  ;;  %v2827_v50 = vld [vmem:[%s6667_s3] sm:$0xff]  ;;  %v2620_v47 = vadd.f32 %v6049_v20, %v5581_v8  ;;  %v2874_v20 = vld [vmem:[%s6667_s3 + $0x178] sm:$0xff]  ;;  %v6972_v24 = vld [vmem:[#allocation102_spill] sm:$0xff] }
 0x20f   : > { %v2538_v10 = vmax.f32 %v2534_v3, %v2536_v27  ;;  %v2641_v3 = vmax.f32 %v2633_v33, %v2640_v31  ;;  %v2639_v13 = vmax.f32 %v2631_v39, %v2638_v57  ;;  %3645 = vmatprep.subr.mxu1 %v2844_v4  ;;  %v2727_v37 = vadd.f32 %v6968_v36, %v5470_v52  ;;  %v6969_v31 = vld [vmem:[#allocation103_spill] sm:$0xff]  ;;  %v6970_v30 = vld [vmem:[#allocation69_spill] sm:$0xff] }
 0x210   : > { %v2191_v14 = vrot.slane %v2190_v61, 2  ;;  %3646 = vmatpush3.msra.mxu1 %v2828_v28  ;;  %v2634_v9 = vsel %vm1455_vm0, %v2616_v29, -inf  ;;  %v2728_v39 = vadd.f32 %v6971_v32, %v5459_v38  ;;  %3748 = vmatpush3.msra.mxu0 %v2874_v20  ;;  %v2642_v1 = vsel %vm1455_vm0, %v2620_v47, -inf  ;;  %v6979_v36 = vld [vmem:[#allocation19_spill] sm:$0xff] }
 0x211   : > { %v2539_v45 = vmax.f32 %v2537_v46, %v2538_v10  ;;  %v2628_v46 = vsel %vm1455_vm0, %v2612_v59, -inf  ;;  %v2731_v10 = vadd.f32 %v5887_v60, %v5489_v43  ;;  %3647 = vmatprep.subr.mxu1 %v2843_v18  ;;  %v6973_v59 = vld [vmem:[#allocation100_spill] sm:$0xff]  ;;  %3749 = vmatprep.subr.mxu0 %v4047_v21 }
 0x212   : > { %v6190_v44 = vpop.permute.xlu1 %2704  ;;  %v2192_v55 = vmax.f32 %v2190_v61, %v2191_v14  ;;  %v2621_v14 = vadd.f32 %v6970_v30, %v6969_v31  ;;  %3648 = vmatpush3.msra.mxu1 %v2827_v50  ;;  %v2734_v33 = vadd.f32 %v6973_v59, %v6972_v24  ;;  %v2635_v63 = vmax.f32 %v2628_v46, %v2634_v9  ;;  %v6978_v46 = vld [vmem:[#allocation24_spill] sm:$0xff] }
 0x213   : > { %v2540_v17 = vrot.slane %v2539_v45, 4  ;;  %3782 = vmatprep.subr.mxu1 %v4047_v21  ;;  %3750 = vmatpush3.msra.mxu0 %v2873_v56  ;;  %v2737_v56 = vadd.f32 %v6190_v44, %v5581_v8 }
 0x214   : > { %v2193_v5 = vrot.slane %v2192_v55, 1  ;;  %3751 = vmatprep.subr.mxu0 %v4047_v21  ;;  %v2753_v47 = vsel %vm1455_vm0, %v2734_v33, -inf  ;;  %3779 = vmatprep.mubr.msk.f32.mxu0 %vm4049_vm1, %v4047_v21 }
 0x215   : > { %v2541_v34 = vmax.f32 %v2539_v45, %v2540_v17  ;;  %v2648_v45 = vsel %vm1455_vm0, %v2623_v16, -inf  ;;  %v6974_v16 = vld [vmem:[#allocation80_spill] sm:$0xff] }
 0x216   : > { %v2194_v51 = vmax.f32 %v2192_v55, %v2193_v5  ;;  %v2649_v60 = vmax.f32 %v2641_v3, %v2648_v45  ;;  %v6975_v55 = vld [vmem:[#allocation96_spill] sm:$0xff]  ;;  %v2872_v3 = vld [vmem:[%s6667_s3 + $0x168] sm:$0xff]  ;;  %v2747_v5 = vsel %vm1455_vm0, %v2731_v10, -inf  ;;  %v2644_v45 = vsel %vm1455_vm0, %v2621_v14, -inf }
 0x217   : > { %v2596_v27 = vpop.permute.xlu1 %2595  ;;  %v2542_v2 = vrot.slane %v2541_v34, 2  ;;  %v2730_v4 = vadd.f32 %v6975_v55, %v6974_v16  ;;  %v2871_v10 = vld [vmem:[%s6667_s3 + $0x160] sm:$0xff]  ;;  %3752 = vmatpush3.msra.mxu0 %v2872_v3 }
 0x218   : > { %v2622_v23 = vadd.f32 %v2596_v27, %v5596_v42  ;;  %v3935_v17 = vpack.i.bf16 %v1726_v22, %v2194_v51  ;;  %v6272_v27 = vpop.permute.xlu0 %1877  ;;  %v2743_v22 = vsel %vm1455_vm0, %v2727_v37, -inf  ;;  %v2643_v51 = vmax.f32 %v2635_v63, %v2642_v1  ;;  %v6980_v37 = vld [vmem:[#allocation98_spill] sm:$0xff]  ;;  %3753 = vmatprep.subr.mxu0 %v4047_v21 }
 0x219   : > { %v2543_v26 = vmax.f32 %v2541_v34, %v2542_v2  ;;  %v6976_v2 = vld [vmem:[#allocation37_spill] sm:$0xff]  ;;  %3754 = vmatpush3.msra.mxu0 %v2871_v10  ;;  %v2748_v59 = vmax.f32 %v2743_v22, %v2747_v5  ;;  %v2744_v63 = vsel %vm1455_vm0, %v2728_v39, -inf  ;;  %v2869_v1 = vld [vmem:[%s6667_s3 + $0x150] sm:$0xff] }
 0x21a   : > { %v2646_v61 = vsel %vm1455_vm0, %v2622_v23, -inf  ;;  %3936 = vrot.lane.b32.xlu1 %v3935_v17, %s4048_s25  ;;  %v2735_v28 = vadd.f32 %v6976_v2, %v5548_v62  ;;  %v6977_v23 = vld [vmem:[#allocation99_spill] sm:$0xff]  ;;  %v2746_v17 = vsel %vm1455_vm0, %v2730_v4, -inf  ;;  %3755 = vmatprep.subr.mxu0 %v4047_v21 }
 0x21b   : > { %v2647_v40 = vmax.f32 %v2639_v13, %v2646_v61  ;;  %v2604_v15 = vpop.permute.xlu1 %2603  ;;  %v2544_v11 = vrot.slane %v2543_v26, 1  ;;  %v2732_v57 = vadd.f32 %v6977_v23, %v5495_v25  ;;  %v2729_v13 = vadd.f32 %v6978_v46, %v5487_v53  ;;  %v6984_v23 = vld [vmem:[#allocation60_spill] sm:$0xff] }
 0x21c   : > { %v2624_v48 = vadd.f32 %v2604_v15, %v5630_v58  ;;  %v2736_v61 = vadd.f32 %v6180_v0, %v5568_v7  ;;  %v6982_v15 = vld [vmem:[#allocation34_spill] sm:$0xff]  ;;  %v2870_v0 = vld [vmem:[%s6667_s3 + $0x158] sm:$0xff]  ;;  %v2755_v33 = vsel %vm1455_vm0, %v2735_v28, -inf  ;;  %v2754_v55 = vmax.f32 %v2746_v17, %v2753_v47 }
 0x21d   : > { %v2654_v34 = vmax.f32 %v2647_v40, %v2649_v60  ;;  %v2545_v29 = vmax.f32 %v2543_v26, %v2544_v11  ;;  %v6981_v60 = vmax.f32 %v6979_v36, %v6980_v37  ;;  %v2733_v11 = vadd.f32 %v6982_v15, %v5513_v35  ;;  %3756 = vmatpush3.msra.mxu0 %v2870_v0  ;;  %v2867_v36 = vld [vmem:[%s6667_s3 + $0x140] sm:$0xff] }
 0x21e   : > { %v2650_v26 = vsel %vm1455_vm0, %v2624_v48, -inf  ;;  %v6983_v48 = vld [vmem:[#allocation58_spill] sm:$0xff]  ;;  %v2749_v20 = vsel %vm1455_vm0, %v2732_v57, -inf  ;;  %v2745_v44 = vsel %vm1455_vm0, %v2729_v13, -inf  ;;  %v2757_v3 = vsel %vm1455_vm0, %v2736_v61, -inf  ;;  %3757 = vmatprep.subr.mxu0 %v4047_v21 }
 0x21f   : > { %v2608_v18 = vpop.permute.xlu1 %2607  ;;  %v2645_v40 = vmax.f32 %v6981_v60, %v2644_v45  ;;  %v2738_v30 = vadd.f32 %v6983_v48, %v6969_v31  ;;  %2805 = vrot.lane.b32.xlu1 %v2545_v29, %s4045_s21  ;;  %v2651_v9 = vmax.f32 %v2643_v51, %v2650_v26  ;;  %v6315_v29 = vpop.permute.xlu0 %1885  ;;  %v2751_v39 = vsel %vm1455_vm0, %v2733_v11, -inf  ;;  %3758 = vmatpush3.msra.mxu0 %v2869_v1  ;;  %v2863_v1 = vld [vmem:[%s6667_s3 + $0x120] sm:$0xff] }
 0x220   : > { %v2625_v50 = vadd.f32 %v2608_v18, %v5621_v19  ;;  %v2750_v28 = vmax.f32 %v2744_v63, %v2749_v20  ;;  %v2739_v57 = vadd.f32 %v6984_v23, %v5596_v42  ;;  %v2868_v18 = vld [vmem:[%s6667_s3 + $0x148] sm:$0xff]  ;;  %v2759_v46 = vsel %vm1455_vm0, %v2737_v56, -inf  ;;  %3759 = vmatprep.subr.mxu0 %v4047_v21  ;;  %v2865_v56 = vld [vmem:[%s6667_s3 + $0x130] sm:$0xff] }
 0x221   : > { %v2761_v5 = vsel %vm1455_vm0, %v2738_v30, -inf  ;;  %v2756_v45 = vmax.f32 %v2748_v59, %v2755_v33  ;;  %v2752_v10 = vmax.f32 %v2745_v44, %v2751_v39  ;;  %3760 = vmatpush3.msra.mxu0 %v2868_v18  ;;  %v2864_v63 = vld [vmem:[%s6667_s3 + $0x128] sm:$0xff]  ;;  %v2862_v39 = vld [vmem:[%s6667_s3 + $0x118] sm:$0xff]  ;;  %v2861_v23 = vld [vmem:[%s6667_s3 + $0x110] sm:$0xff] }
 0x222   : > { %v2652_v14 = vsel %vm1455_vm0, %v2625_v50, -inf  ;;  %v2742_v50 = vadd.f32 %v6138_v6, %v5621_v19  ;;  %v2762_v47 = vmax.f32 %v2754_v55, %v2761_v5  ;;  %v2758_v51 = vmax.f32 %v2750_v28, %v2757_v3  ;;  %3761 = vmatprep.subr.mxu0 %v4047_v21  ;;  %v2866_v6 = vld [vmem:[%s6667_s3 + $0x138] sm:$0xff] }
 0x223   : > { %v2653_v32 = vmax.f32 %v2645_v40, %v2652_v14  ;;  %v2760_v60 = vmax.f32 %v2752_v10, %v2759_v46  ;;  %v6341_v15 = vpop.permute.xlu0 %1897  ;;  %v2763_v17 = vsel %vm1455_vm0, %v2739_v57, -inf  ;;  %3762 = vmatpush3.msra.mxu0 %v2867_v36  ;;  %v2860_v46 = vld [vmem:[%s6667_s3 + $0x108] sm:$0xff] }
 0x224   : > { %v2717_v4 = vpop.permute.xlu1 %2716  ;;  %v2769_v30 = vsel %vm1455_vm0, %v2742_v50, -inf  ;;  %v2764_v14 = vmax.f32 %v2756_v45, %v2763_v17  ;;  %3763 = vmatprep.subr.mxu0 %v4047_v21  ;;  %v2859_v50 = vld [vmem:[%s6667_s3 + $0x100] sm:$0xff] }
 0x225   : > { %v2655_v2 = vmax.f32 %v2651_v9, %v2653_v32  ;;  %v2740_v22 = vadd.f32 %v2717_v4, %v5608_v54  ;;  %v2770_v20 = vmax.f32 %v2762_v47, %v2769_v30  ;;  %3764 = vmatpush3.msra.mxu0 %v2866_v6 }
 0x226   : > { %3765 = vmatprep.subr.mxu0 %v4047_v21 }
 0x227   : > { %v2656_v13 = vmax.f32 %v2654_v34, %v2655_v2  ;;  %v2765_v26 = vsel %vm1455_vm0, %v2740_v22, -inf  ;;  %3766 = vmatpush3.msra.mxu0 %v2865_v56  ;;  %v1362_v44 = vpop.permute.xlu0 %1361 }
 0x228   : > { %v2721_v61 = vpop.permute.xlu1 %2720  ;;  %v2766_v40 = vmax.f32 %v2758_v51, %v2765_v26  ;;  %3767 = vmatprep.subr.mxu0 %v4047_v21 }
 0x229   : > { %v2657_v37 = vrot.slane %v2656_v13, 4  ;;  %v2741_v34 = vadd.f32 %v2721_v61, %v5630_v58  ;;  %3768 = vmatpush3.msra.mxu0 %v2864_v63  ;;  %v1916_v63 = vadd.f32 %v6272_v27, %v5548_v62 }
 0x22a   : > { %v2771_v59 = vmax.f32 %v2764_v14, %v2766_v40  ;;  %3769 = vmatprep.subr.mxu0 %v4047_v21  ;;  %v6985_v14 = vld [vmem:[#allocation7_spill] sm:$0xff] }
 0x22b   : > { %v2658_v11 = vmax.f32 %v2656_v13, %v2657_v37  ;;  %v2767_v48 = vsel %vm1455_vm0, %v2741_v34, -inf  ;;  %3770 = vmatpush3.msra.mxu0 %v2863_v1  ;;  %v1367_v13 = vpop.permute.xlu0 %1366 }
 0x22c   : > { %v2768_v0 = vmax.f32 %v2760_v60, %v2767_v48  ;;  %3771 = vmatprep.subr.mxu0 %v4047_v21 }
 0x22d   : > { %v6350_v9 = vpop.permute.xlu1 %1845  ;;  %v2659_v32 = vrot.slane %v2658_v11, 2  ;;  %3772 = vmatpush3.msra.mxu0 %v2862_v39 }
 0x22e   : > { %v2772_v33 = vmax.f32 %v2768_v0, %v2770_v20  ;;  %3773 = vmatprep.subr.mxu0 %v4047_v21  ;;  %v1444_v0 = vadd.f32 %v6985_v14, %v5495_v25  ;;  %v6986_v20 = vld [vmem:[#allocation5_spill] sm:$0xff] }
 0x22f   : > { %v2660_v55 = vmax.f32 %v2658_v11, %v2659_v32  ;;  %3774 = vmatpush3.msra.mxu0 %v2861_v23  ;;  %v1382_v51 = vpop.permute.xlu0 %1381  ;;  %v1441_v56 = vadd.f32 %v6986_v20, %v5487_v53  ;;  %v1909_v32 = vadd.f32 %v6173_v49, %v5459_v38  ;;  %v1439_v49 = vadd.f32 %v1362_v44, %v5470_v52 }
 0x230   : > { %v2773_v4 = vmax.f32 %v2771_v59, %v2772_v33  ;;  %3775 = vmatprep.subr.mxu0 %v4047_v21  ;;  %v1912_v59 = vadd.f32 %v6201_v41, %v5489_v43  ;;  %v1914_v33 = vadd.f32 %v6235_v12, %v5513_v35  ;;  %v6409_v41 = vsel %vm1455_vm0, %v1444_v0, -inf  ;;  %v6988_v0 = vld [vmem:[#allocation8_spill] sm:$0xff] }
 0x231   : > { %v6360_v3 = vpop.permute.xlu1 %1853  ;;  %v2661_v2 = vrot.slane %v2660_v55, 1  ;;  %3776 = vmatpush3.msra.mxu0 %v2860_v46  ;;  %v1458_v12 = vsel %vm1455_vm0, %v1441_v56, -inf  ;;  %v1446_v20 = vadd.f32 %v6988_v0, %v6972_v24 }
 0x232   : > { %v2774_v22 = vrot.slane %v2773_v4, 4  ;;  %3777 = vmatprep.subr.mxu0 %v4047_v21  ;;  %v6418_v23 = vsel %vm1455_vm0, %v1914_v33, -inf }
 0x233   : > { %v2662_v28 = vmax.f32 %v2660_v55, %v2661_v2  ;;  %3778 = vmatpush3.msra.mxu0 %v2859_v50  ;;  %v1392_v37 = vpop.permute.xlu0 %1391  ;;  %v1440_v55 = vadd.f32 %v1367_v13, %v5459_v38  ;;  %v6430_v50 = vadd.f32 %v6341_v15, %v5608_v54 }
 0x234   : > { %v2775_v5 = vmax.f32 %v2773_v4, %v2774_v22  ;;  %3817 = vmatprep.subr.mxu0 %v4047_v21  ;;  %v1443_v4 = vadd.f32 %v1382_v51, %v5489_v43  ;;  %v1445_v1 = vadd.f32 %v1392_v37, %v5513_v35  ;;  %v1918_v22 = vadd.f32 %v6315_v29, %v5581_v8 }
 0x235   : > { %v6372_v57 = vpop.permute.xlu1 %1857  ;;  %2809 = vrot.lane.b32.xlu0 %v2662_v28, %s4048_s25  ;;  %v6414_v28 = vsel %vm1455_vm0, %v1909_v32, -inf  ;;  %v1936_v29 = vsel %vm1455_vm0, %v1916_v63, -inf  ;;  %v1457_v44 = vsel %vm1455_vm0, %v1440_v55, -inf }
 0x236   : > { %v2776_v18 = vrot.slane %v2775_v5, 2  ;;  %v1464_v46 = vsel %vm1455_vm0, %v1445_v1, -inf  ;;  %v1463_v56 = vmax.f32 %v1457_v44, %v6409_v41  ;;  %v1911_v63 = vadd.f32 %v6372_v57, %v6974_v16 }
 0x237   : > { %v1402_v60 = vpop.permute.xlu0 %1401 }
 0x238   : > { %v2777_v26 = vmax.f32 %v2775_v5, %v2776_v18  ;;  %v1928_v5 = vsel %vm1455_vm0, %v1912_v59, -inf  ;;  %v6423_v18 = vsel %vm1455_vm0, %v1443_v4, -inf  ;;  %v1447_v13 = vadd.f32 %v1402_v60, %v5548_v62  ;;  %v6987_v60 = vld [vmem:[#allocation6_spill] sm:$0xff] }
 0x239   : > { %v1866_v45 = vpop.permute.xlu1 %1865  ;;  %v1442_v14 = vadd.f32 %v6987_v60, %v6974_v16  ;;  %v1465_v59 = vmax.f32 %v1458_v12, %v1464_v46  ;;  %v1466_v12 = vsel %vm1455_vm0, %v1446_v20, -inf }
 0x23a   : > { %v2778_v10 = vrot.slane %v2777_v26, 1  ;;  %v1468_v33 = vsel %vm1455_vm0, %v1447_v13, -inf  ;;  %v1927_v13 = vsel %vm1455_vm0, %v1911_v63, -inf }
 0x23b   : > { %v1412_v6 = vpop.permute.xlu0 %1411 }
 0x23c   : > { %v2779_v47 = vmax.f32 %v2777_v26, %v2778_v10  ;;  %v1449_v39 = vadd.f32 %v1412_v6, %v5581_v8  ;;  %v1940_v26 = vsel %vm1455_vm0, %v1918_v22, -inf  ;;  %v1456_v10 = vsel %vm1455_vm0, %v1439_v49, -inf }
 0x23d   : > { %v1874_v61 = vpop.permute.xlu1 %1873  ;;  %v1910_v6 = vadd.f32 %v6360_v3, %v5487_v53  ;;  %v1461_v32 = vmax.f32 %v1456_v10, %v6423_v18  ;;  %v1913_v3 = vadd.f32 %v1866_v45, %v5495_v25 }
 0x23e   : > { %2813 = vrot.lane.b32.xlu1 %v2779_v47, %s4046_s28  ;;  %v1908_v47 = vadd.f32 %v6350_v9, %v5470_v52  ;;  %v1472_v51 = vsel %vm1455_vm0, %v1449_v39, -inf  ;;  %v1915_v9 = vadd.f32 %v1874_v61, %v6972_v24  ;;  %v1459_v61 = vsel %vm1455_vm0, %v1442_v14, -inf  ;;  %v6989_v39 = vld [vmem:[#allocation9_spill] sm:$0xff]  ;;  %s324_s28 = scalar_lea.vmem [#allocation2], %s323_s16 }
 0x23f   : > { %v1422_v48 = vpop.permute.xlu0 %1421  ;;  %v1473_v4 = vmax.f32 %v1465_v59, %v1472_v51  ;;  %v1926_v41 = vsel %vm1455_vm0, %v1910_v6, -inf  ;;  %v1448_v57 = vadd.f32 %v6989_v39, %v5568_v7  ;;  %v1930_v10 = vsel %vm1455_vm0, %v1913_v3, -inf  ;;  %s3201_s25 = sshll.u32 %s324_s28, 4  ;;  %s3202_s25 = int_to_ptr.vmem [resolvable:$true] %s3201_s25 }
 0x240   : > { %v1451_v1 = vadd.f32 %v1422_v48, %v5596_v42  ;;  %v1924_v22 = vsel %vm1455_vm0, %v1908_v47, -inf  ;;  %v1934_v45 = vsel %vm1455_vm0, %v1915_v9, -inf  ;;  %v1467_v0 = vmax.f32 %v1459_v61, %v1466_v12  ;;  %s3971_s29 = scalar_lea.vmem %s3202_s25, 16  ;;  %p3978_p0 = scmp.lt.s32.totalorder %s3202_s25, %s3976_s13 }
 0x241   : > { %v1882_v36 = vpop.permute.xlu1 %1881  ;;  %v1935_v14 = vmax.f32 %v1927_v13, %v1934_v45  ;;  %v1470_v59 = vsel %vm1455_vm0, %v1448_v57, -inf  ;;  %v1931_v63 = vmax.f32 %v6414_v28, %v1930_v10  ;;  %v1469_v57 = vmax.f32 %v1461_v32, %v1468_v33  ;;  %p3972_p11 = scmp.ne.s32.totalorder %s3202_s25, %s3971_s29  ;;  %p3979_p1 = scmp.lt.s32.totalorder %s3977_s22, %s3971_s29 }
 0x242   : > { %v1476_v45 = vsel %vm1455_vm0, %v1451_v1, -inf }
 0x243   : > { %v1437_v2 = vpop.permute.xlu0 %1436  ;;  %v1477_v13 = vmax.f32 %v1469_v57, %v1476_v45  ;;  %p3973_p12 = pnand %p3972_p11, %p4139_p5  ;;  %p3980_p2 = por %p3979_p1, %p3978_p0 }
 0x244   : > { %v1454_v60 = vadd.f32 %v1437_v2, %v5621_v19 }
 0x245   : > { %v1890_v34 = vpop.permute.xlu1 %1889  ;;  %p3974_p13 = pneg %p3973_p12 }
 0x246   : > { %v1919_v55 = vadd.f32 %v1890_v34, %v6969_v31  ;;  %v1917_v34 = vadd.f32 %v1882_v36, %v5568_v7  ;;  %v1482_v28 = vsel %vm1455_vm0, %v1454_v60, -inf }
 0x247   : > { %v6436_v37 = vpop.permute.xlu0 %2317  ;;  %p3981_p3 = pnand %p3980_p2, %p3974_p13 }
 0x248   : > { %v1942_v47 = vsel %vm1455_vm0, %v1919_v55, -inf  ;;  %v1938_v20 = vsel %vm1455_vm0, %v1917_v34, -inf }
 0x24a   : > { %v1417_v40 = vpop.permute.xlu1 %1416 }
 0x24b   : > { %v1450_v49 = vadd.f32 %v1417_v40, %v6969_v31  ;;  %v6464_v46 = vpop.permute.xlu0 %2329  ;;  %v1929_v40 = vmax.f32 %v1924_v22, %v1928_v5  ;;  %v1933_v5 = vmax.f32 %v1926_v41, %v6418_v23  ;;  %v1939_v41 = vmax.f32 %v1931_v63, %v1938_v20 }
 0x24d   : > { %v1474_v51 = vsel %vm1455_vm0, %v1450_v49, -inf  ;;  %v1937_v55 = vmax.f32 %v1929_v40, %v1936_v29  ;;  %v1941_v61 = vmax.f32 %v1933_v5, %v1940_v26  ;;  %v1946_v40 = vsel %vm1455_vm0, %v6430_v50, -inf }
 0x24e   : > { %v1475_v3 = vmax.f32 %v1467_v0, %v1474_v51  ;;  %v1947_v10 = vmax.f32 %v1939_v41, %v1946_v40 }
 0x24f   : > { %v6386_v11 = vpop.permute.xlu1 %1893  ;;  %v2338_v49 = vpop.permute.xlu0 %2337 }
 0x250   : > { %v1920_v6 = vadd.f32 %v6386_v11, %v5596_v42 }
 0x252   : > { %v1944_v2 = vsel %vm1455_vm0, %v1920_v6, -inf }
 0x253   : > { %v6388_v17 = vpop.permute.xlu1 %1901  ;;  %v2346_v6 = vpop.permute.xlu0 %2345 }
 0x254   : > { %v1922_v36 = vadd.f32 %v6388_v17, %v5630_v58  ;;  %v1943_v17 = vmax.f32 %v1935_v14, %v1942_v47 }
 0x256   : > { %v1948_v23 = vsel %vm1455_vm0, %v1922_v36, -inf }
 0x257   : > { %v1906_v30 = vpop.permute.xlu1 %1905  ;;  %v1949_v29 = vmax.f32 %v1941_v61, %v1948_v23 }
 0x258   : > { %v1923_v44 = vadd.f32 %v1906_v30, %v5621_v19 }
 0x25c   : > { %v1427_v27 = vpop.permute.xlu1 %1426 }
 0x25d   : > { %v1452_v30 = vadd.f32 %v1427_v27, %v5608_v54  ;;  %v1471_v27 = vmax.f32 %v1463_v56, %v1470_v59  ;;  %v1945_v56 = vmax.f32 %v1937_v55, %v1944_v2  ;;  %v2382_v59 = vadd.f32 %v2338_v49, %v5513_v35 }
 0x25e   : > { %v2377_v35 = vadd.f32 %v6436_v37, %v5459_v38 }
 0x25f   : > { %v1478_v22 = vsel %vm1455_vm0, %v1452_v30, -inf  ;;  %v2354_v30 = vpop.permute.xlu0 %2353 }
 0x260   : > { %v1432_v15 = vpop.permute.xlu1 %1431 }
 0x261   : > { %v1453_v48 = vadd.f32 %v1432_v15, %v5630_v58  ;;  %v1950_v15 = vsel %vm1455_vm0, %v1923_v44, -inf  ;;  %v1483_v44 = vmax.f32 %v1475_v3, %v1482_v28  ;;  %v2380_v3 = vadd.f32 %v6464_v46, %v5489_v43 }
 0x262   : > { %v1951_v12 = vmax.f32 %v1943_v17, %v1950_v15  ;;  %v2386_v43 = vadd.f32 %v2354_v30, %v5581_v8 }
 0x263   : > { %v1480_v9 = vsel %vm1455_vm0, %v1453_v48, -inf  ;;  %v1479_v48 = vmax.f32 %v1471_v27, %v1478_v22 }
 0x264   : > { %v1481_v39 = vmax.f32 %v1473_v4, %v1480_v9  ;;  %v1953_v47 = vmax.f32 %v1949_v29, %v1951_v12  ;;  %v1952_v4 = vmax.f32 %v1945_v56, %v1947_v10  ;;  %v2362_v9 = vpop.permute.xlu0 %2361 }
 0x265   : > { %v2314_v18 = vpop.permute.xlu1 %2313  ;;  %v1484_v32 = vmax.f32 %v1477_v13, %v1479_v48  ;;  %v2388_v10 = vadd.f32 %v2362_v9, %v5596_v42 }
 0x266   : > { %v1485_v51 = vmax.f32 %v1481_v39, %v1483_v44  ;;  %v1954_v33 = vmax.f32 %v1952_v4, %v1953_v47  ;;  %v2376_v63 = vadd.f32 %v2314_v18, %v5470_v52  ;;  %v2400_v52 = vsel %vm1455_vm0, %v2382_v59, -inf }
 0x267   : > { %v2393_v39 = vsel %vm1455_vm0, %v2377_v35, -inf }
 0x268   : > { %v1486_v1 = vmax.f32 %v1484_v32, %v1485_v51  ;;  %v1955_v60 = vrot.slane %v1954_v33, 4  ;;  %v2392_v18 = vsel %vm1455_vm0, %v2376_v63, -inf  ;;  %v2370_v49 = vpop.permute.xlu0 %2369 }
 0x269   : > { %v2322_v11 = vpop.permute.xlu1 %2321  ;;  %v2390_v44 = vadd.f32 %v2370_v49, %v5630_v58 }
 0x26a   : > { %v1487_v5 = vrot.slane %v1486_v1, 4  ;;  %v1956_v0 = vmax.f32 %v1954_v33, %v1955_v60  ;;  %v2378_v15 = vadd.f32 %v2322_v11, %v5487_v53 }
 0x26b   : > { %v2416_v32 = vsel %vm1455_vm0, %v2390_v44, -inf  ;;  %v3021_v44 = vld [vmem:[%s6669_s5 + $0x10] sm:$0xff] }
 0x26c   : > { %v1488_v20 = vmax.f32 %v1486_v1, %v1487_v5  ;;  %v1957_v27 = vrot.slane %v1956_v0, 2  ;;  %v2394_v2 = vsel %vm1455_vm0, %v2378_v15, -inf  ;;  %v3932_v29 = vpop.permute.xlu0 %3931  ;;  %v2412_v1 = vsel %vm1455_vm0, %v2388_v10, -inf  ;;  %v2875_v10 = vld [vmem:[%s6668_s4] sm:$0x1] }
 0x26d   : > { %v2326_v34 = vpop.permute.xlu1 %2325  ;;  %v2401_v61 = vmax.f32 %v2394_v2, %v2400_v52  ;;  %v3933_v42 = vunpack.i.l.bf16 %v3932_v29 }
 0x26e   : > { %v1489_v55 = vrot.slane %v1488_v20, 2  ;;  %v2379_v23 = vadd.f32 %v2326_v34, %v6974_v16  ;;  %v2408_v34 = vsel %vm1455_vm0, %v2386_v43, -inf }
 0x26f   : > { %v2409_v48 = vmax.f32 %v2401_v61, %v2408_v34  ;;  %v3033_v61 = vld [vmem:[%s6669_s5 + $0x70] sm:$0xff]  ;;  %v3022_v34 = vld [vmem:[%s6669_s5 + $0x18] sm:$0xff] }
 0x270   : > { %v1490_v41 = vmax.f32 %v1488_v20, %v1489_v55  ;;  %v2395_v38 = vsel %vm1455_vm0, %v2379_v23, -inf  ;;  %v3942_v60 = vpop.permute.xlu0 %3941 }
 0x271   : > { %v2334_v26 = vpop.permute.xlu1 %2333  ;;  %v2417_v33 = vmax.f32 %v2409_v48, %v2416_v32  ;;  %v3944_v9 = vunpack.i.h.bf16 %v3942_v60  ;;  %v3943_v63 = vunpack.i.l.bf16 %v3942_v60  ;;  %v3112_v48 = vld [vmem:[%s6671_s7 + $0x18] sm:$0xff]  ;;  %v3111_v32 = vld [vmem:[%s6671_s7 + $0x10] sm:$0xff] }
 0x272   : > { %v2381_v22 = vadd.f32 %v2334_v26, %v5495_v25  ;;  %v2396_v25 = vsel %vm1455_vm0, %v2380_v3, -inf  ;;  %v1491_v47 = vrot.slane %v1490_v41, 1 }
 0x273   : > { %v2397_v57 = vmax.f32 %v2392_v18, %v2396_v25 }
 0x274   : > { %v2398_v37 = vsel %vm1455_vm0, %v2381_v22, -inf }
 0x275   : > { %v2342_v36 = vpop.permute.xlu1 %2341  ;;  %v2399_v40 = vmax.f32 %v2393_v39, %v2398_v37  ;;  %v3031_v37 = vld [vmem:[%s6669_s5 + $0x60] sm:$0xff] }
 0x276   : > { %v2383_v17 = vadd.f32 %v2342_v36, %v6972_v24  ;;  %v2384_v24 = vadd.f32 %v2346_v6, %v5548_v62  ;;  %v1492_v36 = vmax.f32 %v1490_v41, %v1491_v47  ;;  %v3034_v41 = vld [vmem:[%s6669_s5 + $0x78] sm:$0xff]  ;;  %v3027_v39 = vld [vmem:[%s6669_s5 + $0x40] sm:$0xff] }
 0x278   : > { %v2402_v46 = vsel %vm1455_vm0, %v2383_v17, -inf  ;;  %v2404_v28 = vsel %vm1455_vm0, %v2384_v24, -inf }
 0x279   : > { %v2350_v14 = vpop.permute.xlu1 %2349  ;;  %v2403_v45 = vmax.f32 %v2395_v38, %v2402_v46  ;;  %v2405_v26 = vmax.f32 %v2397_v57, %v2404_v28  ;;  %v3032_v38 = vld [vmem:[%s6669_s5 + $0x68] sm:$0xff]  ;;  %v3026_v57 = vld [vmem:[%s6669_s5 + $0x38] sm:$0xff]  ;;  %v3023_v28 = vld [vmem:[%s6669_s5 + $0x20] sm:$0xff] }
 0x27a   : > { %v2385_v16 = vadd.f32 %v2350_v14, %v5568_v7 }
 0x27b   : > { %v2413_v5 = vmax.f32 %v2405_v26, %v2412_v1  ;;  %v3035_v1 = vld [vmem:[%s6670_s6] sm:$0x1] }
 0x27c   : > { %v2406_v56 = vsel %vm1455_vm0, %v2385_v16, -inf }
 0x27d   : > { %v2358_v50 = vpop.permute.xlu1 %2357  ;;  %v2407_v6 = vmax.f32 %v2399_v40, %v2406_v56  ;;  %v3020_v56 = vld [vmem:[%s6669_s5 + $0x8] sm:$0xff] }
 0x27e   : > { %v2387_v53 = vadd.f32 %v2358_v50, %v6969_v31  ;;  %v1958_v31 = vmax.f32 %v1956_v0, %v1957_v27  ;;  %v3934_v0 = vunpack.i.h.bf16 %v3932_v29  ;;  %v3019_v29 = vld [vmem:[%s6669_s5] sm:$0xff] }
 0x280   : > { %v2410_v62 = vsel %vm1455_vm0, %v2387_v53, -inf  ;;  %v2816_v17 = vsel %vm1455_vm0, %v1492_v36, %v3934_v0  ;;  %v3113_v0 = vld [vmem:[%s6672_s8] sm:$0x1] }
 0x281   : > { %v2366_v11 = vpop.permute.xlu1 %2365  ;;  %v2411_v13 = vmax.f32 %v2403_v45, %v2410_v62  ;;  %v3030_v62 = vld [vmem:[%s6669_s5 + $0x58] sm:$0xff]  ;;  %v3025_v45 = vld [vmem:[%s6669_s5 + $0x30] sm:$0xff] }
 0x282   : > { %v2389_v8 = vadd.f32 %v2366_v11, %v5608_v54 }
 0x284   : > { %v2414_v51 = vsel %vm1455_vm0, %v2389_v8, -inf  ;;  %v3029_v8 = vld [vmem:[%s6669_s5 + $0x50] sm:$0xff] }
 0x285   : > { %v2374_v12 = vpop.permute.xlu1 %2373  ;;  %v2415_v58 = vmax.f32 %v2407_v6, %v2414_v51 }
 0x286   : > { %v2391_v7 = vadd.f32 %v2374_v12, %v5621_v19  ;;  %v1959_v19 = vrot.slane %v1958_v31, 1  ;;  %v3028_v12 = vld [vmem:[%s6669_s5 + $0x48] sm:$0xff] }
 0x287   : > { %v2420_v15 = vmax.f32 %v2413_v5, %v2415_v58  ;;  %v3110_v58 = vld [vmem:[%s6671_s7 + $0x8] sm:$0xff] }
 0x288   : > { %v2418_v54 = vsel %vm1455_vm0, %v2391_v7, -inf  ;;  %v1960_v30 = vmax.f32 %v1958_v31, %v1959_v19  ;;  %v3024_v7 = vld [vmem:[%s6669_s5 + $0x28] sm:$0xff] }
 0x289   : > { %v2419_v4 = vmax.f32 %v2411_v13, %v2418_v54 }
 0x28a   : > { %v2821_v3 = vsel %vm1455_vm0, %v1960_v30, %v3933_v42 }
 0x28b   : > { %v2421_v14 = vmax.f32 %v2417_v33, %v2419_v4  ;;  %v3109_v33 = vld [vmem:[%s6671_s7] sm:$0xff] }
 0x28c   : > { %v3937_v20 = vpop.permute.xlu1 %3936 }
 0x28d   : > { %v3939_v50 = vunpack.i.h.bf16 %v3937_v20  ;;  %v3938_v59 = vunpack.i.l.bf16 %v3937_v20  ;;  %v2422_v27 = vmax.f32 %v2420_v15, %v2421_v14 }
 0x28f   : > { %v2818_v55 = vsel %vm2817_vm2, %v2816_v17, %v3939_v50  ;;  %v2822_v2 = vsel %vm2817_vm2, %v2821_v3, %v3938_v59  ;;  %v2423_v53 = vrot.slane %v2422_v27, 4 }
 0x290   : > { %v2823_v23 = vsel %vm2819_vm3, %v2822_v2, %v3943_v63  ;;  %v2820_v22 = vsel %vm2819_vm3, %v2818_v55, %v3944_v9 }
 0x291   : > { %2940 = vmatprep.mubr.f32.mxu1 %v2823_v23  ;;  %v2424_v11 = vmax.f32 %v2422_v27, %v2423_v53  ;;  %v2806_v18 = vpop.permute.xlu1 %2805 }
 0x292   : > { %2941 = vmatmul.mubr.f32.vlgmr.msra.gmra.mxu1 %v2820_v22 }
 0x293   : > { %3814 = vmatprep.mubr.msk.f32.mxu1 %vm4049_vm1, %v4047_v21  ;;  %v2425_v35 = vrot.slane %v2424_v11, 2  ;;  %3783 = vmatpush3.msra.mxu1 %v3034_v41 }
 0x294   : > { %3784 = vmatprep.subr.mxu1 %v4047_v21 }
 0x295   : > { %v2426_v52 = vmax.f32 %v2424_v11, %v2425_v35  ;;  %3785 = vmatpush3.msra.mxu1 %v3033_v61 }
 0x296   : > { %3786 = vmatprep.subr.mxu1 %v4047_v21 }
 0x297   : > { %v2427_v24 = vrot.slane %v2426_v52, 1  ;;  %3787 = vmatpush3.msra.mxu1 %v3032_v38 }
 0x298   : > { %3788 = vmatprep.subr.mxu1 %v4047_v21 }
 0x299   : > { %v2428_v43 = vmax.f32 %v2426_v52, %v2427_v24  ;;  %3789 = vmatpush3.msra.mxu1 %v3031_v37 }
 0x29a   : > { %3790 = vmatprep.subr.mxu1 %v4047_v21 }
 0x29b   : > { %v2824_v16 = vsel %vm1455_vm0, %v2428_v43, %v2806_v18  ;;  %3791 = vmatpush3.msra.mxu1 %v3030_v62 }
 0x29c   : > { %3792 = vmatprep.subr.mxu1 %v4047_v21 }
 0x29d   : > { %3793 = vmatpush3.msra.mxu1 %v3029_v8 }
 0x29e   : > { %3794 = vmatprep.subr.mxu1 %v4047_v21 }
 0x29f   : > { %3795 = vmatpush3.msra.mxu1 %v3028_v12 }
 0x2a0   : > { %3796 = vmatprep.subr.mxu1 %v4047_v21 }
 0x2a1   : > { %3797 = vmatpush3.msra.mxu1 %v3027_v39 }
 0x2a2   : > { %3798 = vmatprep.subr.mxu1 %v4047_v21 }
 0x2a3   : > { %3799 = vmatpush3.msra.mxu1 %v3026_v57 }
 0x2a4   : > { %3800 = vmatprep.subr.mxu1 %v4047_v21 }
 0x2a5   : > { %3801 = vmatpush3.msra.mxu1 %v3025_v45 }
 0x2a6   : > { %3802 = vmatprep.subr.mxu1 %v4047_v21 }
 0x2a7   : > { %v2810_v46 = vpop.permute.xlu0 %2809  ;;  %3803 = vmatpush3.msra.mxu1 %v3024_v7 }
 0x2a8   : > { %v2825_v25 = vsel %vm2817_vm2, %v2824_v16, %v2810_v46  ;;  %3804 = vmatprep.subr.mxu1 %v4047_v21 }
 0x2a9   : > { %3805 = vmatpush3.msra.mxu1 %v3023_v28 }
 0x2aa   : > { %3806 = vmatprep.subr.mxu1 %v4047_v21 }
 0x2ab   : > { %3807 = vmatpush3.msra.mxu1 %v3022_v34 }
 0x2ac   : > { %3808 = vmatprep.subr.mxu1 %v4047_v21 }
 0x2ad   : > { %3809 = vmatpush3.msra.mxu1 %v3021_v44 }
 0x2ae   : > { %3810 = vmatprep.subr.mxu1 %v4047_v21 }
 0x2af   : > { %3811 = vmatpush3.msra.mxu1 %v3020_v56 }
 0x2b0   : > { %v2814_v49 = vpop.permute.xlu1 %2813  ;;  %3812 = vmatprep.subr.mxu1 %v4047_v21 }
 0x2b1   : > { %v2826_v31 = vsel %vm2819_vm3, %v2825_v25, %v2814_v49  ;;  %3813 = vmatpush3.msra.mxu1 %v3019_v29 }
 0x2b2   : > { %3780 = vmatmul.mubr.f32.vlgmr.msra.gmra.mxu0 %v2826_v31 }
 0x2b3   : > { %3825 = vmatprep.mubr.msk.f32.mxu0 %vm4049_vm1, %v4047_v21  ;;  %3818 = vmatpush3.msra.mxu0 %v3112_v48 }
 0x2b4   : > { %3819 = vmatprep.subr.mxu0 %v4047_v21 }
 0x2b5   : > { %3820 = vmatpush3.msra.mxu0 %v3111_v32 }
 0x2b6   : > { %3821 = vmatprep.subr.mxu0 %v4047_v21 }
 0x2b7   : > { %3822 = vmatpush3.msra.mxu0 %v3110_v58 }
 0x2b8   : > { %3823 = vmatprep.subr.mxu0 %v4047_v21 }
 0x2b9   : > { %3824 = vmatpush3.msra.mxu0 %v3109_v33 }
 0x352   : > { %v3649_v40 = vpop.f32.mrf.mxu1 }
 0x354   : > { %v3650_v13 = vpop.f32.mrf.mxu1 }
 0x355   : > { %v3651_v54 = vadd.f32 %v3650_v13, %v3649_v40 }
 0x357   : > { %v2943_v47 = vadd.f32 %v3651_v54, %v2875_v10 }
 0x372   : > { %v3012_v51 = vpop.f32.mrf.mxu0 }
 0x373   : > { %v3013_v19 = vadd.f32 %v3012_v51, %v2943_v47 }
 0x374   : > { %v3781_v26 = vpop.f32.mrf.mxu0 }
 0x375   : > { %vm3016_vm4 = vcmp.gt.f32.partialorder %v3013_v19, 0.0  ;;  %v3017_v6 = vmul.f32 0.01, %v3013_v19 }
 0x377   : > { %v3018_v4 = vsel %vm3016_vm4, %v3013_v19, %v3017_v6 }
 0x378   : > { %3815 = vmatmul.mubr.f32.vlgmr.msra.gmra.mxu1 %v3018_v4 }
 0x438   : > { %v3102_v36 = vpop.f32.mrf.mxu1 }
 0x439   : > { %v3103_v30 = vadd.f32 %v3102_v36, %v3035_v1 }
 0x43a   : > { %v3816_v60 = vpop.f32.mrf.mxu1 }
 0x43b   : > { %vm3106_vm5 = vcmp.gt.f32.partialorder %v3103_v30, 0.0  ;;  %v3107_v5 = vmul.f32 0.01, %v3103_v30 }
 0x43d   : > { %v3108_v14 = vsel %vm3106_vm5, %v3103_v30, %v3107_v5 }
 0x43e   : > { %3826 = vmatmul.mubr.msk.f32.vlgmr.msra.gmra.mxu0 %vm1455_vm0, %v3108_v14 }
 0x4fe   : > { %v3183_v21 = vpop.f32.mrf.mxu0 }
 0x4ff   : > { %v3184_v42 = vadd.f32 %v3183_v21, %v3113_v0 }
 0x500   : > { %v3827_v20 = vpop.f32.mrf.mxu0 }
 0x501   : > { %3187 = vst [vmem:[%s324_s28] sm:$0x1] %v3184_v42 }
 0x502   : > { %3984 = shalt.err (!%p3981_p3)
}
 0x503   : > { %s3985_s21 = scalar_lea.hbm %s6629_s26, 16  ;;  %s3989_s28 = scalar_lea.hbm %s6673_s9, 32 }
 0x504   : > { %p3986_p4 = scmp.ne.s32.totalorder %s6629_s26, %s3985_s21  ;;  %p3990_p9 = scmp.lt.s32.totalorder %s6629_s26, %s6673_s9 }
 0x505   : > { %p3991_p10 = scmp.lt.s32.totalorder %s3989_s28, %s3985_s21 }
 0x506   : > { %p3987_p7 = pnand %p3986_p4, %p4139_p5 }
 0x507   : > { %p3992_p11 = por %p3991_p10, %p3990_p9 }
 0x508   : > { %p3988_p8 = pneg %p3987_p7 }
 0x50a   : > { %p3993_p12 = pnand %p3992_p11, %p3988_p8 }
 0x50c   : > { %3996 = shalt.err (!%p3993_p12)
}
 0x50d   : > { %3829 = dma.vmem_to_hbm [thread:$0]  (%p4139_p5), %s3202_s25, 16, %s6629_s26, %s3189_s27  }
 0x50e PF: > { %p3835_p13 = scmp.ge.s32.totalorder %s4031_s12, 2  ;;  %s3213_s29 = sand.u32 1, %s4019_s30  }
 0x50f   : > { %s3214_s14 = scalar_lea.sflag [#allocation3], %s3213_s29 }
 0x510   : > { %p3832_p0 = pnand %p3835_p13, %p4143_p6 }
 0x512   : > { %p3833_p1 = pneg %p3832_p0 }
 0x514   : > { %4014 = dma.done.wait (%p3833_p1), %s3214_s14, 16  }
 0x515   : > { %4016 = vsyncadd (%p3833_p1), %s3214_s14, 4294967280  ;;  %p19_p2 = scmp.ge.s32.totalorder %s4126_s15, 4   ;;  %s6990_s30 = smov %s4023_s10 }
 0x516   : > { %s6991_s10 = smov %s4027_s11  ;;  %s6992_s11 = smov %s4137_s18 }
 0x517   : > { %s6993_s12 = smov %s4126_s15  ;;  %21 = sbr.rel (!%p19_p2) target bundleno = 3 (0x3), region = 91 }
 0x51c   :  { %3218 = vsyncpa [#allocation3], 1 }
 0x51d   :  { %3220 = vsyncpa [#allocation3 + $0x1], 1 }

</bundles_post_ra>
